<compile_context>
chip_gen: v7x
topology: tpu7x:2x2x1
jax: 0.10.0
libtpu: 0.0.40
codegen_flags: <defaults>
</compile_context>

<pallas_src>
import jax
import jax.numpy as jnp
import numpy as np
from jax.experimental import pallas as pl
from jax.experimental.pallas import tpu as pltpu

IN_FEATURES = 48706          # fc1 input width (from the module definition)
H1 = 256                     # fc1/fc2/fc3 width
H2 = 128                     # fc4/fc5 width
OUT = 128                    # final output width (fc5 output; fc6 is unused)

TK = 16384                   # fc1 reduction tile (bf16 -> 4 MB of W1 per step)
NT = 128                     # fc1 output-column tile (2 tiles -> megacore split on v7x)
K_PAD = ((IN_FEATURES + TK - 1) // TK) * TK      # 49152 = 3 * TK


# --------------------------------------------------------------------------
# Kernel 1: one 128-column slice of  h1 = relu(x @ W1 + b1)
#   grid = (n, k):  n = output-column half ("parallel"),
#                   k = reduction tile over the 48706-wide input ("arbitrary")
# --------------------------------------------------------------------------
def _fc1_kernel(x_ref, w1_ref, b1_ref, h_ref, acc_ref):
    k = pl.program_id(1)

    @pl.when(k == 0)
    def _():
        acc_ref[...] = jnp.zeros_like(acc_ref)

    # bf16 x bf16 -> fp32 accumulate on the MXU.
    acc_ref[...] += jnp.dot(x_ref[...], w1_ref[...],
                            preferred_element_type=jnp.float32)

    @pl.when(k == pl.num_programs(1) - 1)
    def _():
        h_ref[...] = jnp.maximum(acc_ref[...] + b1_ref[...], 0.0)


# --------------------------------------------------------------------------
# Kernel 2: the tiny tail, fully resident in VMEM (single invocation).
#   relu(fc2), relu(fc3), relu(fc4), relu(fc5), fc5 again, log_softmax
# --------------------------------------------------------------------------
def _tail_kernel(h_ref, w2_ref, b2_ref, w3_ref, b3_ref, w4_ref, b4_ref,
                 w5_ref, b5_ref, out_ref):
    h = h_ref[...]
    h = jnp.maximum(jnp.dot(h, w2_ref[...],
                            preferred_element_type=jnp.float32) + b2_ref[...], 0.0)
    h = jnp.maximum(jnp.dot(h, w3_ref[...],
                            preferred_element_type=jnp.float32) + b3_ref[...], 0.0)
    h = jnp.maximum(jnp.dot(h, w4_ref[...],
                            preferred_element_type=jnp.float32) + b4_ref[...], 0.0)
    h = jnp.maximum(jnp.dot(h, w5_ref[...],
                            preferred_element_type=jnp.float32) + b5_ref[...], 0.0)
    h = jnp.dot(h, w5_ref[...],
                preferred_element_type=jnp.float32) + b5_ref[...]      # fc5 again, no relu
    # log_softmax over the feature axis (PyTorch default dim=1 for 2-D input).
    m = jnp.max(h, axis=-1, keepdims=True)
    z = h - m
    lse = jnp.log(jnp.sum(jnp.exp(z), axis=-1, keepdims=True))
    out_ref[...] = (z - lse).astype(out_ref.dtype)


@jax.jit
def net_forward(x, params):
    """x: (B, IN_FEATURES) float32.  params: output of prepare_params()."""
    B, K = x.shape
    assert K == IN_FEATURES

    # Only the (small) activation is padded / cast per call; W1 was pre-padded
    # and cast to bf16 once at init time.
    x_p = jnp.pad(x, ((0, 0), (0, K_PAD - K))).astype(jnp.bfloat16)
    w1 = params["w1"]                      # (K_PAD, H1) bfloat16

    n_tiles = H1 // NT                     # 2
    k_tiles = K_PAD // TK                  # 3

    fc1_cost = pl.CostEstimate(
        flops=2 * B * K_PAD * H1,
        transcendentals=0,
        bytes_accessed=K_PAD * H1 * 2 + B * K_PAD * 2 + B * H1 * 4,
    )

    # ---- fc1 (HBM-bound: streams the 25 MB bf16 W1) ----------------------
    h1 = pl.pallas_call(
        _fc1_kernel,
        out_shape=jax.ShapeDtypeStruct((B, H1), jnp.float32),
        grid_spec=pltpu.PrefetchScalarGridSpec(
            num_scalar_prefetch=0,
            grid=(n_tiles, k_tiles),
            in_specs=[
                pl.BlockSpec((B, TK), lambda n, k: (0, k)),    # x  (tiled over K)
                pl.BlockSpec((TK, NT), lambda n, k: (k, n)),   # W1 (tiled over K, N)
                pl.BlockSpec((1, NT), lambda n, k: (0, n)),    # b1 (tiled over N)
            ],
            out_specs=pl.BlockSpec((B, NT), lambda n, k: (0, n)),
            scratch_shapes=[pltpu.VMEM((B, NT), jnp.float32)],
        ),
        compiler_params=pltpu.CompilerParams(
            dimension_semantics=("parallel", "arbitrary"),
            vmem_limit_bytes=48 * 1024 * 1024,   # safe on v5e/v6e (128 MiB) and v7x (64 MiB)
        ),
        cost_estimate=fc1_cost,
    )(x_p, w1, params["b1"])

    # ---- tiny tail layers + log_softmax (everything fits in VMEM) --------
    full = lambda shape: pl.BlockSpec(shape, lambda i: (0, 0))
    out = pl.pallas_call(
        _tail_kernel,
        out_shape=jax.ShapeDtypeStruct((B, OUT), jnp.float32),
        grid_spec=pltpu.PrefetchScalarGridSpec(
            num_scalar_prefetch=0,
            grid=(1,),
            in_specs=[
                full((B, H1)),                       # h1
                full((H1, H1)), full((1, H1)),       # W2, b2
                full((H1, H1)), full((1, H1)),       # W3, b3
                full((H1, H2)), full((1, H2)),       # W4, b4
                full((H2, H2)), full((1, H2)),       # W5, b5
            ],
            out_specs=full((B, OUT)),
        ),
        compiler_params=pltpu.CompilerParams(
            dimension_semantics=("arbitrary",)),
    )(h1, params["w2"], params["b2"], params["w3"], params["b3"],
      params["w4"], params["b4"], params["w5"], params["b5"])

    # TODO(synk): if batch sizes grow well beyond ~128, also tile B with a
    # "parallel" axis so the fc1 matmul keeps the MXU rows busy.
    return out


def init_params(key):
    """Deterministic init mimicking nn.Linear defaults: U(-1/sqrt(fan_in), ...)."""
    dims = {"1": (IN_FEATURES, H1), "2": (H1, H1), "3": (H1, H1),
            "4": (H1, H2), "5": (H2, H2)}
    params = {}
    for name, (fin, fout) in dims.items():
        key, kw, kb = jax.random.split(key, 3)
        bound = 1.0 / np.sqrt(fin)
        params[f"w{name}"] = jax.random.uniform(
            kw, (fin, fout), jnp.float32, -bound, bound)
        params[f"b{name}"] = jax.random.uniform(
            kb, (1, fout), jnp.float32, -bound, bound)
    return params


def prepare_params(params):
    """One-time conversion for the kernel: pre-pad W1's reduction dim to K_PAD
    (zero rows, so the matmul is unchanged) and cast it to bfloat16.  This keeps
    the per-call HBM stream at ~25 MB and avoids re-padding inside the jit."""
    prep = dict(params)
    prep["w1"] = jnp.pad(
        params["w1"], ((0, K_PAD - IN_FEATURES), (0, 0))).astype(jnp.bfloat16)
    return prep


def reference_forward(x, prep):
    """Pure-JAX reference using the same bf16-quantized fc1 operands and an
    fp32 accumulator, so it matches the kernel's numerics bit-for-bit up to
    accumulation order (padding rows are zero -> same math as the module)."""
    xb = jnp.pad(x, ((0, 0), (0, K_PAD - x.shape[1]))).astype(jnp.bfloat16)
    h = jax.nn.relu(jnp.dot(xb, prep["w1"],
                            preferred_element_type=jnp.float32) + prep["b1"])
    h = jax.nn.relu(h @ prep["w2"] + prep["b2"])
    h = jax.nn.relu(h @ prep["w3"] + prep["b3"])
    h = jax.nn.relu(h @ prep["w4"] + prep["b4"])
    h = jax.nn.relu(h @ prep["w5"] + prep["b5"])
    h = h @ prep["w5"] + prep["b5"]
    return jax.nn.log_softmax(h, axis=-1)


if __name__ == "__main__":
    key = jax.random.PRNGKey(0)
    kx, kp = jax.random.split(key)

    B = 8  # small batch; feature width is fixed by the module (fc1: 48706)
    x = jax.random.normal(kx, (B, IN_FEATURES), jnp.float32)
    params = prepare_params(init_params(kp))

    out = jax.block_until_ready(net_forward(x, params))
    ref = jax.block_until_ready(reference_forward(x, params))

    np.testing.assert_allclose(np.asarray(out), np.asarray(ref),
                               rtol=1e-3, atol=1e-3)
    print("KERNEL_OK")
</pallas_src>

<mosaic_0001>
module attributes {stable_mosaic.version = 11 : i64} {
  func.func @_fc1_kernel(%arg0: i32, %arg1: i32, %arg2: memref<8x16384xbf16, #tpu.memory_space<vmem>>, %arg3: memref<16384x128xbf16, #tpu.memory_space<vmem>>, %arg4: memref<1x128xf32, #tpu.memory_space<vmem>>, %arg5: memref<8x128xf32, #tpu.memory_space<vmem>>, %arg6: memref<8x128xf32, #tpu.memory_space<vmem>>) attributes {dimension_semantics = [#tpu.dimension_semantics<parallel>, #tpu.dimension_semantics<arbitrary>], iteration_bounds = array<i64: 2, 3>, scalar_prefetch = 0 : i64, scratch_operands = 1 : i64, tpu.core_type = #tpu.core_type<tc>, window_params = [{transform_indices = @transform_0, window_bounds = array<i64: 8, 16384>}, {transform_indices = @transform_1, window_bounds = array<i64: 16384, 128>}, {transform_indices = @transform_2, window_bounds = array<i64: 1, 128>}, {transform_indices = @transform_3, window_bounds = array<i64: 8, 128>}]} {
    %c0_i32 = arith.constant 0 : i32
    %0 = arith.cmpi eq, %arg1, %c0_i32 : i32
    %1 = arith.extui %0 : i1 to i32
    %c0_i32_0 = arith.constant 0 : i32
    %2 = arith.cmpi ne, %1, %c0_i32_0 : i32
    scf.if %2 {
      %cst_9 = arith.constant 0.000000e+00 : f32
      %12 = vector.broadcast %cst_9 : f32 to vector<8x128xf32>
      %c0_10 = arith.constant 0 : index
      %c0_11 = arith.constant 0 : index
      %13 = vector.load %arg6[%c0_10, %c0_11] : memref<8x128xf32, #tpu.memory_space<vmem>>, vector<8x128xf32>
      tpu.vector_store %arg6[%c0_10, %c0_11], %12 {strides = array<i32>} : memref<8x128xf32, #tpu.memory_space<vmem>>, vector<8x128xf32>,
    } else {
    }
    %c0 = arith.constant 0 : index
    %c0_1 = arith.constant 0 : index
    %3 = vector.load %arg6[%c0, %c0_1] : memref<8x128xf32, #tpu.memory_space<vmem>>, vector<8x128xf32>
    %c0_2 = arith.constant 0 : index
    %c0_3 = arith.constant 0 : index
    %4 = vector.load %arg2[%c0_2, %c0_3] : memref<8x16384xbf16, #tpu.memory_space<vmem>>, vector<8x16384xbf16>
    %c0_4 = arith.constant 0 : index
    %c0_5 = arith.constant 0 : index
    %5 = vector.load %arg3[%c0_4, %c0_5] : memref<16384x128xbf16, #tpu.memory_space<vmem>>, vector<16384x128xbf16>
    %cst = arith.constant dense<0.000000e+00> : vector<8x128xf32>
    %6 = tpu.matmul %4, %5, %cst {dimension_numbers = #tpu.dot_dimension_numbers<[1], [0], [0], [1], [0, 0, 1, 1], [], []>} : vector<8x16384xbf16>, vector<16384x128xbf16>, vector<8x128xf32> -> vector<8x128xf32>
    %7 = arith.addf %3, %6 : vector<8x128xf32>
    %c0_6 = arith.constant 0 : index
    %c0_7 = arith.constant 0 : index
    %8 = vector.load %arg6[%c0_6, %c0_7] : memref<8x128xf32, #tpu.memory_space<vmem>>, vector<8x128xf32>
    tpu.vector_store %arg6[%c0_6, %c0_7], %7 {strides = array<i32>} : memref<8x128xf32, #tpu.memory_space<vmem>>, vector<8x128xf32>,
    %c2_i32 = arith.constant 2 : i32
    %9 = arith.cmpi eq, %arg1, %c2_i32 : i32
    %10 = arith.extui %9 : i1 to i32
    %c0_i32_8 = arith.constant 0 : i32
    %11 = arith.cmpi ne, %10, %c0_i32_8 : i32
    scf.if %11 {
      %c0_9 = arith.constant 0 : index
      %c0_10 = arith.constant 0 : index
      %12 = vector.load %arg6[%c0_9, %c0_10] : memref<8x128xf32, #tpu.memory_space<vmem>>, vector<8x128xf32>
      %c0_11 = arith.constant 0 : index
      %c0_12 = arith.constant 0 : index
      %13 = vector.load %arg4[%c0_11, %c0_12] : memref<1x128xf32, #tpu.memory_space<vmem>>, vector<1x128xf32>
      %14 = vector.broadcast %13 : vector<1x128xf32> to vector<8x128xf32>
      %15 = arith.addf %12, %14 : vector<8x128xf32>
      %cst_13 = arith.constant 0.000000e+00 : f32
      %16 = vector.broadcast %cst_13 : f32 to vector<8x128xf32>
      %17 = arith.maximumf %15, %16 : vector<8x128xf32>
      %c0_14 = arith.constant 0 : index
      %c0_15 = arith.constant 0 : index
      %18 = vector.load %arg5[%c0_14, %c0_15] : memref<8x128xf32, #tpu.memory_space<vmem>>, vector<8x128xf32>
      tpu.vector_store %arg5[%c0_14, %c0_15], %17 {strides = array<i32>} : memref<8x128xf32, #tpu.memory_space<vmem>>, vector<8x128xf32>,
    } else {
    }
    return
  }
  func.func @transform_0(%arg0: i32, %arg1: i32) -> (i32, i32) {
    %c0_i32 = arith.constant 0 : i32
    %c0_i32_0 = arith.constant 0 : i32
    return %c0_i32, %arg1 : i32, i32
  }
  func.func @transform_1(%arg0: i32, %arg1: i32) -> (i32, i32) {
    %c0_i32 = arith.constant 0 : i32
    return %arg1, %arg0 : i32, i32
  }
  func.func @transform_2(%arg0: i32, %arg1: i32) -> (i32, i32) {
    %c0_i32 = arith.constant 0 : i32
    %c0_i32_0 = arith.constant 0 : i32
    return %c0_i32, %arg0 : i32, i32
  }
  func.func @transform_3(%arg0: i32, %arg1: i32) -> (i32, i32) {
    %c0_i32 = arith.constant 0 : i32
    %c0_i32_0 = arith.constant 0 : i32
    return %c0_i32, %arg0 : i32, i32
  }
}

module attributes {stable_mosaic.version = 11 : i64} {
  func.func @_tail_kernel(%arg0: i32, %arg1: memref<8x256xf32, #tpu.memory_space<vmem>>, %arg2: memref<256x256xf32, #tpu.memory_space<vmem>>, %arg3: memref<1x256xf32, #tpu.memory_space<vmem>>, %arg4: memref<256x256xf32, #tpu.memory_space<vmem>>, %arg5: memref<1x256xf32, #tpu.memory_space<vmem>>, %arg6: memref<256x128xf32, #tpu.memory_space<vmem>>, %arg7: memref<1x128xf32, #tpu.memory_space<vmem>>, %arg8: memref<128x128xf32, #tpu.memory_space<vmem>>, %arg9: memref<1x128xf32, #tpu.memory_space<vmem>>, %arg10: memref<8x128xf32, #tpu.memory_space<vmem>>) attributes {dimension_semantics = [#tpu.dimension_semantics<arbitrary>], iteration_bounds = array<i64: 1>, scalar_prefetch = 0 : i64, scratch_operands = 0 : i64, tpu.core_type = #tpu.core_type<tc>, window_params = [{pipeline_mode = #tpu.pipeline_mode<synchronous>, transform_indices = @transform_0, window_bounds = array<i64: 8, 256>}, {pipeline_mode = #tpu.pipeline_mode<synchronous>, transform_indices = @transform_1, window_bounds = array<i64: 256, 256>}, {pipeline_mode = #tpu.pipeline_mode<synchronous>, transform_indices = @transform_2, window_bounds = array<i64: 1, 256>}, {pipeline_mode = #tpu.pipeline_mode<synchronous>, transform_indices = @transform_3, window_bounds = array<i64: 256, 256>}, {pipeline_mode = #tpu.pipeline_mode<synchronous>, transform_indices = @transform_4, window_bounds = array<i64: 1, 256>}, {pipeline_mode = #tpu.pipeline_mode<synchronous>, transform_indices = @transform_5, window_bounds = array<i64: 256, 128>}, {pipeline_mode = #tpu.pipeline_mode<synchronous>, transform_indices = @transform_6, window_bounds = array<i64: 1, 128>}, {pipeline_mode = #tpu.pipeline_mode<synchronous>, transform_indices = @transform_7, window_bounds = array<i64: 128, 128>}, {pipeline_mode = #tpu.pipeline_mode<synchronous>, transform_indices = @transform_8, window_bounds = array<i64: 1, 128>}, {pipeline_mode = #tpu.pipeline_mode<synchronous>, transform_indices = @transform_9, window_bounds = array<i64: 8, 128>}]} {
    %c0 = arith.constant 0 : index
    %c0_0 = arith.constant 0 : index
    %0 = vector.load %arg1[%c0, %c0_0] : memref<8x256xf32, #tpu.memory_space<vmem>>, vector<8x256xf32>
    %c0_1 = arith.constant 0 : index
    %c0_2 = arith.constant 0 : index
    %1 = vector.load %arg2[%c0_1, %c0_2] : memref<256x256xf32, #tpu.memory_space<vmem>>, vector<256x256xf32>
    %cst = arith.constant dense<0.000000e+00> : vector<8x256xf32>
    %2 = tpu.matmul %0, %1, %cst {dimension_numbers = #tpu.dot_dimension_numbers<[1], [0], [0], [1], [0, 0, 1, 1], [], []>} : vector<8x256xf32>, vector<256x256xf32>, vector<8x256xf32> -> vector<8x256xf32>
    %c0_3 = arith.constant 0 : index
    %c0_4 = arith.constant 0 : index
    %3 = vector.load %arg3[%c0_3, %c0_4] : memref<1x256xf32, #tpu.memory_space<vmem>>, vector<1x256xf32>
    %4 = vector.broadcast %3 : vector<1x256xf32> to vector<8x256xf32>
    %5 = arith.addf %2, %4 : vector<8x256xf32>
    %cst_5 = arith.constant 0.000000e+00 : f32
    %6 = vector.broadcast %cst_5 : f32 to vector<8x256xf32>
    %7 = arith.maximumf %5, %6 : vector<8x256xf32>
    %c0_6 = arith.constant 0 : index
    %c0_7 = arith.constant 0 : index
    %8 = vector.load %arg4[%c0_6, %c0_7] : memref<256x256xf32, #tpu.memory_space<vmem>>, vector<256x256xf32>
    %cst_8 = arith.constant dense<0.000000e+00> : vector<8x256xf32>
    %9 = tpu.matmul %7, %8, %cst_8 {dimension_numbers = #tpu.dot_dimension_numbers<[1], [0], [0], [1], [0, 0, 1, 1], [], []>} : vector<8x256xf32>, vector<256x256xf32>, vector<8x256xf32> -> vector<8x256xf32>
    %c0_9 = arith.constant 0 : index
    %c0_10 = arith.constant 0 : index
    %10 = vector.load %arg5[%c0_9, %c0_10] : memref<1x256xf32, #tpu.memory_space<vmem>>, vector<1x256xf32>
    %11 = vector.broadcast %10 : vector<1x256xf32> to vector<8x256xf32>
    %12 = arith.addf %9, %11 : vector<8x256xf32>
    %cst_11 = arith.constant 0.000000e+00 : f32
    %13 = vector.broadcast %cst_11 : f32 to vector<8x256xf32>
    %14 = arith.maximumf %12, %13 : vector<8x256xf32>
    %c0_12 = arith.constant 0 : index
    %c0_13 = arith.constant 0 : index
    %15 = vector.load %arg6[%c0_12, %c0_13] : memref<256x128xf32, #tpu.memory_space<vmem>>, vector<256x128xf32>
    %cst_14 = arith.constant dense<0.000000e+00> : vector<8x128xf32>
    %16 = tpu.matmul %14, %15, %cst_14 {dimension_numbers = #tpu.dot_dimension_numbers<[1], [0], [0], [1], [0, 0, 1, 1], [], []>} : vector<8x256xf32>, vector<256x128xf32>, vector<8x128xf32> -> vector<8x128xf32>
    %c0_15 = arith.constant 0 : index
    %c0_16 = arith.constant 0 : index
    %17 = vector.load %arg7[%c0_15, %c0_16] : memref<1x128xf32, #tpu.memory_space<vmem>>, vector<1x128xf32>
    %18 = vector.broadcast %17 : vector<1x128xf32> to vector<8x128xf32>
    %19 = arith.addf %16, %18 : vector<8x128xf32>
    %cst_17 = arith.constant 0.000000e+00 : f32
    %20 = vector.broadcast %cst_17 : f32 to vector<8x128xf32>
    %21 = arith.maximumf %19, %20 : vector<8x128xf32>
    %c0_18 = arith.constant 0 : index
    %c0_19 = arith.constant 0 : index
    %22 = vector.load %arg8[%c0_18, %c0_19] : memref<128x128xf32, #tpu.memory_space<vmem>>, vector<128x128xf32>
    %cst_20 = arith.constant dense<0.000000e+00> : vector<8x128xf32>
    %23 = tpu.matmul %21, %22, %cst_20 {dimension_numbers = #tpu.dot_dimension_numbers<[1], [0], [0], [1], [0, 0, 1, 1], [], []>} : vector<8x128xf32>, vector<128x128xf32>, vector<8x128xf32> -> vector<8x128xf32>
    %c0_21 = arith.constant 0 : index
    %c0_22 = arith.constant 0 : index
    %24 = vector.load %arg9[%c0_21, %c0_22] : memref<1x128xf32, #tpu.memory_space<vmem>>, vector<1x128xf32>
    %25 = vector.broadcast %24 : vector<1x128xf32> to vector<8x128xf32>
    %26 = arith.addf %23, %25 : vector<8x128xf32>
    %cst_23 = arith.constant 0.000000e+00 : f32
    %27 = vector.broadcast %cst_23 : f32 to vector<8x128xf32>
    %28 = arith.maximumf %26, %27 : vector<8x128xf32>
    %c0_24 = arith.constant 0 : index
    %c0_25 = arith.constant 0 : index
    %29 = vector.load %arg8[%c0_24, %c0_25] : memref<128x128xf32, #tpu.memory_space<vmem>>, vector<128x128xf32>
    %cst_26 = arith.constant dense<0.000000e+00> : vector<8x128xf32>
    %30 = tpu.matmul %28, %29, %cst_26 {dimension_numbers = #tpu.dot_dimension_numbers<[1], [0], [0], [1], [0, 0, 1, 1], [], []>} : vector<8x128xf32>, vector<128x128xf32>, vector<8x128xf32> -> vector<8x128xf32>
    %c0_27 = arith.constant 0 : index
    %c0_28 = arith.constant 0 : index
    %31 = vector.load %arg9[%c0_27, %c0_28] : memref<1x128xf32, #tpu.memory_space<vmem>>, vector<1x128xf32>
    %32 = vector.broadcast %31 : vector<1x128xf32> to vector<8x128xf32>
    %33 = arith.addf %30, %32 : vector<8x128xf32>
    %cst_29 = arith.constant dense<0xFF800000> : vector<8xf32>
    %34 = vector.multi_reduction <maximumf>, %33, %cst_29 [1] : vector<8x128xf32> to vector<8xf32>
    %35 = vector.shape_cast %34 : vector<8xf32> to vector<8x1xf32>
    %36 = vector.broadcast %35 : vector<8x1xf32> to vector<8x128xf32>
    %37 = arith.subf %33, %36 : vector<8x128xf32>
    %38 = math.exp %37 : vector<8x128xf32>
    %cst_30 = arith.constant dense<0.000000e+00> : vector<8xf32>
    %39 = vector.multi_reduction <add>, %38, %cst_30 [1] : vector<8x128xf32> to vector<8xf32>
    %40 = vector.shape_cast %39 : vector<8xf32> to vector<8x1xf32>
    %41 = math.log %40 : vector<8x1xf32>
    %42 = vector.broadcast %41 : vector<8x1xf32> to vector<8x128xf32>
    %43 = arith.subf %37, %42 : vector<8x128xf32>
    %c0_31 = arith.constant 0 : index
    %c0_32 = arith.constant 0 : index
    %44 = vector.load %arg10[%c0_31, %c0_32] : memref<8x128xf32, #tpu.memory_space<vmem>>, vector<8x128xf32>
    tpu.vector_store %arg10[%c0_31, %c0_32], %43 {strides = array<i32>} : memref<8x128xf32, #tpu.memory_space<vmem>>, vector<8x128xf32>,
    return
  }
  func.func @transform_0(%arg0: i32) -> (i32, i32) {
    %c0_i32 = arith.constant 0 : i32
    %c0_i32_0 = arith.constant 0 : i32
    %c0_i32_1 = arith.constant 0 : i32
    return %c0_i32, %c0_i32_0 : i32, i32
  }
  func.func @transform_1(%arg0: i32) -> (i32, i32) {
    %c0_i32 = arith.constant 0 : i32
    %c0_i32_0 = arith.constant 0 : i32
    %c0_i32_1 = arith.constant 0 : i32
    return %c0_i32, %c0_i32_0 : i32, i32
  }
  func.func @transform_2(%arg0: i32) -> (i32, i32) {
    %c0_i32 = arith.constant 0 : i32
    %c0_i32_0 = arith.constant 0 : i32
    %c0_i32_1 = arith.constant 0 : i32
    return %c0_i32, %c0_i32_0 : i32, i32
  }
  func.func @transform_3(%arg0: i32) -> (i32, i32) {
    %c0_i32 = arith.constant 0 : i32
    %c0_i32_0 = arith.constant 0 : i32
    %c0_i32_1 = arith.constant 0 : i32
    return %c0_i32, %c0_i32_0 : i32, i32
  }
  func.func @transform_4(%arg0: i32) -> (i32, i32) {
    %c0_i32 = arith.constant 0 : i32
    %c0_i32_0 = arith.constant 0 : i32
    %c0_i32_1 = arith.constant 0 : i32
    return %c0_i32, %c0_i32_0 : i32, i32
  }
  func.func @transform_5(%arg0: i32) -> (i32, i32) {
    %c0_i32 = arith.constant 0 : i32
    %c0_i32_0 = arith.constant 0 : i32
    %c0_i32_1 = arith.constant 0 : i32
    return %c0_i32, %c0_i32_0 : i32, i32
  }
  func.func @transform_6(%arg0: i32) -> (i32, i32) {
    %c0_i32 = arith.constant 0 : i32
    %c0_i32_0 = arith.constant 0 : i32
    %c0_i32_1 = arith.constant 0 : i32
    return %c0_i32, %c0_i32_0 : i32, i32
  }
  func.func @transform_7(%arg0: i32) -> (i32, i32) {
    %c0_i32 = arith.constant 0 : i32
    %c0_i32_0 = arith.constant 0 : i32
    %c0_i32_1 = arith.constant 0 : i32
    return %c0_i32, %c0_i32_0 : i32, i32
  }
  func.func @transform_8(%arg0: i32) -> (i32, i32) {
    %c0_i32 = arith.constant 0 : i32
    %c0_i32_0 = arith.constant 0 : i32
    %c0_i32_1 = arith.constant 0 : i32
    return %c0_i32, %c0_i32_0 : i32, i32
  }
  func.func @transform_9(%arg0: i32) -> (i32, i32) {
    %c0_i32 = arith.constant 0 : i32
    %c0_i32_0 = arith.constant 0 : i32
    %c0_i32_1 = arith.constant 0 : i32
    return %c0_i32, %c0_i32_0 : i32, i32
  }
}

</mosaic_0001>

<bundles_post_ra>
// kernel: net_forward.3
= control target key start
LH: loop header
LB: loop body
LE: loop exit
PB: predicated region body
PF: predicated region fallthrough
CT: control target
= control target key end

     0   :  { %s1625_s0 = inlined_call_operand.vmem [shape: f32[8,256], index: 0, kind: input, shape index: {}]   ;;  %s1626_s1 = inlined_call_operand.vmem [shape: f32[256,256], index: 1, kind: input, shape index: {}]   ;;  %s1627_s2 = inlined_call_operand.vmem [shape: f32[1,256], index: 2, kind: input, shape index: {}]   ;;  %s1628_s3 = inlined_call_operand.vmem [shape: f32[256,256], index: 3, kind: input, shape index: {}]   ;;  %s1629_s4 = inlined_call_operand.vmem [shape: f32[1,256], index: 4, kind: input, shape index: {}]   ;;  %s1630_s5 = inlined_call_operand.vmem [shape: f32[256,128], index: 5, kind: input, shape index: {}]   ;;  %s1631_s6 = inlined_call_operand.vmem [shape: f32[1,128], index: 6, kind: input, shape index: {}]   ;;  %s1632_s7 = inlined_call_operand.vmem [shape: f32[128,128], index: 7, kind: input, shape index: {}]   ;;  %s1633_s8 = inlined_call_operand.vmem [shape: f32[1,128], index: 8, kind: input, shape index: {}]   ;;  %s1634_s9 = inlined_call_operand.hbm [shape: f32[8,128], index: 9, kind: output, shape index: {}]  }
   0x1   :  { %v36_v0 = vld [vmem:[%s1626_s1 + $0x8] sm:$0xff]  ;;  %v38_v1 = vld [vmem:[%s1626_s1 + $0x18] sm:$0xff]  ;;  %v35_v2 = vld [vmem:[%s1626_s1] sm:$0xff] }
   0x2   :  { %v773_v3 = vpack.c.bf16 %v38_v1, %v36_v0  ;;  %v37_v4 = vld [vmem:[%s1626_s1 + $0x10] sm:$0xff]  ;;  %v40_v5 = vld [vmem:[%s1626_s1 + $0x28] sm:$0xff]  ;;  %v42_v6 = vld [vmem:[%s1626_s1 + $0x38] sm:$0xff] }
   0x3   :  { %v775_v7 = vpack.c.bf16 %v37_v4, %v35_v2  ;;  %v777_v8 = vpack.c.bf16 %v42_v6, %v40_v5  ;;  %v39_v9 = vld [vmem:[%s1626_s1 + $0x20] sm:$0xff]  ;;  %v41_v10 = vld [vmem:[%s1626_s1 + $0x30] sm:$0xff]  ;;  %v44_v11 = vld [vmem:[%s1626_s1 + $0x48] sm:$0xff] }
   0x4   :  { %774 = vmatprep.subr.bf16.mxu0 %v773_v3  ;;  %v46_v12 = vld [vmem:[%s1626_s1 + $0x58] sm:$0xff]  ;;  %v779_v13 = vpack.c.bf16 %v41_v10, %v39_v9  ;;  %v43_v15 = vld [vmem:[%s1626_s1 + $0x40] sm:$0xff]  ;;  %v45_v16 = vld [vmem:[%s1626_s1 + $0x50] sm:$0xff] }
   0x5   :  { %776 = vmatpush1.bf16.msra.mxu0 %v775_v7  ;;  %v781_v14 = vpack.c.bf16 %v46_v12, %v44_v11  ;;  %v48_v17 = vld [vmem:[%s1626_s1 + $0x68] sm:$0xff]  ;;  %v50_v18 = vld [vmem:[%s1626_s1 + $0x78] sm:$0xff]  ;;  %v783_v19 = vpack.c.bf16 %v45_v16, %v43_v15  ;;  %v47_v21 = vld [vmem:[%s1626_s1 + $0x60] sm:$0xff] }
   0x6   :  { %778 = vmatprep.subr.bf16.mxu0 %v777_v8  ;;  %v785_v20 = vpack.c.bf16 %v50_v18, %v48_v17  ;;  %v49_v22 = vld [vmem:[%s1626_s1 + $0x70] sm:$0xff]  ;;  %v52_v23 = vld [vmem:[%s1626_s1 + $0x88] sm:$0xff]  ;;  %v54_v24 = vld [vmem:[%s1626_s1 + $0x98] sm:$0xff] }
   0x7   :  { %v787_v25 = vpack.c.bf16 %v49_v22, %v47_v21  ;;  %v789_v26 = vpack.c.bf16 %v54_v24, %v52_v23  ;;  %v51_v27 = vld [vmem:[%s1626_s1 + $0x80] sm:$0xff]  ;;  %v53_v28 = vld [vmem:[%s1626_s1 + $0x90] sm:$0xff]  ;;  %v56_v29 = vld [vmem:[%s1626_s1 + $0xa8] sm:$0xff] }
   0x8   :  { %v58_v30 = vld [vmem:[%s1626_s1 + $0xb8] sm:$0xff]  ;;  %v791_v31 = vpack.c.bf16 %v53_v28, %v51_v27  ;;  %v55_v33 = vld [vmem:[%s1626_s1 + $0xa0] sm:$0xff]  ;;  %v57_v34 = vld [vmem:[%s1626_s1 + $0xb0] sm:$0xff] }
   0x9   :  { %780 = vmatpush1.bf16.msra.mxu0 %v779_v13  ;;  %v793_v32 = vpack.c.bf16 %v58_v30, %v56_v29  ;;  %v60_v35 = vld [vmem:[%s1626_s1 + $0xc8] sm:$0xff]  ;;  %v62_v36 = vld [vmem:[%s1626_s1 + $0xd8] sm:$0xff]  ;;  %v795_v37 = vpack.c.bf16 %v57_v34, %v55_v33  ;;  %v59_v38 = vld [vmem:[%s1626_s1 + $0xc0] sm:$0xff] }
   0xa   :  { %782 = vmatprep.subr.bf16.mxu0 %v781_v14  ;;  %v61_v39 = vld [vmem:[%s1626_s1 + $0xd0] sm:$0xff]  ;;  %v797_v40 = vpack.c.bf16 %v62_v36, %v60_v35  ;;  %v64_v41 = vld [vmem:[%s1626_s1 + $0xe8] sm:$0xff]  ;;  %v66_v42 = vld [vmem:[%s1626_s1 + $0xf8] sm:$0xff] }
   0xb   :  { %v34_v43 = vld [vmem:[%s1625_s0 + $0x8] sm:$0xff]  ;;  %v187_v45 = vld [vmem:[%s1628_s3 + $0x18] sm:$0xff]  ;;  %v184_v46 = vld [vmem:[%s1628_s3] sm:$0xff]  ;;  %v799_v51 = vpack.c.bf16 %v61_v39, %v59_v38  ;;  %v801_v57 = vpack.c.bf16 %v66_v42, %v64_v41 }
   0xc   :  { %175 = vmatprep.mubr.f32.mxu0 %v34_v43  ;;  %v185_v44 = vld [vmem:[%s1628_s3 + $0x8] sm:$0xff]  ;;  %v186_v48 = vld [vmem:[%s1628_s3 + $0x10] sm:$0xff]  ;;  %v191_v50 = vld [vmem:[%s1628_s3 + $0x38] sm:$0xff] }
   0xd   :  { %784 = vmatpush1.bf16.msra.mxu0 %v783_v19  ;;  %v837_v47 = vpack.c.bf16 %v187_v45, %v185_v44  ;;  %v189_v49 = vld [vmem:[%s1628_s3 + $0x28] sm:$0xff]  ;;  %v839_v52 = vpack.c.bf16 %v186_v48, %v184_v46  ;;  %v188_v54 = vld [vmem:[%s1628_s3 + $0x20] sm:$0xff]  ;;  %v190_v55 = vld [vmem:[%s1628_s3 + $0x30] sm:$0xff] }
   0xe   :  { %786 = vmatprep.subr.bf16.mxu0 %v785_v20  ;;  %v841_v53 = vpack.c.bf16 %v191_v50, %v189_v49  ;;  %v193_v56 = vld [vmem:[%s1628_s3 + $0x48] sm:$0xff]  ;;  %v63_v58 = vld [vmem:[%s1626_s1 + $0xe0] sm:$0xff]  ;;  %v65_v59 = vld [vmem:[%s1626_s1 + $0xf0] sm:$0xff]  ;;  %v843_v63 = vpack.c.bf16 %v190_v55, %v188_v54 }
   0xf   :  { %838 = vmatprep.subr.bf16.mxu1 %v837_v47  ;;  %v195_v60 = vld [vmem:[%s1628_s3 + $0x58] sm:$0xff]  ;;  %v68_v61 = vld [vmem:[%s1626_s1 + $0x108] sm:$0xff]  ;;  %v192_v1 = vld [vmem:[%s1628_s3 + $0x40] sm:$0xff]  ;;  %v803_v3 = vpack.c.bf16 %v65_v59, %v63_v58 }
  0x10   :  { %v70_v62 = vld [vmem:[%s1626_s1 + $0x118] sm:$0xff]  ;;  %840 = vmatpush1.bf16.msra.mxu1 %v839_v52  ;;  %v845_v0 = vpack.c.bf16 %v195_v60, %v193_v56  ;;  %v194_v2 = vld [vmem:[%s1628_s3 + $0x50] sm:$0xff]  ;;  %v197_v4 = vld [vmem:[%s1628_s3 + $0x68] sm:$0xff] }
  0x11   :  { %788 = vmatpush1.bf16.msra.mxu0 %v787_v25  ;;  %842 = vmatprep.subr.bf16.mxu1 %v841_v53  ;;  %v199_v5 = vld [vmem:[%s1628_s3 + $0x78] sm:$0xff]  ;;  %v805_v6 = vpack.c.bf16 %v70_v62, %v68_v61  ;;  %v67_v7 = vld [vmem:[%s1626_s1 + $0x100] sm:$0xff]  ;;  %v69_v8 = vld [vmem:[%s1626_s1 + $0x110] sm:$0xff]  ;;  %v847_v11 = vpack.c.bf16 %v194_v2, %v192_v1 }
  0x12   :  { %790 = vmatprep.subr.bf16.mxu0 %v789_v26  ;;  %v72_v9 = vld [vmem:[%s1626_s1 + $0x128] sm:$0xff]  ;;  %v74_v10 = vld [vmem:[%s1626_s1 + $0x138] sm:$0xff]  ;;  %v849_v12 = vpack.c.bf16 %v199_v5, %v197_v4  ;;  %v196_v13 = vld [vmem:[%s1628_s3 + $0x60] sm:$0xff]  ;;  %v807_v15 = vpack.c.bf16 %v69_v8, %v67_v7 }
  0x13   :  { %v198_v14 = vld [vmem:[%s1628_s3 + $0x70] sm:$0xff]  ;;  %v201_v16 = vld [vmem:[%s1628_s3 + $0x88] sm:$0xff]  ;;  %v203_v17 = vld [vmem:[%s1628_s3 + $0x98] sm:$0xff]  ;;  %v809_v18 = vpack.c.bf16 %v74_v10, %v72_v9 }
  0x14   :  { %844 = vmatpush1.bf16.msra.mxu1 %v843_v63  ;;  %v71_v19 = vld [vmem:[%s1626_s1 + $0x120] sm:$0xff]  ;;  %v73_v20 = vld [vmem:[%s1626_s1 + $0x130] sm:$0xff]  ;;  %v76_v21 = vld [vmem:[%s1626_s1 + $0x148] sm:$0xff]  ;;  %v851_v23 = vpack.c.bf16 %v198_v14, %v196_v13  ;;  %v853_v24 = vpack.c.bf16 %v203_v17, %v201_v16 }
  0x15   :  { %792 = vmatpush1.bf16.msra.mxu0 %v791_v31  ;;  %846 = vmatprep.subr.bf16.mxu1 %v845_v0  ;;  %v78_v22 = vld [vmem:[%s1626_s1 + $0x158] sm:$0xff]  ;;  %v200_v25 = vld [vmem:[%s1628_s3 + $0x80] sm:$0xff]  ;;  %v202_v26 = vld [vmem:[%s1628_s3 + $0x90] sm:$0xff]  ;;  %v811_v27 = vpack.c.bf16 %v73_v20, %v71_v19 }
  0x16   :  { %794 = vmatprep.subr.bf16.mxu0 %v793_v32  ;;  %v205_v28 = vld [vmem:[%s1628_s3 + $0xa8] sm:$0xff]  ;;  %v207_v29 = vld [vmem:[%s1628_s3 + $0xb8] sm:$0xff]  ;;  %v813_v30 = vpack.c.bf16 %v78_v22, %v76_v21  ;;  %v75_v31 = vld [vmem:[%s1626_s1 + $0x140] sm:$0xff]  ;;  %v855_v35 = vpack.c.bf16 %v202_v26, %v200_v25 }
  0x17   :  { %v77_v32 = vld [vmem:[%s1626_s1 + $0x150] sm:$0xff]  ;;  %v80_v33 = vld [vmem:[%s1626_s1 + $0x168] sm:$0xff]  ;;  %v82_v34 = vld [vmem:[%s1626_s1 + $0x178] sm:$0xff]  ;;  %v857_v36 = vpack.c.bf16 %v207_v29, %v205_v28 }
  0x18   :  { %848 = vmatpush1.bf16.msra.mxu1 %v847_v11  ;;  %v206_v38 = vld [vmem:[%s1628_s3 + $0xb0] sm:$0xff]  ;;  %v815_v39 = vpack.c.bf16 %v77_v32, %v75_v31  ;;  %v211_v41 = vld [vmem:[%s1628_s3 + $0xd8] sm:$0xff]  ;;  %v817_v42 = vpack.c.bf16 %v82_v34, %v80_v33  ;;  %v79_v43 = vld [vmem:[%s1626_s1 + $0x160] sm:$0xff] }
  0x19   :  { %796 = vmatpush1.bf16.msra.mxu0 %v795_v37  ;;  %850 = vmatprep.subr.bf16.mxu1 %v849_v12  ;;  %v204_v37 = vld [vmem:[%s1628_s3 + $0xa0] sm:$0xff]  ;;  %v81_v44 = vld [vmem:[%s1626_s1 + $0x170] sm:$0xff] }
  0x1a   :  { %798 = vmatprep.subr.bf16.mxu0 %v797_v40  ;;  %v209_v40 = vld [vmem:[%s1628_s3 + $0xc8] sm:$0xff] }
  0x1c   :  { %852 = vmatpush1.bf16.msra.mxu1 %v851_v23 }
  0x1d   :  { %800 = vmatpush1.bf16.msra.mxu0 %v799_v51  ;;  %854 = vmatprep.subr.bf16.mxu1 %v853_v24 }
  0x1e   :  { %802 = vmatprep.subr.bf16.mxu0 %v801_v57 }
  0x21   :  { %804 = vmatpush1.bf16.msra.mxu0 %v803_v3 }
  0x22   :  { %806 = vmatprep.subr.bf16.mxu0 %v805_v6 }
  0x25   :  { %808 = vmatpush1.bf16.msra.mxu0 %v807_v15 }
  0x26   :  { %810 = vmatprep.subr.bf16.mxu0 %v809_v18 }
  0x29   :  { %812 = vmatpush1.bf16.msra.mxu0 %v811_v27 }
  0x2a   :  { %814 = vmatprep.subr.bf16.mxu0 %v813_v30 }
  0x2b   :  { %14 = vsyncpa [#allocation3], 0  ;;  %v84_v45 = vld [vmem:[%s1626_s1 + $0x188] sm:$0xff]  ;;  %v86_v46 = vld [vmem:[%s1626_s1 + $0x198] sm:$0xff]  ;;  %856 = vmatpush1.bf16.msra.mxu1 %v855_v35  ;;  %v859_v47 = vpack.c.bf16 %v206_v38, %v204_v37  ;;  %v861_v48 = vpack.c.bf16 %v211_v41, %v209_v40  ;;  %v819_v51 = vpack.c.bf16 %v81_v44, %v79_v43  ;;  %vm1014_vm0 = vmmov 0  }
  0x2c   :  { %858 = vmatprep.subr.bf16.mxu1 %v857_v36  ;;  %v208_v49 = vld [vmem:[%s1628_s3 + $0xc0] sm:$0xff]  ;;  %v210_v50 = vld [vmem:[%s1628_s3 + $0xd0] sm:$0xff]  ;;  %v213_v52 = vld [vmem:[%s1628_s3 + $0xe8] sm:$0xff]  ;;  %v821_v54 = vpack.c.bf16 %v86_v46, %v84_v45 }
  0x2d   :  { %816 = vmatpush1.bf16.msra.mxu0 %v815_v39  ;;  %v215_v53 = vld [vmem:[%s1628_s3 + $0xf8] sm:$0xff]  ;;  %v83_v55 = vld [vmem:[%s1626_s1 + $0x180] sm:$0xff]  ;;  %v85_v56 = vld [vmem:[%s1626_s1 + $0x190] sm:$0xff]  ;;  %v863_v59 = vpack.c.bf16 %v210_v50, %v208_v49 }
  0x2e   :  { %818 = vmatprep.subr.bf16.mxu0 %v817_v42  ;;  %v88_v57 = vld [vmem:[%s1626_s1 + $0x1a8] sm:$0xff]  ;;  %v90_v58 = vld [vmem:[%s1626_s1 + $0x1b8] sm:$0xff]  ;;  %v865_v60 = vpack.c.bf16 %v215_v53, %v213_v52  ;;  %v212_v61 = vld [vmem:[%s1628_s3 + $0xe0] sm:$0xff]  ;;  %v823_v63 = vpack.c.bf16 %v85_v56, %v83_v55 }
  0x2f   :  { %860 = vmatpush1.bf16.msra.mxu1 %v859_v47  ;;  %v214_v62 = vld [vmem:[%s1628_s3 + $0xf0] sm:$0xff]  ;;  %v217_v0 = vld [vmem:[%s1628_s3 + $0x108] sm:$0xff]  ;;  %v219_v1 = vld [vmem:[%s1628_s3 + $0x118] sm:$0xff]  ;;  %v825_v2 = vpack.c.bf16 %v90_v58, %v88_v57 }
  0x30   :  { %862 = vmatprep.subr.bf16.mxu1 %v861_v48  ;;  %v87_v3 = vld [vmem:[%s1626_s1 + $0x1a0] sm:$0xff]  ;;  %v89_v4 = vld [vmem:[%s1626_s1 + $0x1b0] sm:$0xff]  ;;  %v92_v5 = vld [vmem:[%s1626_s1 + $0x1c8] sm:$0xff]  ;;  %v867_v7 = vpack.c.bf16 %v214_v62, %v212_v61  ;;  %v869_v8 = vpack.c.bf16 %v219_v1, %v217_v0 }
  0x31   :  { %820 = vmatpush1.bf16.msra.mxu0 %v819_v51  ;;  %v94_v6 = vld [vmem:[%s1626_s1 + $0x1d8] sm:$0xff]  ;;  %v216_v9 = vld [vmem:[%s1628_s3 + $0x100] sm:$0xff]  ;;  %v218_v10 = vld [vmem:[%s1628_s3 + $0x110] sm:$0xff]  ;;  %v827_v11 = vpack.c.bf16 %v89_v4, %v87_v3 }
  0x32   :  { %822 = vmatprep.subr.bf16.mxu0 %v821_v54  ;;  %v221_v12 = vld [vmem:[%s1628_s3 + $0x128] sm:$0xff]  ;;  %v223_v13 = vld [vmem:[%s1628_s3 + $0x138] sm:$0xff]  ;;  %v829_v14 = vpack.c.bf16 %v94_v6, %v92_v5  ;;  %v91_v15 = vld [vmem:[%s1626_s1 + $0x1c0] sm:$0xff]  ;;  %v871_v19 = vpack.c.bf16 %v218_v10, %v216_v9 }
  0x33   :  { %864 = vmatpush1.bf16.msra.mxu1 %v863_v59  ;;  %v93_v16 = vld [vmem:[%s1626_s1 + $0x1d0] sm:$0xff]  ;;  %v96_v17 = vld [vmem:[%s1626_s1 + $0x1e8] sm:$0xff]  ;;  %v98_v18 = vld [vmem:[%s1626_s1 + $0x1f8] sm:$0xff]  ;;  %v873_v20 = vpack.c.bf16 %v223_v13, %v221_v12 }
  0x34   :  { %866 = vmatprep.subr.bf16.mxu1 %v865_v60  ;;  %v220_v21 = vld [vmem:[%s1628_s3 + $0x120] sm:$0xff]  ;;  %v222_v22 = vld [vmem:[%s1628_s3 + $0x130] sm:$0xff]  ;;  %v831_v23 = vpack.c.bf16 %v93_v16, %v91_v15  ;;  %v225_v24 = vld [vmem:[%s1628_s3 + $0x148] sm:$0xff]  ;;  %v833_v26 = vpack.c.bf16 %v98_v18, %v96_v17 }
  0x35   :  { %824 = vmatpush1.bf16.msra.mxu0 %v823_v63  ;;  %v227_v25 = vld [vmem:[%s1628_s3 + $0x158] sm:$0xff]  ;;  %v95_v27 = vld [vmem:[%s1626_s1 + $0x1e0] sm:$0xff]  ;;  %v97_v28 = vld [vmem:[%s1626_s1 + $0x1f0] sm:$0xff]  ;;  %v875_v29 = vpack.c.bf16 %v222_v22, %v220_v21 }
  0x36   :  { %826 = vmatprep.subr.bf16.mxu0 %v825_v2  ;;  %v877_v30 = vpack.c.bf16 %v227_v25, %v225_v24  ;;  %v224_v31 = vld [vmem:[%s1628_s3 + $0x140] sm:$0xff]  ;;  %v226_v32 = vld [vmem:[%s1628_s3 + $0x150] sm:$0xff]  ;;  %v835_v33 = vpack.c.bf16 %v97_v28, %v95_v27  ;;  %v229_v34 = vld [vmem:[%s1628_s3 + $0x168] sm:$0xff] }
  0x37   :  { %868 = vmatpush1.bf16.msra.mxu1 %v867_v7  ;;  %v231_v35 = vld [vmem:[%s1628_s3 + $0x178] sm:$0xff]  ;;  %v879_v36 = vpack.c.bf16 %v226_v32, %v224_v31  ;;  %v228_v38 = vld [vmem:[%s1628_s3 + $0x160] sm:$0xff]  ;;  %v230_v39 = vld [vmem:[%s1628_s3 + $0x170] sm:$0xff] }
  0x38   :  { %870 = vmatprep.subr.bf16.mxu1 %v869_v8  ;;  %v881_v37 = vpack.c.bf16 %v231_v35, %v229_v34  ;;  %v33_v40 = vld [vmem:[%s1625_s0] sm:$0xff]  ;;  %v233_v41 = vld [vmem:[%s1628_s3 + $0x188] sm:$0xff]  ;;  %v235_v42 = vld [vmem:[%s1628_s3 + $0x198] sm:$0xff]  ;;  %v883_v43 = vpack.c.bf16 %v230_v39, %v228_v38 }
  0x39   :  { %828 = vmatpush1.bf16.msra.mxu0 %v827_v11  ;;  %v885_v44 = vpack.c.bf16 %v235_v42, %v233_v41  ;;  %v232_v45 = vld [vmem:[%s1628_s3 + $0x180] sm:$0xff]  ;;  %v234_v46 = vld [vmem:[%s1628_s3 + $0x190] sm:$0xff]  ;;  %v237_v47 = vld [vmem:[%s1628_s3 + $0x1a8] sm:$0xff]  ;;  %v101_v41 = vlaneseq }
  0x3a   :  { %830 = vmatprep.subr.bf16.mxu0 %v829_v14  ;;  %v239_v48 = vld [vmem:[%s1628_s3 + $0x1b8] sm:$0xff]  ;;  %v887_v49 = vpack.c.bf16 %v234_v46, %v232_v45  ;;  %v236_v51 = vld [vmem:[%s1628_s3 + $0x1a0] sm:$0xff]  ;;  %v238_v52 = vld [vmem:[%s1628_s3 + $0x1b0] sm:$0xff] }
  0x3b   :  { %872 = vmatpush1.bf16.msra.mxu1 %v871_v19  ;;  %v889_v50 = vpack.c.bf16 %v239_v48, %v237_v47  ;;  %v241_v53 = vld [vmem:[%s1628_s3 + $0x1c8] sm:$0xff]  ;;  %v243_v54 = vld [vmem:[%s1628_s3 + $0x1d8] sm:$0xff]  ;;  %v891_v55 = vpack.c.bf16 %v238_v52, %v236_v51  ;;  %v240_v57 = vld [vmem:[%s1628_s3 + $0x1c0] sm:$0xff]  ;;  %v102_v42 = vshrl.u32 %v101_v41, 7 }
  0x3c   :  { %874 = vmatprep.subr.bf16.mxu1 %v873_v20  ;;  %v893_v56 = vpack.c.bf16 %v243_v54, %v241_v53  ;;  %v242_v58 = vld [vmem:[%s1628_s3 + $0x1d0] sm:$0xff]  ;;  %v245_v60 = vld [vmem:[%s1628_s3 + $0x1e8] sm:$0xff]  ;;  %v247_v61 = vld [vmem:[%s1628_s3 + $0x1f8] sm:$0xff] }
  0x3d   :  { %832 = vmatpush1.bf16.msra.mxu0 %v831_v23  ;;  %v895_v59 = vpack.c.bf16 %v242_v58, %v240_v57  ;;  %v897_v62 = vpack.c.bf16 %v247_v61, %v245_v60  ;;  %v244_v63 = vld [vmem:[%s1628_s3 + $0x1e0] sm:$0xff]  ;;  %v246_v0 = vld [vmem:[%s1628_s3 + $0x1f0] sm:$0xff]  ;;  %v350_v3 = vld [vmem:[%s1630_s5 + $0x88] sm:$0xff]  ;;  %v107_v45 = vsub.s32 1, %v102_v42 }
  0x3e   :  { %834 = vmatprep.subr.bf16.mxu0 %v833_v26  ;;  %v899_v1 = vpack.c.bf16 %v246_v0, %v244_v63  ;;  %v349_v2 = vld [vmem:[%s1630_s5 + $0x80] sm:$0xff]  ;;  %v334_v6 = vld [vmem:[%s1630_s5 + $0x8] sm:$0xff]  ;;  %v351_v7 = vld [vmem:[%s1630_s5 + $0x90] sm:$0xff] }
  0x3f   :  { %876 = vmatpush1.bf16.msra.mxu1 %v875_v29  ;;  %v333_v4 = vld [vmem:[%s1630_s5] sm:$0xff]  ;;  %v901_v5 = vpack.c.bf16 %v350_v3, %v349_v2  ;;  %v352_v8 = vld [vmem:[%s1630_s5 + $0x98] sm:$0xff]  ;;  %v335_v11 = vld [vmem:[%s1630_s5 + $0x10] sm:$0xff]  ;;  %v1013_v2 = vmov 0.0|0.0  }
  0x40   :  { %878 = vmatprep.subr.bf16.mxu1 %v877_v30  ;;  %v903_v9 = vpack.c.bf16 %v334_v6, %v333_v4  ;;  %v905_v10 = vpack.c.bf16 %v352_v8, %v351_v7  ;;  %v336_v12 = vld [vmem:[%s1630_s5 + $0x18] sm:$0xff]  ;;  %v353_v13 = vld [vmem:[%s1630_s5 + $0xa0] sm:$0xff]  ;;  %v354_v14 = vld [vmem:[%s1630_s5 + $0xa8] sm:$0xff] }
  0x41   :  { %836 = vmatpush1.bf16.msra.mxu0 %v835_v33  ;;  %v907_v15 = vpack.c.bf16 %v336_v12, %v335_v11  ;;  %v909_v16 = vpack.c.bf16 %v354_v14, %v353_v13  ;;  %v337_v17 = vld [vmem:[%s1630_s5 + $0x20] sm:$0xff]  ;;  %v338_v18 = vld [vmem:[%s1630_s5 + $0x28] sm:$0xff]  ;;  %v355_v19 = vld [vmem:[%s1630_s5 + $0xb0] sm:$0xff] }
  0x42   :  { %902 = vmatprep.subr.bf16.mxu0 %v901_v5  ;;  %v356_v20 = vld [vmem:[%s1630_s5 + $0xb8] sm:$0xff]  ;;  %v911_v21 = vpack.c.bf16 %v338_v18, %v337_v17  ;;  %v339_v23 = vld [vmem:[%s1630_s5 + $0x30] sm:$0xff]  ;;  %v357_v25 = vld [vmem:[%s1630_s5 + $0xc0] sm:$0xff] }
  0x43   :  { %880 = vmatpush1.bf16.msra.mxu1 %v879_v36  ;;  %v913_v22 = vpack.c.bf16 %v356_v20, %v355_v19  ;;  %v340_v24 = vld [vmem:[%s1630_s5 + $0x38] sm:$0xff]  ;;  %v358_v26 = vld [vmem:[%s1630_s5 + $0xc8] sm:$0xff]  ;;  %v341_v29 = vld [vmem:[%s1630_s5 + $0x40] sm:$0xff] }
  0x44   :  { %176 = vmatmul.mubr.f32.vlgmr.msra.gmra.mrb[0].mxu0 %v33_v40  ;;  %882 = vmatprep.subr.bf16.mxu1 %v881_v37  ;;  %v915_v27 = vpack.c.bf16 %v340_v24, %v339_v23  ;;  %v917_v28 = vpack.c.bf16 %v358_v26, %v357_v25  ;;  %v342_v30 = vld [vmem:[%s1630_s5 + $0x48] sm:$0xff]  ;;  %v359_v31 = vld [vmem:[%s1630_s5 + $0xd0] sm:$0xff]  ;;  %v360_v32 = vld [vmem:[%s1630_s5 + $0xd8] sm:$0xff] }
  0x45   :  { %904 = vmatpush3.bf16.msra.mxu0 %v903_v9  ;;  %v919_v33 = vpack.c.bf16 %v342_v30, %v341_v29  ;;  %v921_v34 = vpack.c.bf16 %v360_v32, %v359_v31  ;;  %v343_v35 = vld [vmem:[%s1630_s5 + $0x50] sm:$0xff]  ;;  %v344_v36 = vld [vmem:[%s1630_s5 + $0x58] sm:$0xff]  ;;  %v361_v37 = vld [vmem:[%s1630_s5 + $0xe0] sm:$0xff] }
  0x46   :  { %906 = vmatprep.subr.bf16.mxu0 %v905_v10  ;;  %v362_v38 = vld [vmem:[%s1630_s5 + $0xe8] sm:$0xff]  ;;  %v923_v39 = vpack.c.bf16 %v344_v36, %v343_v35  ;;  %v345_v54 = vld [vmem:[%s1630_s5 + $0x60] sm:$0xff]  ;;  %v363_v57 = vld [vmem:[%s1630_s5 + $0xf0] sm:$0xff] }
  0x47   :  { %884 = vmatpush1.bf16.msra.mxu1 %v883_v43  ;;  %v925_v40 = vpack.c.bf16 %v362_v38, %v361_v37  ;;  %v103_v43 = vsub.s32 0, %v102_v42  ;;  %v364_v58 = vld [vmem:[%s1630_s5 + $0xf8] sm:$0xff]  ;;  %v347_v60 = vld [vmem:[%s1630_s5 + $0x70] sm:$0xff]  ;;  %v443_v63 = vld [vmem:[%s1632_s7] sm:$0xff] }
  0x48   :  { %886 = vmatprep.subr.bf16.mxu1 %v885_v44  ;;  %v99_v44 = vld [vmem:[%s1627_s2] sm:$0x3]  ;;  %v348_v61 = vld [vmem:[%s1630_s5 + $0x78] sm:$0xff]  ;;  %v444_v0 = vld [vmem:[%s1632_s7 + $0x8] sm:$0xff] }
  0x49   :  { %908 = vmatpush3.bf16.msra.mxu0 %v907_v15  ;;  %v104_v46 = vrot.slane %v99_v44, %v103_v43  ;;  %v108_v47 = vrot.slane %v99_v44, %v107_v45  ;;  %v934_v3 = vpack.c.bf16 %v444_v0, %v443_v63  ;;  %v446_v4 = vld [vmem:[%s1632_s7 + $0x18] sm:$0xff]  ;;  %v447_v6 = vld [vmem:[%s1632_s7 + $0x20] sm:$0xff]  ;;  %v448_v7 = vld [vmem:[%s1632_s7 + $0x28] sm:$0xff] }
  0x4a   :  { %910 = vmatprep.subr.bf16.mxu0 %v909_v16  ;;  %v940_v8 = vpack.c.bf16 %v448_v7, %v447_v6  ;;  %v449_v9 = vld [vmem:[%s1632_s7 + $0x30] sm:$0xff]  ;;  %v450_v10 = vld [vmem:[%s1632_s7 + $0x38] sm:$0xff]  ;;  %v451_v12 = vld [vmem:[%s1632_s7 + $0x40] sm:$0xff] }
  0x4b   :  { %888 = vmatpush1.bf16.msra.mxu1 %v887_v49  ;;  %v943_v11 = vpack.c.bf16 %v450_v10, %v449_v9  ;;  %v452_v13 = vld [vmem:[%s1632_s7 + $0x48] sm:$0xff]  ;;  %v453_v15 = vld [vmem:[%s1632_s7 + $0x50] sm:$0xff]  ;;  %v454_v16 = vld [vmem:[%s1632_s7 + $0x58] sm:$0xff] }
  0x4c   :  { %890 = vmatprep.subr.bf16.mxu1 %v889_v50  ;;  %v946_v14 = vpack.c.bf16 %v452_v13, %v451_v12  ;;  %v949_v17 = vpack.c.bf16 %v454_v16, %v453_v15  ;;  %v248_v18 = vld [vmem:[%s1629_s4] sm:$0x3]  ;;  %v457_v30 = vld [vmem:[%s1632_s7 + $0x70] sm:$0xff]  ;;  %v458_v31 = vld [vmem:[%s1632_s7 + $0x78] sm:$0xff] }
  0x4d   :  { %912 = vmatpush3.bf16.msra.mxu0 %v911_v21  ;;  %v253_v19 = vrot.slane %v248_v18, %v103_v43  ;;  %v257_v20 = vrot.slane %v248_v18, %v107_v45  ;;  %v955_v32 = vpack.c.bf16 %v458_v31, %v457_v30  ;;  %v632_v35 = vld [vmem:[%s1631_s6] ss:$0 sm:$0xff]  ;;  %s1016_s6 = smov [#allocation2]  }
  0x4e   :  { %914 = vmatprep.subr.bf16.mxu0 %v913_v22 }
  0x4f   :  { %892 = vmatpush1.bf16.msra.mxu1 %v891_v55  ;;  %v346_v55 = vld [vmem:[%s1630_s5 + $0x68] sm:$0xff] }
  0x50   :  { %894 = vmatprep.subr.bf16.mxu1 %v893_v56  ;;  %v927_v56 = vpack.c.bf16 %v346_v55, %v345_v54 }
  0x51   :  { %916 = vmatpush3.bf16.msra.mxu0 %v915_v27  ;;  %v455_v27 = vld [vmem:[%s1632_s7 + $0x60] sm:$0xff] }
  0x52   :  { %918 = vmatprep.subr.bf16.mxu0 %v917_v28  ;;  %v456_v28 = vld [vmem:[%s1632_s7 + $0x68] sm:$0xff] }
  0x53   :  { %896 = vmatpush1.bf16.msra.mxu1 %v895_v59  ;;  %v929_v59 = vpack.c.bf16 %v364_v58, %v363_v57  ;;  %v952_v29 = vpack.c.bf16 %v456_v28, %v455_v27 }
  0x54   :  { %898 = vmatprep.subr.bf16.mxu1 %v897_v62  ;;  %v931_v62 = vpack.c.bf16 %v348_v61, %v347_v60 }
  0x55   :  { %920 = vmatpush3.bf16.msra.mxu0 %v919_v33  ;;  %v1015_v33 = vmov 0.0  }
  0x56   :  { %922 = vmatprep.subr.bf16.mxu0 %v921_v34 }
  0x57   :  { %900 = vmatpush1.bf16.msra.mxu1 %v899_v1  ;;  %v445_v1 = vld [vmem:[%s1632_s7 + $0x10] sm:$0xff] }
  0x58   :  { %933 = vmatprep.subr.bf16.mxu1 %v1013_v2  ;;  %v937_v5 = vpack.c.bf16 %v446_v4, %v445_v1 }
  0x59   :  { %924 = vmatpush3.bf16.msra.mxu0 %v923_v39 }
  0x5a   :  { %926 = vmatprep.subr.bf16.mxu0 %v925_v40  ;;  %v633_v40 = vld [vmem:[%s1633_s8] ss:$0 sm:$0xff]  ;;  %s624_s8 = sshll.u32 %s1016_s6, 4  ;;  %s625_s8 = int_to_ptr.vmem [resolvable:$true] %s624_s8 }
  0x5b   :  { %s989_s15 = scalar_lea.vmem %s625_s8, 128  ;;  %p994_p1 = scmp.lt.s32.totalorder %s625_s8, %s625_s8 }
  0x5c   :  { %p990_p0 = scmp.ne.s32.totalorder %s625_s8, %s989_s15  ;;  %p995_p2 = scmp.lt.s32.totalorder %s989_s15, %s989_s15 }
  0x5d   :  { %928 = vmatpush3.bf16.msra.mxu0 %v927_v56 }
  0x5e   :  { %930 = vmatprep.subr.bf16.mxu0 %v929_v59  ;;  %p996_p3 = por %p995_p2, %p994_p1 }
  0x60   :  { %p997_p4 = pnand %p996_p3, %p990_p0 }
  0x61   :  { %932 = vmatpush3.bf16.msra.mxu0 %v931_v62 }
  0x62   :  { %957 = vmatprep.subr.bf16.mxu0 %v1013_v2 }
 0x117   :  { %v177_v48 = vpop.f32.mrb[0].mxu0 }
 0x118   :  { %v178_v49 = vadd.f32 %v177_v48, %v104_v46  ;;  %v179_v50 = vpop.f32.mrb[1].mxu0 }
 0x119   :  { %v180_v51 = vadd.f32 %v179_v50, %v108_v47 }
 0x11a   :  { %v182_v53 = vmax.f32 %v178_v49, 0.0 }
 0x11b   :  { %v183_v52 = vmax.f32 %v180_v51, 0.0 }
 0x11d   :  { %324 = vmatprep.mubr.f32.mxu1 %v183_v52 }
 0x11e   :  { %325 = vmatmul.mubr.f32.vlgmr.msra.gmra.mrb[0].mxu1 %v182_v53 }
 0x11f   :  { %935 = vmatpush3.bf16.msra.mxu1 %v934_v3  ;;  %735 = vmatprep.mubr.msk.f32.mxu1 %vm1014_vm0, %v1015_v33 }
 0x120   :  { %936 = vmatprep.subr.bf16.mxu1 %v1013_v2 }
 0x123   :  { %938 = vmatpush3.bf16.msra.mxu1 %v937_v5 }
 0x124   :  { %939 = vmatprep.subr.bf16.mxu1 %v1013_v2 }
 0x127   :  { %941 = vmatpush3.bf16.msra.mxu1 %v940_v8 }
 0x128   :  { %942 = vmatprep.subr.bf16.mxu1 %v1013_v2 }
 0x12b   :  { %944 = vmatpush3.bf16.msra.mxu1 %v943_v11 }
 0x12c   :  { %945 = vmatprep.subr.bf16.mxu1 %v1013_v2 }
 0x12f   :  { %947 = vmatpush3.bf16.msra.mxu1 %v946_v14 }
 0x130   :  { %948 = vmatprep.subr.bf16.mxu1 %v1013_v2 }
 0x133   :  { %950 = vmatpush3.bf16.msra.mxu1 %v949_v17 }
 0x134   :  { %951 = vmatprep.subr.bf16.mxu1 %v1013_v2 }
 0x137   :  { %953 = vmatpush3.bf16.msra.mxu1 %v952_v29 }
 0x138   :  { %954 = vmatprep.subr.bf16.mxu1 %v1013_v2 }
 0x13b   :  { %956 = vmatpush3.bf16.msra.mxu1 %v955_v32 }
 0x1f1   :  { %v326_v21 = vpop.f32.mrb[0].mxu1 }
 0x1f2   :  { %v327_v22 = vadd.f32 %v326_v21, %v253_v19  ;;  %v328_v23 = vpop.f32.mrb[1].mxu1 }
 0x1f3   :  { %v329_v24 = vadd.f32 %v328_v23, %v257_v20 }
 0x1f4   :  { %v331_v26 = vmax.f32 %v327_v22, 0.0 }
 0x1f5   :  { %v332_v25 = vmax.f32 %v329_v24, 0.0 }
 0x1f7   :  { %436 = vmatprep.mubr.f32.mxu0 %v332_v25 }
 0x1f8   :  { %437 = vmatmul.mubr.f32.vlgmr.msra.gmra.mrb[2].mxu0 %v331_v26 }
 0x1f9   :  { %959 = vmatpush3.bf16.msra.mxu0 %v934_v3  ;;  %770 = vmatprep.mubr.msk.f32.mxu0 %vm1014_vm0, %v1015_v33 }
 0x1fa   :  { %960 = vmatprep.subr.bf16.mxu0 %v1013_v2 }
 0x1fd   :  { %962 = vmatpush3.bf16.msra.mxu0 %v937_v5 }
 0x1fe   :  { %963 = vmatprep.subr.bf16.mxu0 %v1013_v2 }
 0x201   :  { %965 = vmatpush3.bf16.msra.mxu0 %v940_v8 }
 0x202   :  { %966 = vmatprep.subr.bf16.mxu0 %v1013_v2 }
 0x205   :  { %968 = vmatpush3.bf16.msra.mxu0 %v943_v11 }
 0x206   :  { %969 = vmatprep.subr.bf16.mxu0 %v1013_v2 }
 0x209   :  { %971 = vmatpush3.bf16.msra.mxu0 %v946_v14 }
 0x20a   :  { %972 = vmatprep.subr.bf16.mxu0 %v1013_v2 }
 0x20d   :  { %974 = vmatpush3.bf16.msra.mxu0 %v949_v17 }
 0x20e   :  { %975 = vmatprep.subr.bf16.mxu0 %v1013_v2 }
 0x211   :  { %977 = vmatpush3.bf16.msra.mxu0 %v952_v29 }
 0x212   :  { %978 = vmatprep.subr.bf16.mxu0 %v1013_v2 }
 0x215   :  { %980 = vmatpush3.bf16.msra.mxu0 %v955_v32 }
 0x2cb   :  { %v666_v34 = vpop.f32.mrb[2].mxu0 }
 0x2cc   :  { %v667_v36 = vpop.f32.mrb[3].mxu0 }
 0x2cd   :  { %v668_v37 = vadd.f32 %v667_v36, %v666_v34 }
 0x2cf   :  { %v439_v38 = vadd.f32 %v668_v37, %v632_v35 }
 0x2d1   :  { %v442_v39 = vmax.f32 %v439_v38, 0.0 }
 0x2d3   :  { %736 = vmatmul.mubr.f32.vlgmr.msra.gmra.mrb[2].mxu1 %v442_v39 }
 0x3a6   :  { %v532_v41 = vpop.f32.mrb[2].mxu1 }
 0x3a7   :  { %v533_v42 = vadd.f32 %v633_v40, %v532_v41  ;;  %v737_v43 = vpop.f32.mrb[3].mxu1 }
 0x3a9   :  { %v536_v44 = vmax.f32 %v533_v42, 0.0 }
 0x3ab   :  { %771 = vmatmul.mubr.f32.vlgmr.msra.gmra.mrb[4].mxu0 %v536_v44 }
 0x47e   :  { %v603_v45 = vpop.f32.mrb[4].mxu0 }
 0x47f   :  { %v604_v46 = vadd.f32 %v633_v40, %v603_v45  ;;  %v772_v47 = vpop.f32.mrb[5].mxu0 }
 0x481   :  { %607 = vmax.xlane.f32.xlu0 %v604_v46 }
 0x50e   :  { %v608_v48 = vpop.xlane.xlu0 %607 }
 0x50f   :  { %v609_v49 = vsub.f32 %v604_v46, %v608_v48 }
 0x511   :  { %v610_v50 = vmul.f32 1.442695, %v609_v49 }
 0x513   :  { %985 = vpow2.f32 %v610_v50 }
 0x51d   :  { %v986_v51 = vpop.eup %985 }
 0x51e   :  { %612 = vadd.xlane.f32.xlu0 %v986_v51 }
 0x5ab   :  { %v613_v52 = vpop.xlane.xlu0 %612 }
 0x5ac   :  { %987 = vlog2.f32 %v613_v52 }
 0x5b6   :  { %v988_v53 = vpop.eup %987 }
 0x5b7   :  { %v615_v54 = vmul.f32 0.6931472, %v988_v53 }
 0x5b9   :  { %v616_v55 = vsub.f32 %v609_v49, %v615_v54 }
 0x5bb   :  { %617 = vst [vmem:[#allocation2] sm:$0xff] %v616_v55 }
 0x5bc   :  { %1000 = shalt.err (!%p997_p4)
}
 0x5bd   :  { %s1001_s18 = scalar_lea.hbm %s1634_s9, 128 }
 0x5be   :  { %p1002_p5 = scmp.ne.s32.totalorder %s1634_s9, %s1001_s18  ;;  %p1005_p6 = scmp.lt.u32.totalorder %s1001_s18, %s1634_s9 }
 0x5c0   :  { %p1007_p7 = pnand %p1005_p6, %p1002_p5 }
 0x5c2   :  { %1010 = shalt.err (!%p1007_p7)
}
 0x5c3   :  { %627 = dma.vmem_to_hbm [thread:$0]  %s625_s8, 128, %s1634_s9, [#allocation3]  }
 0x5c4   :  { %1011 = dma.done.wait [#allocation3], 128  }
 0x5c5   :  { %1012 = vsyncadd [#allocation3], 4294967168 }
 0x5c6   :  { %631 = vsyncpa [#allocation3], 1 }

// kernel: net_forward.2
= control target key start
LH: loop header
LB: loop body
LE: loop exit
PB: predicated region body
PF: predicated region fallthrough
CT: control target
= control target key end

     0   :  { %s17110_s0 = inlined_call_operand.vmem [shape: bf16[8,49152], index: 0, kind: input, shape index: {}]   ;;  %s17111_s1 = inlined_call_operand.hbm [shape: bf16[49152,256], index: 1, kind: input, shape index: {}]   ;;  %s17112_s2 = inlined_call_operand.hbm [shape: f32[1,256], index: 2, kind: input, shape index: {}]   ;;  %s17113_s3 = inlined_call_operand.vmem [shape: f32[8,256], index: 3, kind: output, shape index: {}]  }
   0x1   :  { %17119 = sst [smem:[#allocation10_spill]] %s17111_s1 }
   0x2   :  { %8 = vsyncpa [#allocation4], 0 }
   0x3   :  { %10 = vsyncpa [#allocation4 + $0x1], 0 }
   0x4   :  { %11 = vsyncpa [#allocation6], 0 }
   0x5   :  { %13 = vsyncpa [#allocation6 + $0x1], 0  ;;  %s15678_s12 = smov 0   ;;  %s15680_s13 = smov 0  }
   0x6   :  { %s15682_s14 = smov 0   ;;  %s15684_s15 = smov 0  }
   0x7   :  { %s15686_s16 = smov 0   ;;  %s15688_s17 = smov 0  }
   0x8   :  { %s15690_s18 = smov 0   ;;  %s15692_s19 = smov 0  }
   0x9   :  { %s15694_s20 = smov 0   ;;  %s15696_s21 = smov 0  }
   0xa   :  { %s15698_s22 = smov 0  }
   0xb LB: > { %s28_s23 = sadd.s32 1, %s15642_s20  ;;  %s66_s24 = sadd.s32 1, %s15630_s17  ;;  %s15650_s22 = sphi %s15698_s22, %s19_s22   ;;  %s15646_s21 = sphi %s15696_s21, %s17144_s21   ;;  %s15642_s20 = sphi %s15694_s20, %s17143_s20   ;;  %s15638_s19 = sphi %s15692_s19, %s17142_s19   ;;  %s15634_s18 = sphi %s15690_s18, %s17141_s18   ;;  %s15630_s17 = sphi %s15688_s17, %s17140_s17   ;;  %s15626_s16 = sphi %s15686_s16, %s17139_s16   ;;  %s15622_s15 = sphi %s15684_s15, %s17138_s15   ;;  %s15618_s14 = sphi %s15682_s14, %s17137_s14   ;;  %s15614_s13 = sphi %s15680_s13, %s17136_s13   ;;  %s15610_s12 = sphi %s15678_s12, %s17135_s12  }
   0xc   : > { %p15735_p0 = scmp.ge.s32.totalorder %s28_s23, 3  ;;  %p73_p1 = scmp.ne.s32.totalorder %s15630_s17, %s15626_s16 }
   0xd   : > { %p17115_p2 = scmp.eq.s32.totalorder %s15650_s22, 0  ;;  %p17114_p4 = scmp.lt.s32.totalorder %s15650_s22, 6 }
   0xe   : > { %s17146_s23 = smov (%p15735_p0, %s28_s23), 0  ;;  %s164_s27 = sand.u32 1, %s15630_s17  }
   0xf   : > { %p75_p3 = por %p17115_p2, %p73_p1  ;;  %s61_s26 = ssub.s32 %s15642_s20, %s17146_s23 }
  0x10   : > { %s11664_s28 = sshll.u32 %s164_s27, 13  ;;  %s12831_s29 = sshll.u32 %s15642_s20, 12 }
  0x11   : > { %s174_s30 = sadd.s32 %s15646_s21, %s12831_s29  ;;  %s168_s4 = scalar_lea.vmem [#allocation3], %s11664_s28 }
  0x12   : > { %s177_s5 = sshll.u32 %s168_s4, 4  ;;  %s11667_s6 = sshll.u32 %s174_s30, 6  ;;  %s15754_s5 = int_to_ptr.vmem [resolvable:$true] %s177_s5 }
  0x13   : > { %s17121_s1 = sld [smem:[#allocation10_spill]]  ;;  %p15763_p5 = pnand %p17114_p4, %p75_p3 }
  0x14   : > { %s15767_s11 = scalar_lea.sflag [#allocation4], %s164_s27 }
  0x15   : > { %p15498_p7 = pneg %p15763_p5 }
  0x19   : > { %s15759_s9 = scalar_lea.hbm %s17121_s1, %s11667_s6  ;;  %s15501_s4 = scalar_lea.hbm %s17121_s1, 786432 }
  0x1a   : > { %s15496_s28 = scalar_lea.hbm %s15759_s9, 131072  ;;  %p15502_p10 = scmp.lt.u32.totalorder %s15759_s9, %s17121_s1 }
  0x1b   : > { %p15497_p6 = scmp.ne.s32.totalorder %s15759_s9, %s15496_s28  ;;  %p15503_p11 = scmp.lt.u32.totalorder %s15501_s4, %s15496_s28 }
  0x1c   : > { %p15505_p13 = scmp.lt.u32.totalorder %s15496_s28, %s15759_s9 }
  0x1d   : > { %p15499_p8 = pnand %p15498_p7, %p15497_p6  ;;  %p15504_p12 = por %p15503_p11, %p15502_p10 }
  0x1f   : > { %p15500_p9 = pneg %p15499_p8  ;;  %p15506_p1 = por %p15505_p13, %p15504_p12 }
  0x21   : > { %p15507_p3 = pnand %p15506_p1, %p15500_p9 }
  0x23   : > { %15510 = shalt.err (!%p15507_p3)
}
  0x24   : > { %s15511_s27 = scalar_lea.vmem %s15754_s5, 131072  ;;  %s15652_s8 = smov [#allocation3]  }
  0x25   : > { %p15512_p6 = scmp.ne.s32.totalorder %s15754_s5, %s15511_s27  ;;  %s15516_s29 = sshll.u32 %s15652_s8, 4  ;;  %s15517_s29 = int_to_ptr.vmem [resolvable:$false] %s15516_s29 }
  0x26   : > { %s15518_s30 = scalar_lea.vmem %s15517_s29, 262144  ;;  %p15519_p2 = scmp.lt.s32.totalorder %s15754_s5, %s15517_s29 }
  0x27   : > { %p15514_p8 = pnand %p15512_p6, %p15498_p7  ;;  %p15520_p10 = scmp.lt.s32.totalorder %s15518_s30, %s15511_s27 }
  0x29   : > { %p15515_p4 = pneg %p15514_p8  ;;  %p15521_p11 = por %p15520_p10, %p15519_p2 }
  0x2b   : > { %p15522_p12 = pnand %p15521_p11, %p15515_p4 }
  0x2d   : > { %15525 = shalt.err (!%p15522_p12)
}
  0x2e   : > { %s15653_s28 = smov 128   ;;  %s15654_s4 = smov 64  }
  0x2f   : > { %s15655_s6 = smov 4   ;;  %p11669_p2 = scmp.ge.s32.totalorder %s15650_s22, 1 }
  0x30   : > { %14247 = dma.hbm_to_vmem [thread:$0]  (!%p15763_p5), %s15759_s9, 131072, %s15754_s5, %s15767_s11, %s15653_s28, %s15654_s4, %s15655_s6  }
  0x31   : > { %p202_p4 = scmp.lt.s32.totalorder %s15650_s22, 7  ;;  %s11660_s27 = sadd.s32 4294967295, %s15650_s22  }
  0x32   : > { %s31_s8 = sadd.s32 1, %s15646_s21  ;;  %p79_p9 = scmp.ne.s32.totalorder %s15626_s16, %s15622_s15 }
  0x33   : > { %p15797_p7 = pnand %p11669_p2, %p202_p4  ;;  %s17148_s8 = smov (!%p15735_p0, %s31_s8), %s15646_s21 }
  0x34   : > { %p80_p13 = scmp.eq.s32.totalorder %s11660_s27, 0  ;;  %s92_s5 = sadd.s32 1, %s15618_s14 }
  0x35   : > { %p33_p5 = scmp.ge.s32.totalorder %s17148_s8, 2  ;;  %p99_p1 = scmp.ne.s32.totalorder %s15618_s14, %s15614_s13 }
  0x36   : > { %p15811_p3 = por %p80_p13, %p79_p9  ;;  %p105_p6 = scmp.ne.s32.totalorder %s15614_s13, %s15610_s12 }
  0x37   : > { %s17150_s8 = smov (%p33_p5, %s17148_s8), 0  ;;  %p17126_p8 = scmp.eq.s32.totalorder %s15650_s22, 0 }
  0x38   : > { %s17124_s9 = scalar_select %p15811_p3, 1, 0 }
  0x39   : > { %17125 = sst [smem:[#allocation9_spill]] %s17150_s8  ;;  %p15821_p10 = por %p99_p1, %p17126_p8 }
  0x3a   : > { %p15825_p0 = por %p105_p6, %p80_p13  ;;  %s62_s10 = ssub.s32 %s15646_s21, %s17150_s8 }
  0x3b   : > { %s187_s11 = sand.u32 1, %s15618_s14   ;;  %s63_s29 = sor.u32 %s62_s10, %s61_s26 }
  0x3c   : > { %s17128_s25 = scalar_select %p15825_p0, 1, 0 }
  0x3d   : > { %p90_p11 = scmp.eq.s32.totalorder %s62_s10, 0  ;;  %p64_p12 = scmp.eq.s32.totalorder %s63_s29, 0 }
  0x3e   : > { %s11668_s28 = sshll.u32 %s15646_s21, 4  ;;  %s190_s1 = scalar_lea.vmem [#allocation5], %s187_s11 }
  0x3f   : > { %s15836_s12 = scalar_select %p90_p11, %s15618_s14, %s92_s5  }
  0x40   : > { %s15841_s30 = scalar_select %p64_p12, %s15630_s17, %s66_s24  }
  0x41   : > { %s15847_s27 = scalar_lea.hbm %s17112_s2, %s11668_s28  ;;  %s197_s8 = sshll.u32 %s190_s1, 4  ;;  %s15849_s8 = int_to_ptr.vmem [resolvable:$true] %s197_s8 }
  0x42   : > { %p17129_p2 = scmp.lt.s32.totalorder %s15650_s22, 6  ;;  %s188_s24 = scalar_lea.sflag [#allocation6], %s187_s11 }
  0x43   : > { %s15526_s5 = scalar_lea.hbm %s15847_s27, 16  ;;  %s15531_s15 = scalar_lea.hbm %s17112_s2, 32 }
  0x44   : > { %p15855_p4 = pnand %p17129_p2, %p15821_p10  ;;  %p15527_p9 = scmp.ne.s32.totalorder %s15847_s27, %s15526_s5 }
  0x45   : > { %p15532_p6 = scmp.lt.u32.totalorder %s15847_s27, %s17112_s2  ;;  %p15533_p8 = scmp.lt.u32.totalorder %s15531_s15, %s15526_s5 }
  0x46   : > { %p15528_p13 = pneg %p15855_p4  ;;  %p15535_p11 = scmp.lt.u32.totalorder %s15526_s5, %s15847_s27 }
  0x47   : > { %p15534_p10 = por %p15533_p8, %p15532_p6 }
  0x48   : > { %p15529_p5 = pnand %p15528_p13, %p15527_p9 }
  0x49   : > { %p15536_p12 = por %p15535_p11, %p15534_p10 }
  0x4a   : > { %p15530_p1 = pneg %p15529_p5 }
  0x4c   : > { %p15537_p2 = pnand %p15536_p12, %p15530_p1 }
  0x4e   : > { %15540 = shalt.err (!%p15537_p2)
}
  0x4f   : > { %s15541_s11 = scalar_lea.vmem %s15849_s8, 16  ;;  %s15656_s4 = smov [#allocation5]  }
  0x50   : > { %p15542_p9 = scmp.ne.s32.totalorder %s15849_s8, %s15541_s11  ;;  %s15546_s6 = sshll.u32 %s15656_s4, 4  ;;  %s15547_s6 = int_to_ptr.vmem [resolvable:$false] %s15546_s6 }
  0x51   : > { %s15548_s1 = scalar_lea.vmem %s15547_s6, 32  ;;  %p15549_p3 = scmp.lt.s32.totalorder %s15849_s8, %s15547_s6 }
  0x52   : > { %p15544_p5 = pnand %p15542_p9, %p15528_p13  ;;  %p15550_p6 = scmp.lt.s32.totalorder %s15548_s1, %s15541_s11 }
  0x54   : > { %p15545_p0 = pneg %p15544_p5  ;;  %p15551_p8 = por %p15550_p6, %p15549_p3 }
  0x56   : > { %p15552_p10 = pnand %p15551_p8, %p15545_p0 }
  0x58   : > { %15555 = shalt.err (!%p15552_p10)
}
  0x59   : > { %14250 = dma.hbm_to_vmem [thread:$0]  (!%p15855_p4), %s15847_s27, 16, %s15849_s8, %s188_s24  }
  0x5a   : > { %206 = sbr.rel (%p15797_p7) target bundleno = 1373 (0x55d), region = 32  ;;  %s208_s5 = sand.u32 (!%p15797_p7), 1, %s15626_s16  }
  0x5b   : > { %s11670_s10 = sshll.u32 (!%p15797_p7), %s208_s5, 13  ;;  %s209_s15 = scalar_lea.sflag (!%p15797_p7), [#allocation4], %s208_s5 }
  0x5c   : > { %s15887_s29 = scalar_lea.vmem (!%p15797_p7), [#allocation3], %s11670_s10  ;;  %p17131_p13 = scmp.ne.s32.totalorder (!%p15797_p7), %s17124_s9, 0 }
  0x61   : > { %15601 = dma.done.wait (%p17131_p13), %s209_s15, 131072  }
  0x62   : > { %15603 = vsyncadd (%p17131_p13), %s209_s15, 4294836224  ;;  %s217_s26 = sand.u32 1, %s15614_s13   ;;  %p17132_p3 = scmp.ne.s32.totalorder %s17128_s25, 0 }
  0x63   : > { %s218_s28 = scalar_lea.sflag [#allocation6], %s217_s26  ;;  %s15894_s8 = scalar_lea.vmem [#allocation5], %s217_s26 }
  0x64   : > { %15605 = dma.done.wait (%p17132_p3), %s218_s28, 16  }
  0x65   : > { %15607 = vsyncadd (%p17132_p3), %s218_s28, 4294967280  ;;  %s11671_s7 = sshll.u32 %s15634_s18, 7  ;;  %p258_p7 = scmp.lt.s32.totalorder %s15638_s19, 1 }
  0x66   : > { %p252_p0 = scmp.lt.s32.totalorder %s11671_s7, 383  ;;  %p11674_p4 = scmp.ne.s32.totalorder %s15634_s18, 0 }
  0x67   : > { %s17152_s19 = smov (!%p258_p7, %s15638_s19), 1  ;;  %v15657_v0 = vmov (!%p11674_p4), 0.0  }
  0x68   : > { %s17154_s7 = smov (!%p252_p0, %s11671_s7), 383  ;;  %s11673_s9 = sshll.u32 %s17152_s19, 3  ;;  %267 = vst [vmem:[#allocation2] sm:$0xff] (!%p11674_p4), %v15657_v0 }
  0x69   : > { %s11672_s27 = sshll.u32 %s17154_s7, 2  ;;  %s15906_s4 = scalar_lea.vmem %s17113_s3, %s11673_s9 }
  0x6a   : > { %s15911_s25 = scalar_lea.vmem %s17110_s0, %s11672_s27  ;;  %266 = sbr.rel (%p11674_p4) target bundleno = 113 (0x71), region = 44 }
  0x71 PF: > { %v14344_v1 = vld [vmem:[%s15887_s29 + $0x40] sm:$0xff]   ;;  %v14348_v5 = vld [vmem:[%s15887_s29 + $0x48] sm:$0xff]   ;;  %v14352_v9 = vld [vmem:[%s15887_s29 + $0x50] sm:$0xff]   ;;  %p12827_p1 = scmp.ne.s32.totalorder %s15634_s18, 2 }
  0x72   : > { %v14345_v2 = vld [vmem:[%s15887_s29 + $0xc0] sm:$0xff]   ;;  %12832 = vmatprep.subr.bf16.mxu0 %v14344_v1  ;;  %v14349_v6 = vld [vmem:[%s15887_s29 + $0xc8] sm:$0xff]   ;;  %v14353_v10 = vld [vmem:[%s15887_s29 + $0xd0] sm:$0xff]  }
  0x73   : > { %v14346_v3 = vld [vmem:[%s15887_s29] sm:$0xff]   ;;  %12854 = vmatprep.subr.bf16.mxu1 %v14345_v2  ;;  %v14350_v7 = vld [vmem:[%s15887_s29 + $0x8] sm:$0xff]   ;;  %v14354_v11 = vld [vmem:[%s15887_s29 + $0x10] sm:$0xff]  }
  0x74   : > { %v14347_v4 = vld [vmem:[%s15887_s29 + $0x80] sm:$0xff]   ;;  %12833 = vmatpush3.bf16.msra.mxu0 %v14346_v3  ;;  %v14351_v8 = vld [vmem:[%s15887_s29 + $0x88] sm:$0xff]   ;;  %v14355_v12 = vld [vmem:[%s15887_s29 + $0x90] sm:$0xff]  }
  0x75   : > { %12855 = vmatpush3.bf16.msra.mxu1 %v14347_v4  ;;  %12834 = vmatprep.subr.bf16.mxu0 %v14348_v5  ;;  %v14356_v13 = vld [vmem:[%s15887_s29 + $0x58] sm:$0xff]   ;;  %v14360_v17 = vld [vmem:[%s15887_s29 + $0x60] sm:$0xff]   ;;  %v14364_v21 = vld [vmem:[%s15887_s29 + $0x68] sm:$0xff]  }
  0x76   : > { %12856 = vmatprep.subr.bf16.mxu1 %v14349_v6  ;;  %v14357_v14 = vld [vmem:[%s15887_s29 + $0xd8] sm:$0xff]   ;;  %v14361_v18 = vld [vmem:[%s15887_s29 + $0xe0] sm:$0xff]   ;;  %v14365_v22 = vld [vmem:[%s15887_s29 + $0xe8] sm:$0xff]  }
  0x77   : > { %v14358_v15 = vld [vmem:[%s15887_s29 + $0x18] sm:$0xff]   ;;  %v14362_v19 = vld [vmem:[%s15887_s29 + $0x20] sm:$0xff]   ;;  %v14366_v23 = vld [vmem:[%s15887_s29 + $0x28] sm:$0xff]  }
  0x78   : > { %12835 = vmatpush3.bf16.msra.mxu0 %v14350_v7  ;;  %v14359_v16 = vld [vmem:[%s15887_s29 + $0x98] sm:$0xff]   ;;  %v14363_v20 = vld [vmem:[%s15887_s29 + $0xa0] sm:$0xff]   ;;  %v14367_v24 = vld [vmem:[%s15887_s29 + $0xa8] sm:$0xff]  }
  0x79   : > { %12857 = vmatpush3.bf16.msra.mxu1 %v14351_v8  ;;  %12836 = vmatprep.subr.bf16.mxu0 %v14352_v9  ;;  %v14368_v25 = vld [vmem:[%s15887_s29 + $0x70] sm:$0xff]   ;;  %v14372_v29 = vld [vmem:[%s15887_s29 + $0x78] sm:$0xff]   ;;  %v270_v34 = vld [vmem:[%s15911_s25 + $0x8] sm:$0xff] }
  0x7a   : > { %12858 = vmatprep.subr.bf16.mxu1 %v14353_v10  ;;  %v14369_v26 = vld [vmem:[%s15887_s29 + $0xf0] sm:$0xff]   ;;  %v14373_v30 = vld [vmem:[%s15887_s29 + $0xf8] sm:$0xff]   ;;  %v11677_v37 = vcombine.low %v270_v34, %v270_v34  ;;  %v11678_v38 = vcombine.high %v270_v34, %v270_v34  ;;  %v14380_v39 = vld [vmem:[%s15887_s29 + $0x140] sm:$0xff]  }
  0x7b   : > { %v14370_v27 = vld [vmem:[%s15887_s29 + $0x30] sm:$0xff]   ;;  %v14374_v31 = vld [vmem:[%s15887_s29 + $0x38] sm:$0xff]   ;;  %v14381_v40 = vld [vmem:[%s15887_s29 + $0x1c0] sm:$0xff]  }
  0x7c   : > { %12837 = vmatpush3.bf16.msra.mxu0 %v14354_v11  ;;  %v14371_v28 = vld [vmem:[%s15887_s29 + $0xb0] sm:$0xff]   ;;  %v14375_v32 = vld [vmem:[%s15887_s29 + $0xb8] sm:$0xff]   ;;  %9045 = vmatprep.mubr.bf16.mxu1 %v11678_v38  ;;  %v14382_v41 = vld [vmem:[%s15887_s29 + $0x100] sm:$0xff]  }
  0x7d   : > { %12859 = vmatpush3.bf16.msra.mxu1 %v14355_v12  ;;  %12838 = vmatprep.subr.bf16.mxu0 %v14356_v13  ;;  %v269_v33 = vld [vmem:[%s15911_s25] sm:$0xff]  ;;  %v14383_v42 = vld [vmem:[%s15887_s29 + $0x180] sm:$0xff]   ;;  %v14384_v43 = vld [vmem:[%s15887_s29 + $0x148] sm:$0xff]  }
  0x7e   : > { %12860 = vmatprep.subr.bf16.mxu1 %v14357_v14  ;;  %v11675_v35 = vcombine.low %v269_v33, %v269_v33  ;;  %v11676_v36 = vcombine.high %v269_v33, %v269_v33  ;;  %v14385_v44 = vld [vmem:[%s15887_s29 + $0x1c8] sm:$0xff]   ;;  %v14388_v47 = vld [vmem:[%s15887_s29 + $0x150] sm:$0xff]   ;;  %v14392_v51 = vld [vmem:[%s15887_s29 + $0x158] sm:$0xff]  }
  0x7f   : > { %v14386_v45 = vld [vmem:[%s15887_s29 + $0x108] sm:$0xff]   ;;  %v14389_v48 = vld [vmem:[%s15887_s29 + $0x1d0] sm:$0xff]   ;;  %v14393_v52 = vld [vmem:[%s15887_s29 + $0x1d8] sm:$0xff]  }
  0x80   : > { %12839 = vmatpush3.bf16.msra.mxu0 %v14358_v15  ;;  %9005 = vmatprep.mubr.bf16.mxu0 %v11676_v36  ;;  %v14387_v46 = vld [vmem:[%s15887_s29 + $0x188] sm:$0xff]   ;;  %v14390_v49 = vld [vmem:[%s15887_s29 + $0x110] sm:$0xff]   ;;  %v14394_v53 = vld [vmem:[%s15887_s29 + $0x118] sm:$0xff]  }
  0x81   : > { %12861 = vmatpush3.bf16.msra.mxu1 %v14359_v16  ;;  %12840 = vmatprep.subr.bf16.mxu0 %v14360_v17  ;;  %v14391_v50 = vld [vmem:[%s15887_s29 + $0x190] sm:$0xff]   ;;  %v14395_v54 = vld [vmem:[%s15887_s29 + $0x198] sm:$0xff]   ;;  %v14396_v55 = vld [vmem:[%s15887_s29 + $0x160] sm:$0xff]  }
  0x82   : > { %12862 = vmatprep.subr.bf16.mxu1 %v14361_v18  ;;  %v14397_v56 = vld [vmem:[%s15887_s29 + $0x1e0] sm:$0xff]   ;;  %v14400_v59 = vld [vmem:[%s15887_s29 + $0x168] sm:$0xff]   ;;  %v14404_v63 = vld [vmem:[%s15887_s29 + $0x170] sm:$0xff]  }
  0x83   : > { %v14398_v57 = vld [vmem:[%s15887_s29 + $0x120] sm:$0xff]   ;;  %v14401_v60 = vld [vmem:[%s15887_s29 + $0x1e8] sm:$0xff]   ;;  %v14405_v0 = vld [vmem:[%s15887_s29 + $0x1f0] sm:$0xff]  }
  0x84   : > { %12841 = vmatpush3.bf16.msra.mxu0 %v14362_v19  ;;  %v14399_v58 = vld [vmem:[%s15887_s29 + $0x1a0] sm:$0xff]   ;;  %v14402_v61 = vld [vmem:[%s15887_s29 + $0x128] sm:$0xff]   ;;  %v14406_v1 = vld [vmem:[%s15887_s29 + $0x130] sm:$0xff]  }
  0x85   : > { %12863 = vmatpush3.bf16.msra.mxu1 %v14363_v20  ;;  %12842 = vmatprep.subr.bf16.mxu0 %v14364_v21  ;;  %v14403_v62 = vld [vmem:[%s15887_s29 + $0x1a8] sm:$0xff]   ;;  %v14407_v2 = vld [vmem:[%s15887_s29 + $0x1b0] sm:$0xff]   ;;  %v14408_v3 = vld [vmem:[%s15887_s29 + $0x178] sm:$0xff]  }
  0x86   : > { %12864 = vmatprep.subr.bf16.mxu1 %v14365_v22  ;;  %v14409_v4 = vld [vmem:[%s15887_s29 + $0x1f8] sm:$0xff]   ;;  %v271_v7 = vld [vmem:[%s15911_s25 + $0x10] sm:$0xff]  ;;  %v272_v10 = vld [vmem:[%s15911_s25 + $0x18] sm:$0xff] }
  0x87   : > { %v14410_v5 = vld [vmem:[%s15887_s29 + $0x138] sm:$0xff]   ;;  %v11679_v8 = vcombine.low %v271_v7, %v271_v7  ;;  %v11680_v9 = vcombine.high %v271_v7, %v271_v7  ;;  %v11681_v11 = vcombine.low %v272_v10, %v272_v10  ;;  %v11682_v12 = vcombine.high %v272_v10, %v272_v10  ;;  %v14416_v13 = vld [vmem:[%s15887_s29 + $0x240] sm:$0xff]   ;;  %v14420_v17 = vld [vmem:[%s15887_s29 + $0x248] sm:$0xff]  }
  0x88   : > { %12843 = vmatpush3.bf16.msra.mxu0 %v14366_v23  ;;  %v14411_v6 = vld [vmem:[%s15887_s29 + $0x1b8] sm:$0xff]   ;;  %v14417_v14 = vld [vmem:[%s15887_s29 + $0x2c0] sm:$0xff]   ;;  %v14421_v18 = vld [vmem:[%s15887_s29 + $0x2c8] sm:$0xff]  }
  0x89   : > { %12865 = vmatpush3.bf16.msra.mxu1 %v14367_v24  ;;  %12844 = vmatprep.subr.bf16.mxu0 %v14368_v25  ;;  %v14418_v15 = vld [vmem:[%s15887_s29 + $0x200] sm:$0xff]   ;;  %v14422_v19 = vld [vmem:[%s15887_s29 + $0x208] sm:$0xff]   ;;  %v14424_v21 = vld [vmem:[%s15887_s29 + $0x250] sm:$0xff]  }
  0x8a   : > { %12866 = vmatprep.subr.bf16.mxu1 %v14369_v26  ;;  %v14419_v16 = vld [vmem:[%s15887_s29 + $0x280] sm:$0xff]   ;;  %v14423_v20 = vld [vmem:[%s15887_s29 + $0x288] sm:$0xff]   ;;  %v14425_v22 = vld [vmem:[%s15887_s29 + $0x2d0] sm:$0xff]  }
  0x8b   : > { %v14426_v23 = vld [vmem:[%s15887_s29 + $0x210] sm:$0xff]   ;;  %v14428_v25 = vld [vmem:[%s15887_s29 + $0x258] sm:$0xff]   ;;  %v14436_v33 = vld [vmem:[%s15887_s29 + $0x268] sm:$0xff]  }
  0x8c   : > { %12845 = vmatpush3.bf16.msra.mxu0 %v14370_v27  ;;  %v14427_v24 = vld [vmem:[%s15887_s29 + $0x290] sm:$0xff]   ;;  %v14429_v26 = vld [vmem:[%s15887_s29 + $0x2d8] sm:$0xff]   ;;  %v14437_v34 = vld [vmem:[%s15887_s29 + $0x2e8] sm:$0xff]  }
  0x8d   : > { %12867 = vmatpush3.bf16.msra.mxu1 %v14371_v28  ;;  %12846 = vmatprep.subr.bf16.mxu0 %v14372_v29  ;;  %v14430_v27 = vld [vmem:[%s15887_s29 + $0x218] sm:$0xff]   ;;  %v14432_v29 = vld [vmem:[%s15887_s29 + $0x260] sm:$0xff]   ;;  %v14439_v36 = vld [vmem:[%s15887_s29 + $0x2a8] sm:$0xff]  }
  0x8e   : > { %12868 = vmatprep.subr.bf16.mxu1 %v14373_v30  ;;  %v14431_v28 = vld [vmem:[%s15887_s29 + $0x298] sm:$0xff]   ;;  %v14433_v30 = vld [vmem:[%s15887_s29 + $0x2e0] sm:$0xff]   ;;  %v14441_v38 = vld [vmem:[%s15887_s29 + $0x2f0] sm:$0xff]  }
  0x8f   : > { %v14472_v7 = vld [vmem:[%s15887_s29 + $0x368] sm:$0xff]  }
  0x90   : > { %12847 = vmatpush3.bf16.msra.mxu0 %v14374_v31  ;;  %v14434_v31 = vld [vmem:[%s15887_s29 + $0x220] sm:$0xff]   ;;  %v14475_v10 = vld [vmem:[%s15887_s29 + $0x3a8] sm:$0xff]  }
  0x91   : > { %12869 = vmatpush3.bf16.msra.mxu1 %v14375_v32  ;;  %12876 = vmatprep.subr.bf16.mxu0 %v14380_v39  ;;  %v14435_v32 = vld [vmem:[%s15887_s29 + $0x2a0] sm:$0xff]   ;;  %v14442_v39 = vld [vmem:[%s15887_s29 + $0x230] sm:$0xff]  }
  0x92   : > { %12898 = vmatprep.subr.bf16.mxu1 %v14381_v40  ;;  %v14443_v40 = vld [vmem:[%s15887_s29 + $0x2b0] sm:$0xff]  }
  0x93   : > { %9006 = vmatmul.mubr.bf16.vlgmr.msra.gmra.mrb[0].mxu0 %v11675_v35  ;;  %v14438_v35 = vld [vmem:[%s15887_s29 + $0x228] sm:$0xff]  }
  0x94   : > { %9046 = vmatmul.mubr.bf16.vlgmr.msra.gmra.mrb[0].mxu1 %v11677_v37  ;;  %12877 = vmatpush3.bf16.msra.mxu0 %v14382_v41  ;;  %v14440_v37 = vld [vmem:[%s15887_s29 + $0x270] sm:$0xff]   ;;  %v14444_v41 = vld [vmem:[%s15887_s29 + $0x278] sm:$0xff]  }
  0x95   : > { %12899 = vmatpush3.bf16.msra.mxu1 %v14383_v42  ;;  %12878 = vmatprep.subr.bf16.mxu0 %v14384_v43  ;;  %v14445_v42 = vld [vmem:[%s15887_s29 + $0x2f8] sm:$0xff]  }
  0x96   : > { %12900 = vmatprep.subr.bf16.mxu1 %v14385_v44  ;;  %9085 = vmatprep.mubr.bf16.mxu0 %v11680_v9  ;;  %v14446_v43 = vld [vmem:[%s15887_s29 + $0x238] sm:$0xff]   ;;  %v14474_v9 = vld [vmem:[%s15887_s29 + $0x328] sm:$0xff]  }
  0x97   : > { %9125 = vmatprep.mubr.bf16.mxu1 %v11682_v12  ;;  %v14447_v44 = vld [vmem:[%s15887_s29 + $0x2b8] sm:$0xff]   ;;  %v14477_v12 = vld [vmem:[%s15887_s29 + $0x3f0] sm:$0xff]  }
  0x98   : > { %12879 = vmatpush3.bf16.msra.mxu0 %v14386_v45  ;;  %v273_v45 = vld [vmem:[%s15911_s25 + $0x20] sm:$0xff] }
  0x99   : > { %12901 = vmatpush3.bf16.msra.mxu1 %v14387_v46  ;;  %12880 = vmatprep.subr.bf16.mxu0 %v14388_v47  ;;  %v274_v46 = vld [vmem:[%s15911_s25 + $0x28] sm:$0xff]  ;;  %v11683_v47 = vcombine.low %v273_v45, %v273_v45 }
  0x9a   : > { %12902 = vmatprep.subr.bf16.mxu1 %v14389_v48  ;;  %v11684_v48 = vcombine.high %v273_v45, %v273_v45  ;;  %v14508_v45 = vld [vmem:[%s15887_s29 + $0x468] sm:$0xff]  }
  0x9c   : > { %12881 = vmatpush3.bf16.msra.mxu0 %v14390_v49  ;;  %v11685_v49 = vcombine.low %v274_v46, %v274_v46 }
  0x9d   : > { %12903 = vmatpush3.bf16.msra.mxu1 %v14391_v50  ;;  %12882 = vmatprep.subr.bf16.mxu0 %v14392_v51  ;;  %v11686_v50 = vcombine.high %v274_v46, %v274_v46  ;;  %v14452_v51 = vld [vmem:[%s15887_s29 + $0x340] sm:$0xff]   ;;  %v14509_v46 = vld [vmem:[%s15887_s29 + $0x4e8] sm:$0xff]  }
  0x9e   : > { %12904 = vmatprep.subr.bf16.mxu1 %v14393_v52  ;;  %v14453_v52 = vld [vmem:[%s15887_s29 + $0x3c0] sm:$0xff]  }
  0xa0   : > { %12883 = vmatpush3.bf16.msra.mxu0 %v14394_v53  ;;  %v14454_v53 = vld [vmem:[%s15887_s29 + $0x300] sm:$0xff]  }
  0xa1   : > { %12905 = vmatpush3.bf16.msra.mxu1 %v14395_v54  ;;  %12884 = vmatprep.subr.bf16.mxu0 %v14396_v55  ;;  %v14455_v54 = vld [vmem:[%s15887_s29 + $0x380] sm:$0xff]   ;;  %v14456_v55 = vld [vmem:[%s15887_s29 + $0x348] sm:$0xff]  }
  0xa2   : > { %12906 = vmatprep.subr.bf16.mxu1 %v14397_v56  ;;  %v14457_v56 = vld [vmem:[%s15887_s29 + $0x3c8] sm:$0xff]  }
  0xa4   : > { %12885 = vmatpush3.bf16.msra.mxu0 %v14398_v57  ;;  %v14458_v57 = vld [vmem:[%s15887_s29 + $0x308] sm:$0xff]  }
  0xa5   : > { %12907 = vmatpush3.bf16.msra.mxu1 %v14399_v58  ;;  %12886 = vmatprep.subr.bf16.mxu0 %v14400_v59  ;;  %v14459_v58 = vld [vmem:[%s15887_s29 + $0x388] sm:$0xff]   ;;  %v14460_v59 = vld [vmem:[%s15887_s29 + $0x350] sm:$0xff]  }
  0xa6   : > { %12908 = vmatprep.subr.bf16.mxu1 %v14401_v60  ;;  %v14461_v60 = vld [vmem:[%s15887_s29 + $0x3d0] sm:$0xff]  }
  0xa8   : > { %12887 = vmatpush3.bf16.msra.mxu0 %v14402_v61  ;;  %v14462_v61 = vld [vmem:[%s15887_s29 + $0x310] sm:$0xff]  }
  0xa9   : > { %12909 = vmatpush3.bf16.msra.mxu1 %v14403_v62  ;;  %12888 = vmatprep.subr.bf16.mxu0 %v14404_v63  ;;  %v14463_v62 = vld [vmem:[%s15887_s29 + $0x390] sm:$0xff]   ;;  %v14464_v63 = vld [vmem:[%s15887_s29 + $0x358] sm:$0xff]  }
  0xaa   : > { %12910 = vmatprep.subr.bf16.mxu1 %v14405_v0  ;;  %v14465_v0 = vld [vmem:[%s15887_s29 + $0x3d8] sm:$0xff]  }
  0xac   : > { %12889 = vmatpush3.bf16.msra.mxu0 %v14406_v1  ;;  %v14466_v1 = vld [vmem:[%s15887_s29 + $0x318] sm:$0xff]  }
  0xad   : > { %12911 = vmatpush3.bf16.msra.mxu1 %v14407_v2  ;;  %12890 = vmatprep.subr.bf16.mxu0 %v14408_v3  ;;  %v14467_v2 = vld [vmem:[%s15887_s29 + $0x398] sm:$0xff]   ;;  %v14468_v3 = vld [vmem:[%s15887_s29 + $0x360] sm:$0xff]  }
  0xae   : > { %12912 = vmatprep.subr.bf16.mxu1 %v14409_v4  ;;  %v14469_v4 = vld [vmem:[%s15887_s29 + $0x3e0] sm:$0xff]  }
  0xb0   : > { %12891 = vmatpush3.bf16.msra.mxu0 %v14410_v5  ;;  %v14470_v5 = vld [vmem:[%s15887_s29 + $0x320] sm:$0xff]  }
  0xb1   : > { %12913 = vmatpush3.bf16.msra.mxu1 %v14411_v6  ;;  %12920 = vmatprep.subr.bf16.mxu0 %v14416_v13  ;;  %v14471_v6 = vld [vmem:[%s15887_s29 + $0x3a0] sm:$0xff]   ;;  %v14478_v13 = vld [vmem:[%s15887_s29 + $0x330] sm:$0xff]  }
  0xb2   : > { %12942 = vmatprep.subr.bf16.mxu1 %v14417_v14  ;;  %v14479_v14 = vld [vmem:[%s15887_s29 + $0x3b0] sm:$0xff]  }
  0xb3   : > { %9086 = vmatmul.mubr.bf16.vlgmr.msra.gmra.mrb[4].mxu0 %v11679_v8  ;;  %v14473_v8 = vld [vmem:[%s15887_s29 + $0x3e8] sm:$0xff]  }
  0xb4   : > { %9126 = vmatmul.mubr.bf16.vlgmr.msra.gmra.mrb[4].mxu1 %v11681_v11  ;;  %12921 = vmatpush3.bf16.msra.mxu0 %v14418_v15  ;;  %v14476_v11 = vld [vmem:[%s15887_s29 + $0x370] sm:$0xff]   ;;  %v14480_v15 = vld [vmem:[%s15887_s29 + $0x378] sm:$0xff]  }
  0xb5   : > { %12943 = vmatpush3.bf16.msra.mxu1 %v14419_v16  ;;  %12922 = vmatprep.subr.bf16.mxu0 %v14420_v17  ;;  %v14481_v16 = vld [vmem:[%s15887_s29 + $0x3f8] sm:$0xff]  }
  0xb6   : > { %12944 = vmatprep.subr.bf16.mxu1 %v14421_v18  ;;  %9165 = vmatprep.mubr.bf16.mxu0 %v11684_v48  ;;  %v14482_v17 = vld [vmem:[%s15887_s29 + $0x338] sm:$0xff]   ;;  %v14511_v48 = vld [vmem:[%s15887_s29 + $0x4a8] sm:$0xff]  }
  0xb7   : > { %9205 = vmatprep.mubr.bf16.mxu1 %v11686_v50  ;;  %v14483_v18 = vld [vmem:[%s15887_s29 + $0x3b8] sm:$0xff]   ;;  %v14513_v50 = vld [vmem:[%s15887_s29 + $0x4f0] sm:$0xff]  }
  0xb8   : > { %12923 = vmatpush3.bf16.msra.mxu0 %v14422_v19  ;;  %v275_v19 = vld [vmem:[%s15911_s25 + $0x30] sm:$0xff] }
  0xb9   : > { %12945 = vmatpush3.bf16.msra.mxu1 %v14423_v20  ;;  %12924 = vmatprep.subr.bf16.mxu0 %v14424_v21  ;;  %v276_v20 = vld [vmem:[%s15911_s25 + $0x38] sm:$0xff]  ;;  %v11687_v21 = vcombine.low %v275_v19, %v275_v19 }
  0xba   : > { %12946 = vmatprep.subr.bf16.mxu1 %v14425_v22  ;;  %v11688_v22 = vcombine.high %v275_v19, %v275_v19  ;;  %v14544_v19 = vld [vmem:[%s15887_s29 + $0x568] sm:$0xff]  }
  0xbc   : > { %12925 = vmatpush3.bf16.msra.mxu0 %v14426_v23  ;;  %v11689_v23 = vcombine.low %v276_v20, %v276_v20 }
  0xbd   : > { %12947 = vmatpush3.bf16.msra.mxu1 %v14427_v24  ;;  %12926 = vmatprep.subr.bf16.mxu0 %v14428_v25  ;;  %v14488_v24 = vld [vmem:[%s15887_s29 + $0x440] sm:$0xff]   ;;  %v11690_v25 = vcombine.high %v276_v20, %v276_v20  ;;  %v14545_v20 = vld [vmem:[%s15887_s29 + $0x5e8] sm:$0xff]  }
  0xbe   : > { %12948 = vmatprep.subr.bf16.mxu1 %v14429_v26  ;;  %v14489_v26 = vld [vmem:[%s15887_s29 + $0x4c0] sm:$0xff]  }
  0xc0   : > { %12927 = vmatpush3.bf16.msra.mxu0 %v14430_v27  ;;  %v14490_v27 = vld [vmem:[%s15887_s29 + $0x400] sm:$0xff]  }
  0xc1   : > { %12949 = vmatpush3.bf16.msra.mxu1 %v14431_v28  ;;  %12928 = vmatprep.subr.bf16.mxu0 %v14432_v29  ;;  %v14491_v28 = vld [vmem:[%s15887_s29 + $0x480] sm:$0xff]   ;;  %v14492_v29 = vld [vmem:[%s15887_s29 + $0x448] sm:$0xff]  }
  0xc2   : > { %12950 = vmatprep.subr.bf16.mxu1 %v14433_v30  ;;  %v14493_v30 = vld [vmem:[%s15887_s29 + $0x4c8] sm:$0xff]  }
  0xc4   : > { %12929 = vmatpush3.bf16.msra.mxu0 %v14434_v31  ;;  %v14494_v31 = vld [vmem:[%s15887_s29 + $0x408] sm:$0xff]  }
  0xc5   : > { %12951 = vmatpush3.bf16.msra.mxu1 %v14435_v32  ;;  %12930 = vmatprep.subr.bf16.mxu0 %v14436_v33  ;;  %v14495_v32 = vld [vmem:[%s15887_s29 + $0x488] sm:$0xff]   ;;  %v14496_v33 = vld [vmem:[%s15887_s29 + $0x450] sm:$0xff]  }
  0xc6   : > { %12952 = vmatprep.subr.bf16.mxu1 %v14437_v34  ;;  %v14497_v34 = vld [vmem:[%s15887_s29 + $0x4d0] sm:$0xff]  }
  0xc8   : > { %12931 = vmatpush3.bf16.msra.mxu0 %v14438_v35  ;;  %v14498_v35 = vld [vmem:[%s15887_s29 + $0x410] sm:$0xff]  }
  0xc9   : > { %12953 = vmatpush3.bf16.msra.mxu1 %v14439_v36  ;;  %12932 = vmatprep.subr.bf16.mxu0 %v14440_v37  ;;  %v14499_v36 = vld [vmem:[%s15887_s29 + $0x490] sm:$0xff]   ;;  %v14500_v37 = vld [vmem:[%s15887_s29 + $0x458] sm:$0xff]  }
  0xca   : > { %12954 = vmatprep.subr.bf16.mxu1 %v14441_v38  ;;  %v14501_v38 = vld [vmem:[%s15887_s29 + $0x4d8] sm:$0xff]  }
  0xcc   : > { %12933 = vmatpush3.bf16.msra.mxu0 %v14442_v39  ;;  %v14502_v39 = vld [vmem:[%s15887_s29 + $0x418] sm:$0xff]  }
  0xcd   : > { %12955 = vmatpush3.bf16.msra.mxu1 %v14443_v40  ;;  %12934 = vmatprep.subr.bf16.mxu0 %v14444_v41  ;;  %v14503_v40 = vld [vmem:[%s15887_s29 + $0x498] sm:$0xff]   ;;  %v14504_v41 = vld [vmem:[%s15887_s29 + $0x460] sm:$0xff]  }
  0xce   : > { %12956 = vmatprep.subr.bf16.mxu1 %v14445_v42  ;;  %v14505_v42 = vld [vmem:[%s15887_s29 + $0x4e0] sm:$0xff]  }
  0xd0   : > { %12935 = vmatpush3.bf16.msra.mxu0 %v14446_v43  ;;  %v14506_v43 = vld [vmem:[%s15887_s29 + $0x420] sm:$0xff]  }
  0xd1   : > { %12957 = vmatpush3.bf16.msra.mxu1 %v14447_v44  ;;  %12964 = vmatprep.subr.bf16.mxu0 %v14452_v51  ;;  %v14507_v44 = vld [vmem:[%s15887_s29 + $0x4a0] sm:$0xff]   ;;  %v14514_v51 = vld [vmem:[%s15887_s29 + $0x430] sm:$0xff]  }
  0xd2   : > { %12986 = vmatprep.subr.bf16.mxu1 %v14453_v52  ;;  %v14515_v52 = vld [vmem:[%s15887_s29 + $0x4b0] sm:$0xff]  }
  0xd3   : > { %9166 = vmatmul.mubr.bf16.vlgmr.msra.gmra.mrb[8].mxu0 %v11683_v47  ;;  %v14510_v47 = vld [vmem:[%s15887_s29 + $0x428] sm:$0xff]  }
  0xd4   : > { %9206 = vmatmul.mubr.bf16.vlgmr.msra.gmra.mrb[8].mxu1 %v11685_v49  ;;  %12965 = vmatpush3.bf16.msra.mxu0 %v14454_v53  ;;  %v14512_v49 = vld [vmem:[%s15887_s29 + $0x470] sm:$0xff]   ;;  %v14516_v53 = vld [vmem:[%s15887_s29 + $0x478] sm:$0xff]  }
  0xd5   : > { %12987 = vmatpush3.bf16.msra.mxu1 %v14455_v54  ;;  %12966 = vmatprep.subr.bf16.mxu0 %v14456_v55  ;;  %v14517_v54 = vld [vmem:[%s15887_s29 + $0x4f8] sm:$0xff]  }
  0xd6   : > { %12988 = vmatprep.subr.bf16.mxu1 %v14457_v56  ;;  %9245 = vmatprep.mubr.bf16.mxu0 %v11688_v22  ;;  %v14518_v55 = vld [vmem:[%s15887_s29 + $0x438] sm:$0xff]   ;;  %v14547_v22 = vld [vmem:[%s15887_s29 + $0x5a8] sm:$0xff]  }
  0xd7   : > { %9285 = vmatprep.mubr.bf16.mxu1 %v11690_v25  ;;  %v14519_v56 = vld [vmem:[%s15887_s29 + $0x4b8] sm:$0xff]   ;;  %v14550_v25 = vld [vmem:[%s15887_s29 + $0x530] sm:$0xff]  }
  0xd8   : > { %12967 = vmatpush3.bf16.msra.mxu0 %v14458_v57  ;;  %v277_v57 = vld [vmem:[%s15911_s25 + $0x40] sm:$0xff] }
  0xd9   : > { %12989 = vmatpush3.bf16.msra.mxu1 %v14459_v58  ;;  %12968 = vmatprep.subr.bf16.mxu0 %v14460_v59  ;;  %v11691_v58 = vcombine.low %v277_v57, %v277_v57  ;;  %v11692_v59 = vcombine.high %v277_v57, %v277_v57  ;;  %v14580_v57 = vld [vmem:[%s15887_s29 + $0x668] sm:$0xff]  }
  0xda   : > { %12990 = vmatprep.subr.bf16.mxu1 %v14461_v60  ;;  %v278_v60 = vld [vmem:[%s15911_s25 + $0x48] sm:$0xff] }
  0xdc   : > { %12969 = vmatpush3.bf16.msra.mxu0 %v14462_v61  ;;  %v11693_v61 = vcombine.low %v278_v60, %v278_v60 }
  0xdd   : > { %12991 = vmatpush3.bf16.msra.mxu1 %v14463_v62  ;;  %12970 = vmatprep.subr.bf16.mxu0 %v14464_v63  ;;  %v11694_v62 = vcombine.high %v278_v60, %v278_v60  ;;  %v14524_v63 = vld [vmem:[%s15887_s29 + $0x540] sm:$0xff]   ;;  %v14583_v60 = vld [vmem:[%s15887_s29 + $0x6a8] sm:$0xff]  }
  0xde   : > { %12992 = vmatprep.subr.bf16.mxu1 %v14465_v0  ;;  %v14525_v0 = vld [vmem:[%s15887_s29 + $0x5c0] sm:$0xff]  }
  0xe0   : > { %12971 = vmatpush3.bf16.msra.mxu0 %v14466_v1  ;;  %v14526_v1 = vld [vmem:[%s15887_s29 + $0x500] sm:$0xff]  }
  0xe1   : > { %12993 = vmatpush3.bf16.msra.mxu1 %v14467_v2  ;;  %12972 = vmatprep.subr.bf16.mxu0 %v14468_v3  ;;  %v14527_v2 = vld [vmem:[%s15887_s29 + $0x580] sm:$0xff]   ;;  %v14528_v3 = vld [vmem:[%s15887_s29 + $0x548] sm:$0xff]  }
  0xe2   : > { %12994 = vmatprep.subr.bf16.mxu1 %v14469_v4  ;;  %v14529_v4 = vld [vmem:[%s15887_s29 + $0x5c8] sm:$0xff]  }
  0xe4   : > { %12973 = vmatpush3.bf16.msra.mxu0 %v14470_v5  ;;  %v14530_v5 = vld [vmem:[%s15887_s29 + $0x508] sm:$0xff]  }
  0xe5   : > { %12995 = vmatpush3.bf16.msra.mxu1 %v14471_v6  ;;  %12974 = vmatprep.subr.bf16.mxu0 %v14472_v7  ;;  %v14531_v6 = vld [vmem:[%s15887_s29 + $0x588] sm:$0xff]   ;;  %v14532_v7 = vld [vmem:[%s15887_s29 + $0x550] sm:$0xff]  }
  0xe6   : > { %12996 = vmatprep.subr.bf16.mxu1 %v14473_v8  ;;  %v14533_v8 = vld [vmem:[%s15887_s29 + $0x5d0] sm:$0xff]  }
  0xe8   : > { %12975 = vmatpush3.bf16.msra.mxu0 %v14474_v9  ;;  %v14534_v9 = vld [vmem:[%s15887_s29 + $0x510] sm:$0xff]  }
  0xe9   : > { %12997 = vmatpush3.bf16.msra.mxu1 %v14475_v10  ;;  %12976 = vmatprep.subr.bf16.mxu0 %v14476_v11  ;;  %v14535_v10 = vld [vmem:[%s15887_s29 + $0x590] sm:$0xff]   ;;  %v14536_v11 = vld [vmem:[%s15887_s29 + $0x558] sm:$0xff]  }
  0xea   : > { %12998 = vmatprep.subr.bf16.mxu1 %v14477_v12  ;;  %v14537_v12 = vld [vmem:[%s15887_s29 + $0x5d8] sm:$0xff]  }
  0xec   : > { %12977 = vmatpush3.bf16.msra.mxu0 %v14478_v13  ;;  %v14538_v13 = vld [vmem:[%s15887_s29 + $0x518] sm:$0xff]  }
  0xed   : > { %12999 = vmatpush3.bf16.msra.mxu1 %v14479_v14  ;;  %12978 = vmatprep.subr.bf16.mxu0 %v14480_v15  ;;  %v14539_v14 = vld [vmem:[%s15887_s29 + $0x598] sm:$0xff]   ;;  %v14540_v15 = vld [vmem:[%s15887_s29 + $0x560] sm:$0xff]  }
  0xee   : > { %13000 = vmatprep.subr.bf16.mxu1 %v14481_v16  ;;  %v14541_v16 = vld [vmem:[%s15887_s29 + $0x5e0] sm:$0xff]  }
  0xf0   : > { %12979 = vmatpush3.bf16.msra.mxu0 %v14482_v17  ;;  %v14542_v17 = vld [vmem:[%s15887_s29 + $0x520] sm:$0xff]  }
  0xf1   : > { %13001 = vmatpush3.bf16.msra.mxu1 %v14483_v18  ;;  %13008 = vmatprep.subr.bf16.mxu0 %v14488_v24  ;;  %v14543_v18 = vld [vmem:[%s15887_s29 + $0x5a0] sm:$0xff]   ;;  %v14549_v24 = vld [vmem:[%s15887_s29 + $0x5f0] sm:$0xff]  }
  0xf2   : > { %13030 = vmatprep.subr.bf16.mxu1 %v14489_v26  ;;  %v14551_v26 = vld [vmem:[%s15887_s29 + $0x5b0] sm:$0xff]  }
  0xf3   : > { %9246 = vmatmul.mubr.bf16.vlgmr.msra.gmra.mrb[12].mxu0 %v11687_v21  ;;  %v14546_v21 = vld [vmem:[%s15887_s29 + $0x528] sm:$0xff]  }
  0xf4   : > { %9286 = vmatmul.mubr.bf16.vlgmr.msra.gmra.mrb[12].mxu1 %v11689_v23  ;;  %13009 = vmatpush3.bf16.msra.mxu0 %v14490_v27  ;;  %v14548_v23 = vld [vmem:[%s15887_s29 + $0x570] sm:$0xff]   ;;  %v14552_v27 = vld [vmem:[%s15887_s29 + $0x578] sm:$0xff]  }
  0xf5   : > { %13031 = vmatpush3.bf16.msra.mxu1 %v14491_v28  ;;  %13010 = vmatprep.subr.bf16.mxu0 %v14492_v29  ;;  %v14553_v28 = vld [vmem:[%s15887_s29 + $0x5f8] sm:$0xff]  }
  0xf6   : > { %13032 = vmatprep.subr.bf16.mxu1 %v14493_v30  ;;  %9325 = vmatprep.mubr.bf16.mxu0 %v11692_v59  ;;  %v14554_v29 = vld [vmem:[%s15887_s29 + $0x538] sm:$0xff]   ;;  %v14582_v59 = vld [vmem:[%s15887_s29 + $0x628] sm:$0xff]  }
  0xf7   : > { %9365 = vmatprep.mubr.bf16.mxu1 %v11694_v62  ;;  %v14555_v30 = vld [vmem:[%s15887_s29 + $0x5b8] sm:$0xff]   ;;  %v14585_v62 = vld [vmem:[%s15887_s29 + $0x6f0] sm:$0xff]  }
  0xf8   : > { %13011 = vmatpush3.bf16.msra.mxu0 %v14494_v31  ;;  %v279_v31 = vld [vmem:[%s15911_s25 + $0x50] sm:$0xff] }
  0xf9   : > { %13033 = vmatpush3.bf16.msra.mxu1 %v14495_v32  ;;  %13012 = vmatprep.subr.bf16.mxu0 %v14496_v33  ;;  %v280_v32 = vld [vmem:[%s15911_s25 + $0x58] sm:$0xff]  ;;  %v11695_v33 = vcombine.low %v279_v31, %v279_v31 }
  0xfa   : > { %13034 = vmatprep.subr.bf16.mxu1 %v14497_v34  ;;  %v11696_v34 = vcombine.high %v279_v31, %v279_v31  ;;  %v14615_v31 = vld [vmem:[%s15887_s29 + $0x7a0] sm:$0xff]  }
  0xfc   : > { %13013 = vmatpush3.bf16.msra.mxu0 %v14498_v35  ;;  %v11697_v35 = vcombine.low %v280_v32, %v280_v32 }
  0xfd   : > { %13035 = vmatpush3.bf16.msra.mxu1 %v14499_v36  ;;  %13014 = vmatprep.subr.bf16.mxu0 %v14500_v37  ;;  %v11698_v36 = vcombine.high %v280_v32, %v280_v32  ;;  %v14560_v37 = vld [vmem:[%s15887_s29 + $0x640] sm:$0xff]  }
  0xfe   : > { %13036 = vmatprep.subr.bf16.mxu1 %v14501_v38  ;;  %v14561_v38 = vld [vmem:[%s15887_s29 + $0x6c0] sm:$0xff]  }
 0x100   : > { %13015 = vmatpush3.bf16.msra.mxu0 %v14502_v39  ;;  %v14562_v39 = vld [vmem:[%s15887_s29 + $0x600] sm:$0xff]  }
 0x101   : > { %13037 = vmatpush3.bf16.msra.mxu1 %v14503_v40  ;;  %13016 = vmatprep.subr.bf16.mxu0 %v14504_v41  ;;  %v14563_v40 = vld [vmem:[%s15887_s29 + $0x680] sm:$0xff]   ;;  %v14564_v41 = vld [vmem:[%s15887_s29 + $0x648] sm:$0xff]  }
 0x102   : > { %13038 = vmatprep.subr.bf16.mxu1 %v14505_v42  ;;  %v14565_v42 = vld [vmem:[%s15887_s29 + $0x6c8] sm:$0xff]  }
 0x104   : > { %13017 = vmatpush3.bf16.msra.mxu0 %v14506_v43  ;;  %v14566_v43 = vld [vmem:[%s15887_s29 + $0x608] sm:$0xff]  }
 0x105   : > { %13039 = vmatpush3.bf16.msra.mxu1 %v14507_v44  ;;  %13018 = vmatprep.subr.bf16.mxu0 %v14508_v45  ;;  %v14567_v44 = vld [vmem:[%s15887_s29 + $0x688] sm:$0xff]   ;;  %v14568_v45 = vld [vmem:[%s15887_s29 + $0x650] sm:$0xff]  }
 0x106   : > { %13040 = vmatprep.subr.bf16.mxu1 %v14509_v46  ;;  %v14569_v46 = vld [vmem:[%s15887_s29 + $0x6d0] sm:$0xff]  }
 0x108   : > { %13019 = vmatpush3.bf16.msra.mxu0 %v14510_v47  ;;  %v14570_v47 = vld [vmem:[%s15887_s29 + $0x610] sm:$0xff]  }
 0x109   : > { %13041 = vmatpush3.bf16.msra.mxu1 %v14511_v48  ;;  %13020 = vmatprep.subr.bf16.mxu0 %v14512_v49  ;;  %v14571_v48 = vld [vmem:[%s15887_s29 + $0x690] sm:$0xff]   ;;  %v14572_v49 = vld [vmem:[%s15887_s29 + $0x658] sm:$0xff]  }
 0x10a   : > { %13042 = vmatprep.subr.bf16.mxu1 %v14513_v50  ;;  %v14573_v50 = vld [vmem:[%s15887_s29 + $0x6d8] sm:$0xff]  }
 0x10c   : > { %13021 = vmatpush3.bf16.msra.mxu0 %v14514_v51  ;;  %v14574_v51 = vld [vmem:[%s15887_s29 + $0x618] sm:$0xff]  }
 0x10d   : > { %13043 = vmatpush3.bf16.msra.mxu1 %v14515_v52  ;;  %13022 = vmatprep.subr.bf16.mxu0 %v14516_v53  ;;  %v14575_v52 = vld [vmem:[%s15887_s29 + $0x698] sm:$0xff]   ;;  %v14576_v53 = vld [vmem:[%s15887_s29 + $0x660] sm:$0xff]  }
 0x10e   : > { %13044 = vmatprep.subr.bf16.mxu1 %v14517_v54  ;;  %v14577_v54 = vld [vmem:[%s15887_s29 + $0x6e0] sm:$0xff]  }
 0x110   : > { %13023 = vmatpush3.bf16.msra.mxu0 %v14518_v55  ;;  %v14578_v55 = vld [vmem:[%s15887_s29 + $0x620] sm:$0xff]  }
 0x111   : > { %13045 = vmatpush3.bf16.msra.mxu1 %v14519_v56  ;;  %13052 = vmatprep.subr.bf16.mxu0 %v14524_v63  ;;  %v14579_v56 = vld [vmem:[%s15887_s29 + $0x6a0] sm:$0xff]   ;;  %v14586_v63 = vld [vmem:[%s15887_s29 + $0x630] sm:$0xff]  }
 0x112   : > { %13074 = vmatprep.subr.bf16.mxu1 %v14525_v0  ;;  %v14587_v0 = vld [vmem:[%s15887_s29 + $0x6b0] sm:$0xff]  }
 0x113   : > { %9326 = vmatmul.mubr.bf16.vlgmr.msra.gmra.mrb[16].mxu0 %v11691_v58  ;;  %v14581_v58 = vld [vmem:[%s15887_s29 + $0x6e8] sm:$0xff]  }
 0x114   : > { %9366 = vmatmul.mubr.bf16.vlgmr.msra.gmra.mrb[16].mxu1 %v11693_v61  ;;  %13053 = vmatpush3.bf16.msra.mxu0 %v14526_v1  ;;  %v14584_v61 = vld [vmem:[%s15887_s29 + $0x670] sm:$0xff]   ;;  %v14588_v1 = vld [vmem:[%s15887_s29 + $0x678] sm:$0xff]  }
 0x115   : > { %13075 = vmatpush3.bf16.msra.mxu1 %v14527_v2  ;;  %13054 = vmatprep.subr.bf16.mxu0 %v14528_v3  ;;  %v14589_v2 = vld [vmem:[%s15887_s29 + $0x6f8] sm:$0xff]  }
 0x116   : > { %13076 = vmatprep.subr.bf16.mxu1 %v14529_v4  ;;  %9405 = vmatprep.mubr.bf16.mxu0 %v11696_v34  ;;  %v14590_v3 = vld [vmem:[%s15887_s29 + $0x638] sm:$0xff]   ;;  %v14616_v34 = vld [vmem:[%s15887_s29 + $0x768] sm:$0xff]  }
 0x117   : > { %9445 = vmatprep.mubr.bf16.mxu1 %v11698_v36  ;;  %v14591_v4 = vld [vmem:[%s15887_s29 + $0x6b8] sm:$0xff]  }
 0x118   : > { %13055 = vmatpush3.bf16.msra.mxu0 %v14530_v5  ;;  %v281_v5 = vld [vmem:[%s15911_s25 + $0x60] sm:$0xff] }
 0x119   : > { %13077 = vmatpush3.bf16.msra.mxu1 %v14531_v6  ;;  %13056 = vmatprep.subr.bf16.mxu0 %v14532_v7  ;;  %v282_v6 = vld [vmem:[%s15911_s25 + $0x68] sm:$0xff]  ;;  %v11699_v7 = vcombine.low %v281_v5, %v281_v5 }
 0x11a   : > { %13078 = vmatprep.subr.bf16.mxu1 %v14533_v8  ;;  %v11700_v8 = vcombine.high %v281_v5, %v281_v5  ;;  %v14641_v5 = vld [vmem:[%s15887_s29 + $0x8d0] sm:$0xff]  }
 0x11c   : > { %13057 = vmatpush3.bf16.msra.mxu0 %v14534_v9  ;;  %v11701_v9 = vcombine.low %v282_v6, %v282_v6 }
 0x11d   : > { %13079 = vmatpush3.bf16.msra.mxu1 %v14535_v10  ;;  %13058 = vmatprep.subr.bf16.mxu0 %v14536_v11  ;;  %v14596_v10 = vld [vmem:[%s15887_s29 + $0x740] sm:$0xff]   ;;  %v11702_v11 = vcombine.high %v282_v6, %v282_v6  ;;  %v14642_v6 = vld [vmem:[%s15887_s29 + $0x810] sm:$0xff]  }
 0x11e   : > { %13080 = vmatprep.subr.bf16.mxu1 %v14537_v12  ;;  %v14597_v12 = vld [vmem:[%s15887_s29 + $0x7c0] sm:$0xff]  }
 0x120   : > { %13059 = vmatpush3.bf16.msra.mxu0 %v14538_v13  ;;  %v14598_v13 = vld [vmem:[%s15887_s29 + $0x700] sm:$0xff]  }
 0x121   : > { %13081 = vmatpush3.bf16.msra.mxu1 %v14539_v14  ;;  %13060 = vmatprep.subr.bf16.mxu0 %v14540_v15  ;;  %v14599_v14 = vld [vmem:[%s15887_s29 + $0x780] sm:$0xff]   ;;  %v14600_v15 = vld [vmem:[%s15887_s29 + $0x748] sm:$0xff]  }
 0x122   : > { %13082 = vmatprep.subr.bf16.mxu1 %v14541_v16  ;;  %v14601_v16 = vld [vmem:[%s15887_s29 + $0x7c8] sm:$0xff]  }
 0x124   : > { %13061 = vmatpush3.bf16.msra.mxu0 %v14542_v17  ;;  %v14602_v17 = vld [vmem:[%s15887_s29 + $0x708] sm:$0xff]  }
 0x125   : > { %13083 = vmatpush3.bf16.msra.mxu1 %v14543_v18  ;;  %13062 = vmatprep.subr.bf16.mxu0 %v14544_v19  ;;  %v14603_v18 = vld [vmem:[%s15887_s29 + $0x788] sm:$0xff]   ;;  %v14604_v19 = vld [vmem:[%s15887_s29 + $0x750] sm:$0xff]  }
 0x126   : > { %13084 = vmatprep.subr.bf16.mxu1 %v14545_v20  ;;  %v14605_v20 = vld [vmem:[%s15887_s29 + $0x7d0] sm:$0xff]  }
 0x128   : > { %13063 = vmatpush3.bf16.msra.mxu0 %v14546_v21  ;;  %v14606_v21 = vld [vmem:[%s15887_s29 + $0x710] sm:$0xff]  }
 0x129   : > { %13085 = vmatpush3.bf16.msra.mxu1 %v14547_v22  ;;  %13064 = vmatprep.subr.bf16.mxu0 %v14548_v23  ;;  %v14607_v22 = vld [vmem:[%s15887_s29 + $0x790] sm:$0xff]   ;;  %v14608_v23 = vld [vmem:[%s15887_s29 + $0x758] sm:$0xff]  }
 0x12a   : > { %13086 = vmatprep.subr.bf16.mxu1 %v14549_v24  ;;  %v14609_v24 = vld [vmem:[%s15887_s29 + $0x7d8] sm:$0xff]  }
 0x12c   : > { %13065 = vmatpush3.bf16.msra.mxu0 %v14550_v25  ;;  %v14610_v25 = vld [vmem:[%s15887_s29 + $0x718] sm:$0xff]  }
 0x12d   : > { %13087 = vmatpush3.bf16.msra.mxu1 %v14551_v26  ;;  %13066 = vmatprep.subr.bf16.mxu0 %v14552_v27  ;;  %v14611_v26 = vld [vmem:[%s15887_s29 + $0x798] sm:$0xff]   ;;  %v14612_v27 = vld [vmem:[%s15887_s29 + $0x760] sm:$0xff]  }
 0x12e   : > { %13088 = vmatprep.subr.bf16.mxu1 %v14553_v28  ;;  %v14613_v28 = vld [vmem:[%s15887_s29 + $0x7e0] sm:$0xff]  }
 0x130   : > { %13067 = vmatpush3.bf16.msra.mxu0 %v14554_v29  ;;  %v14614_v29 = vld [vmem:[%s15887_s29 + $0x720] sm:$0xff]  }
 0x131   : > { %13089 = vmatpush3.bf16.msra.mxu1 %v14555_v30  ;;  %13096 = vmatprep.subr.bf16.mxu0 %v14560_v37  ;;  %v14617_v37 = vld [vmem:[%s15887_s29 + $0x7e8] sm:$0xff]  }
 0x132   : > { %13118 = vmatprep.subr.bf16.mxu1 %v14561_v38 }
 0x133   : > { %9406 = vmatmul.mubr.bf16.vlgmr.msra.gmra.mrb[20].mxu0 %v11695_v33 }
 0x134   : > { %9446 = vmatmul.mubr.bf16.vlgmr.msra.gmra.mrb[20].mxu1 %v11697_v35  ;;  %13097 = vmatpush3.bf16.msra.mxu0 %v14562_v39 }
 0x135   : > { %13119 = vmatpush3.bf16.msra.mxu1 %v14563_v40  ;;  %13098 = vmatprep.subr.bf16.mxu0 %v14564_v41  ;;  %v14618_v41 = vld [vmem:[%s15887_s29 + $0x728] sm:$0xff]  }
 0x136   : > { %13120 = vmatprep.subr.bf16.mxu1 %v14565_v42  ;;  %9485 = vmatprep.mubr.bf16.mxu0 %v11700_v8  ;;  %v14644_v8 = vld [vmem:[%s15887_s29 + $0x858] sm:$0xff]  }
 0x137   : > { %9525 = vmatprep.mubr.bf16.mxu1 %v11702_v11  ;;  %v14647_v11 = vld [vmem:[%s15887_s29 + $0x898] sm:$0xff]  }
 0x138   : > { %13099 = vmatpush3.bf16.msra.mxu0 %v14566_v43 }
 0x139   : > { %13121 = vmatpush3.bf16.msra.mxu1 %v14567_v44  ;;  %13100 = vmatprep.subr.bf16.mxu0 %v14568_v45  ;;  %v14619_v44 = vld [vmem:[%s15887_s29 + $0x7a8] sm:$0xff]  }
 0x13a   : > { %13122 = vmatprep.subr.bf16.mxu1 %v14569_v46  ;;  %v14620_v46 = vld [vmem:[%s15887_s29 + $0x770] sm:$0xff]  }
 0x13c   : > { %13101 = vmatpush3.bf16.msra.mxu0 %v14570_v47  ;;  %v14621_v47 = vld [vmem:[%s15887_s29 + $0x7f0] sm:$0xff]  }
 0x13d   : > { %13123 = vmatpush3.bf16.msra.mxu1 %v14571_v48  ;;  %13102 = vmatprep.subr.bf16.mxu0 %v14572_v49  ;;  %v14622_v48 = vld [vmem:[%s15887_s29 + $0x730] sm:$0xff]  }
 0x13e   : > { %13124 = vmatprep.subr.bf16.mxu1 %v14573_v50  ;;  %v14623_v49 = vld [vmem:[%s15887_s29 + $0x7b0] sm:$0xff]   ;;  %v14624_v50 = vld [vmem:[%s15887_s29 + $0x778] sm:$0xff]  }
 0x140   : > { %13103 = vmatpush3.bf16.msra.mxu0 %v14574_v51  ;;  %v14625_v51 = vld [vmem:[%s15887_s29 + $0x7f8] sm:$0xff]  }
 0x141   : > { %13125 = vmatpush3.bf16.msra.mxu1 %v14575_v52  ;;  %13104 = vmatprep.subr.bf16.mxu0 %v14576_v53  ;;  %v14626_v52 = vld [vmem:[%s15887_s29 + $0x738] sm:$0xff]  }
 0x142   : > { %13126 = vmatprep.subr.bf16.mxu1 %v14577_v54  ;;  %v14627_v53 = vld [vmem:[%s15887_s29 + $0x7b8] sm:$0xff]   ;;  %v283_v54 = vld [vmem:[%s15911_s25 + $0x70] sm:$0xff] }
 0x144   : > { %13105 = vmatpush3.bf16.msra.mxu0 %v14578_v55  ;;  %v284_v55 = vld [vmem:[%s15911_s25 + $0x78] sm:$0xff] }
 0x145   : > { %13127 = vmatpush3.bf16.msra.mxu1 %v14579_v56  ;;  %13106 = vmatprep.subr.bf16.mxu0 %v14580_v57  ;;  %v11703_v56 = vcombine.low %v283_v54, %v283_v54  ;;  %v11704_v57 = vcombine.high %v283_v54, %v283_v54  ;;  %v14676_v54 = vld [vmem:[%s15887_s29 + $0x950] sm:$0xff]  }
 0x146   : > { %13128 = vmatprep.subr.bf16.mxu1 %v14581_v58  ;;  %v11705_v58 = vcombine.low %v284_v55, %v284_v55 }
 0x148   : > { %13107 = vmatpush3.bf16.msra.mxu0 %v14582_v59  ;;  %v14632_v59 = vld [vmem:[%s15887_s29 + $0x840] sm:$0xff]  }
 0x149   : > { %13129 = vmatpush3.bf16.msra.mxu1 %v14583_v60  ;;  %13108 = vmatprep.subr.bf16.mxu0 %v14584_v61  ;;  %v11706_v60 = vcombine.high %v284_v55, %v284_v55  ;;  %v14633_v61 = vld [vmem:[%s15887_s29 + $0x8c0] sm:$0xff]   ;;  %v14677_v55 = vld [vmem:[%s15887_s29 + $0x9d0] sm:$0xff]  }
 0x14a   : > { %13130 = vmatprep.subr.bf16.mxu1 %v14585_v62  ;;  %v14634_v62 = vld [vmem:[%s15887_s29 + $0x800] sm:$0xff]  }
 0x14c   : > { %13109 = vmatpush3.bf16.msra.mxu0 %v14586_v63  ;;  %v14635_v63 = vld [vmem:[%s15887_s29 + $0x880] sm:$0xff]  }
 0x14d   : > { %13131 = vmatpush3.bf16.msra.mxu1 %v14587_v0  ;;  %13110 = vmatprep.subr.bf16.mxu0 %v14588_v1  ;;  %v14636_v0 = vld [vmem:[%s15887_s29 + $0x848] sm:$0xff]  }
 0x14e   : > { %13132 = vmatprep.subr.bf16.mxu1 %v14589_v2  ;;  %v14637_v1 = vld [vmem:[%s15887_s29 + $0x8c8] sm:$0xff]  }
 0x14f   : > { %v14638_v2 = vld [vmem:[%s15887_s29 + $0x808] sm:$0xff]  }
 0x150   : > { %13111 = vmatpush3.bf16.msra.mxu0 %v14590_v3  ;;  %v14639_v3 = vld [vmem:[%s15887_s29 + $0x888] sm:$0xff]  }
 0x151   : > { %13133 = vmatpush3.bf16.msra.mxu1 %v14591_v4  ;;  %13140 = vmatprep.subr.bf16.mxu0 %v14596_v10  ;;  %v14640_v4 = vld [vmem:[%s15887_s29 + $0x850] sm:$0xff]   ;;  %v14646_v10 = vld [vmem:[%s15887_s29 + $0x818] sm:$0xff]  }
 0x152   : > { %13162 = vmatprep.subr.bf16.mxu1 %v14597_v12  ;;  %v14648_v12 = vld [vmem:[%s15887_s29 + $0x860] sm:$0xff]  }
 0x153   : > { %9486 = vmatmul.mubr.bf16.vlgmr.msra.gmra.mrb[24].mxu0 %v11699_v7  ;;  %v14643_v7 = vld [vmem:[%s15887_s29 + $0x890] sm:$0xff]  }
 0x154   : > { %9526 = vmatmul.mubr.bf16.vlgmr.msra.gmra.mrb[24].mxu1 %v11701_v9  ;;  %13141 = vmatpush3.bf16.msra.mxu0 %v14598_v13  ;;  %v14645_v9 = vld [vmem:[%s15887_s29 + $0x8d8] sm:$0xff]   ;;  %v14649_v13 = vld [vmem:[%s15887_s29 + $0x8e0] sm:$0xff]  }
 0x155   : > { %13163 = vmatpush3.bf16.msra.mxu1 %v14599_v14  ;;  %13142 = vmatprep.subr.bf16.mxu0 %v14600_v15  ;;  %v14650_v14 = vld [vmem:[%s15887_s29 + $0x820] sm:$0xff]  }
 0x156   : > { %13164 = vmatprep.subr.bf16.mxu1 %v14601_v16  ;;  %9565 = vmatprep.mubr.bf16.mxu0 %v11704_v57  ;;  %v14651_v16 = vld [vmem:[%s15887_s29 + $0x8a0] sm:$0xff]   ;;  %v14679_v57 = vld [vmem:[%s15887_s29 + $0x990] sm:$0xff]  }
 0x157   : > { %9605 = vmatprep.mubr.bf16.mxu1 %v11706_v60  ;;  %v14682_v60 = vld [vmem:[%s15887_s29 + $0x918] sm:$0xff]  }
 0x158   : > { %13143 = vmatpush3.bf16.msra.mxu0 %v14602_v17 }
 0x159   : > { %13165 = vmatpush3.bf16.msra.mxu1 %v14603_v18  ;;  %13144 = vmatprep.subr.bf16.mxu0 %v14604_v19  ;;  %v14652_v19 = vld [vmem:[%s15887_s29 + $0x868] sm:$0xff]  }
 0x15a   : > { %13166 = vmatprep.subr.bf16.mxu1 %v14605_v20 }
 0x15c   : > { %13145 = vmatpush3.bf16.msra.mxu0 %v14606_v21 }
 0x15d   : > { %13167 = vmatpush3.bf16.msra.mxu1 %v14607_v22  ;;  %13146 = vmatprep.subr.bf16.mxu0 %v14608_v23  ;;  %v14653_v22 = vld [vmem:[%s15887_s29 + $0x8e8] sm:$0xff]  }
 0x15e   : > { %13168 = vmatprep.subr.bf16.mxu1 %v14609_v24 }
 0x160   : > { %13147 = vmatpush3.bf16.msra.mxu0 %v14610_v25 }
 0x161   : > { %13169 = vmatpush3.bf16.msra.mxu1 %v14611_v26  ;;  %13148 = vmatprep.subr.bf16.mxu0 %v14612_v27  ;;  %v14654_v27 = vld [vmem:[%s15887_s29 + $0x828] sm:$0xff]  }
 0x162   : > { %13170 = vmatprep.subr.bf16.mxu1 %v14613_v28 }
 0x164   : > { %13149 = vmatpush3.bf16.msra.mxu0 %v14614_v29  ;;  %v14655_v29 = vld [vmem:[%s15887_s29 + $0x8a8] sm:$0xff]  }
 0x165   : > { %13171 = vmatpush3.bf16.msra.mxu1 %v14615_v31  ;;  %13150 = vmatprep.subr.bf16.mxu0 %v14616_v34  ;;  %v14658_v34 = vld [vmem:[%s15887_s29 + $0x830] sm:$0xff]  }
 0x166   : > { %v12848_v30 = vpop.f32.mrb[0].mxu0  ;;  %13172 = vmatprep.subr.bf16.mxu1 %v14617_v37  ;;  %v14661_v37 = vld [vmem:[%s15887_s29 + $0x8f8] sm:$0xff]  }
 0x167   : > { %v12870_v32 = vpop.f32.mrb[0].mxu1  ;;  %v12849_v33 = vpop.f32.mrb[1].mxu0 }
 0x168   : > { %v12850_v35 = vadd.f32 %v12849_v33, %v12848_v30  ;;  %v12871_v36 = vpop.f32.mrb[1].mxu1  ;;  %v12851_v39 = vpop.f32.mrb[2].mxu0  ;;  %13151 = vmatpush3.bf16.msra.mxu0 %v14618_v41  ;;  %v14657_v33 = vld [vmem:[%s15887_s29 + $0x8f0] sm:$0xff]   ;;  %v286_v41 = vld [vmem:[%s15911_s25 + $0x88] sm:$0xff] }
 0x169   : > { %v12872_v38 = vadd.f32 %v12871_v36, %v12870_v32  ;;  %v12873_v40 = vpop.f32.mrb[2].mxu1  ;;  %v12852_v42 = vpop.f32.mrb[3].mxu0  ;;  %13173 = vmatpush3.bf16.msra.mxu1 %v14619_v44  ;;  %13152 = vmatprep.subr.bf16.mxu0 %v14620_v46  ;;  %v14656_v32 = vld [vmem:[%s15887_s29 + $0x870] sm:$0xff]   ;;  %v14660_v36 = vld [vmem:[%s15887_s29 + $0x878] sm:$0xff]   ;;  %v11709_v44 = vcombine.low %v286_v41, %v286_v41  ;;  %v11710_v46 = vcombine.high %v286_v41, %v286_v41 }
 0x16a   : > { %v12874_v45 = vpop.f32.mrb[3].mxu1  ;;  %13174 = vmatprep.subr.bf16.mxu1 %v14621_v47  ;;  %v14663_v39 = vld [vmem:[%s15887_s29 + $0x8b8] sm:$0xff]   ;;  %v14669_v47 = vld [vmem:[%s15887_s29 + $0x9c0] sm:$0xff]   ;;  %v14713_v41 = vld [vmem:[%s15887_s29 + $0xad0] sm:$0xff]  }
 0x16b   : > { %v16175_v43 = vadd.f32 %v12872_v38, %v12850_v35  ;;  %v14659_v35 = vld [vmem:[%s15887_s29 + $0x8b0] sm:$0xff]   ;;  %v14662_v38 = vld [vmem:[%s15887_s29 + $0x838] sm:$0xff]   ;;  %v14668_v45 = vld [vmem:[%s15887_s29 + $0x940] sm:$0xff]  }
 0x16c   : > { %13153 = vmatpush3.bf16.msra.mxu0 %v14622_v48  ;;  %v285_v40 = vld [vmem:[%s15911_s25 + $0x80] sm:$0xff]  ;;  %v14670_v48 = vld [vmem:[%s15887_s29 + $0x900] sm:$0xff]  }
 0x16d   : > { %13175 = vmatpush3.bf16.msra.mxu1 %v14623_v49  ;;  %13154 = vmatprep.subr.bf16.mxu0 %v14624_v50  ;;  %v11707_v42 = vcombine.low %v285_v40, %v285_v40  ;;  %v14671_v49 = vld [vmem:[%s15887_s29 + $0x980] sm:$0xff]   ;;  %v14672_v50 = vld [vmem:[%s15887_s29 + $0x948] sm:$0xff]  }
 0x16e   : > { %13176 = vmatprep.subr.bf16.mxu1 %v14625_v51  ;;  %v14673_v51 = vld [vmem:[%s15887_s29 + $0x9c8] sm:$0xff]  }
 0x170   : > { %13155 = vmatpush3.bf16.msra.mxu0 %v14626_v52  ;;  %v14674_v52 = vld [vmem:[%s15887_s29 + $0x908] sm:$0xff]  }
 0x171   : > { %13177 = vmatpush3.bf16.msra.mxu1 %v14627_v53  ;;  %13184 = vmatprep.subr.bf16.mxu0 %v14632_v59  ;;  %v14675_v53 = vld [vmem:[%s15887_s29 + $0x988] sm:$0xff]   ;;  %v14681_v59 = vld [vmem:[%s15887_s29 + $0x9d8] sm:$0xff]  }
 0x172   : > { %13206 = vmatprep.subr.bf16.mxu1 %v14633_v61  ;;  %v14683_v61 = vld [vmem:[%s15887_s29 + $0x998] sm:$0xff]  }
 0x173   : > { %9566 = vmatmul.mubr.bf16.vlgmr.msra.gmra.mrb[28].mxu0 %v11703_v56  ;;  %v14678_v56 = vld [vmem:[%s15887_s29 + $0x910] sm:$0xff]  }
 0x174   : > { %9606 = vmatmul.mubr.bf16.vlgmr.msra.gmra.mrb[28].mxu1 %v11705_v58  ;;  %13185 = vmatpush3.bf16.msra.mxu0 %v14634_v62  ;;  %v14680_v58 = vld [vmem:[%s15887_s29 + $0x958] sm:$0xff]   ;;  %v14684_v62 = vld [vmem:[%s15887_s29 + $0x960] sm:$0xff]  }
 0x175   : > { %13207 = vmatpush3.bf16.msra.mxu1 %v14635_v63  ;;  %13186 = vmatprep.subr.bf16.mxu0 %v14636_v0  ;;  %v14685_v63 = vld [vmem:[%s15887_s29 + $0x9e0] sm:$0xff]  }
 0x176   : > { %13208 = vmatprep.subr.bf16.mxu1 %v14637_v1  ;;  %9685 = vmatprep.mubr.bf16.mxu1 %v11710_v46  ;;  %v14686_v1 = vld [vmem:[%s15887_s29 + $0x920] sm:$0xff]   ;;  %v14718_v46 = vld [vmem:[%s15887_s29 + $0xa18] sm:$0xff]  }
 0x178   : > { %13187 = vmatpush3.bf16.msra.mxu0 %v14638_v2 }
 0x179   : > { %13209 = vmatpush3.bf16.msra.mxu1 %v14639_v3  ;;  %13188 = vmatprep.subr.bf16.mxu0 %v14640_v4  ;;  %v14687_v3 = vld [vmem:[%s15887_s29 + $0x9a0] sm:$0xff]  }
 0x17a   : > { %13210 = vmatprep.subr.bf16.mxu1 %v14641_v5 }
 0x17c   : > { %13189 = vmatpush3.bf16.msra.mxu0 %v14642_v6  ;;  %v14688_v6 = vld [vmem:[%s15887_s29 + $0x968] sm:$0xff]  }
 0x17d   : > { %13211 = vmatpush3.bf16.msra.mxu1 %v14643_v7  ;;  %13190 = vmatprep.subr.bf16.mxu0 %v14644_v8 }
 0x17e   : > { %13212 = vmatprep.subr.bf16.mxu1 %v14645_v9  ;;  %v14689_v9 = vld [vmem:[%s15887_s29 + $0x9e8] sm:$0xff]  }
 0x180   : > { %13191 = vmatpush3.bf16.msra.mxu0 %v14646_v10 }
 0x181   : > { %13213 = vmatpush3.bf16.msra.mxu1 %v14647_v11  ;;  %13192 = vmatprep.subr.bf16.mxu0 %v14648_v12  ;;  %v14690_v12 = vld [vmem:[%s15887_s29 + $0x928] sm:$0xff]  }
 0x182   : > { %13214 = vmatprep.subr.bf16.mxu1 %v14649_v13 }
 0x184   : > { %13193 = vmatpush3.bf16.msra.mxu0 %v14650_v14  ;;  %v14691_v14 = vld [vmem:[%s15887_s29 + $0x9a8] sm:$0xff]  }
 0x185   : > { %13215 = vmatpush3.bf16.msra.mxu1 %v14651_v16  ;;  %13194 = vmatprep.subr.bf16.mxu0 %v14652_v19  ;;  %v14693_v19 = vld [vmem:[%s15887_s29 + $0x9f0] sm:$0xff]  }
 0x186   : > { %v12892_v15 = vpop.f32.mrb[4].mxu0  ;;  %13216 = vmatprep.subr.bf16.mxu1 %v14653_v22  ;;  %v14696_v22 = vld [vmem:[%s15887_s29 + $0x978] sm:$0xff]  }
 0x187   : > { %v12914_v17 = vpop.f32.mrb[4].mxu1  ;;  %v12893_v18 = vpop.f32.mrb[5].mxu0 }
 0x188   : > { %v12894_v20 = vadd.f32 %v12893_v18, %v12892_v15  ;;  %v12915_v21 = vpop.f32.mrb[5].mxu1  ;;  %v12895_v24 = vpop.f32.mrb[6].mxu0  ;;  %13195 = vmatpush3.bf16.msra.mxu0 %v14654_v27 }
 0x189   : > { %v12916_v23 = vadd.f32 %v12915_v21, %v12914_v17  ;;  %v12917_v25 = vpop.f32.mrb[6].mxu1  ;;  %v12896_v28 = vpop.f32.mrb[7].mxu0  ;;  %13217 = vmatpush3.bf16.msra.mxu1 %v14655_v29  ;;  %13196 = vmatprep.subr.bf16.mxu0 %v14656_v32  ;;  %v14692_v17 = vld [vmem:[%s15887_s29 + $0x970] sm:$0xff]   ;;  %v14698_v24 = vld [vmem:[%s15887_s29 + $0x938] sm:$0xff]   ;;  %v14704_v32 = vld [vmem:[%s15887_s29 + $0xa40] sm:$0xff]  }
 0x18a   : > { %v9088_v26 = vadd.f32 %v12894_v20, %v16175_v43  ;;  %v12918_v30 = vpop.f32.mrb[7].mxu1  ;;  %13218 = vmatprep.subr.bf16.mxu1 %v14657_v33  ;;  %v11708_v43 = vcombine.high %v285_v40, %v285_v40  ;;  %v14694_v20 = vld [vmem:[%s15887_s29 + $0x930] sm:$0xff]   ;;  %v14699_v25 = vld [vmem:[%s15887_s29 + $0x9b8] sm:$0xff]   ;;  %v14705_v33 = vld [vmem:[%s15887_s29 + $0xac0] sm:$0xff]  }
 0x18b   : > { %v14695_v21 = vld [vmem:[%s15887_s29 + $0x9b0] sm:$0xff]  }
 0x18c   : > { %v16213_v31 = vadd.f32 %v12916_v23, %v9088_v26  ;;  %13197 = vmatpush3.bf16.msra.mxu0 %v14658_v34  ;;  %9645 = vmatprep.mubr.bf16.mxu0 %v11708_v43  ;;  %v14697_v23 = vld [vmem:[%s15887_s29 + $0x9f8] sm:$0xff]   ;;  %v287_v26 = vld [vmem:[%s15911_s25 + $0x90] sm:$0xff]  ;;  %v288_v29 = vld [vmem:[%s15911_s25 + $0x98] sm:$0xff] }
 0x18d   : > { %13219 = vmatpush3.bf16.msra.mxu1 %v14659_v35  ;;  %13198 = vmatprep.subr.bf16.mxu0 %v14660_v36  ;;  %v11711_v27 = vcombine.low %v287_v26, %v287_v26  ;;  %v11712_v28 = vcombine.high %v287_v26, %v287_v26  ;;  %v11713_v30 = vcombine.low %v288_v29, %v288_v29  ;;  %v14706_v34 = vld [vmem:[%s15887_s29 + $0xa00] sm:$0xff]   ;;  %v14708_v36 = vld [vmem:[%s15887_s29 + $0xa48] sm:$0xff]   ;;  %v14712_v40 = vld [vmem:[%s15887_s29 + $0xa50] sm:$0xff]  }
 0x18e   : > { %13220 = vmatprep.subr.bf16.mxu1 %v14661_v37  ;;  %v14707_v35 = vld [vmem:[%s15887_s29 + $0xa80] sm:$0xff]   ;;  %v14709_v37 = vld [vmem:[%s15887_s29 + $0xac8] sm:$0xff]   ;;  %v14715_v43 = vld [vmem:[%s15887_s29 + $0xa90] sm:$0xff]  }
 0x18f   : > { %v14748_v26 = vld [vmem:[%s15887_s29 + $0xb50] sm:$0xff]  }
 0x190   : > { %13199 = vmatpush3.bf16.msra.mxu0 %v14662_v38  ;;  %v14710_v38 = vld [vmem:[%s15887_s29 + $0xa08] sm:$0xff]  }
 0x191   : > { %13221 = vmatpush3.bf16.msra.mxu1 %v14663_v39  ;;  %13228 = vmatprep.subr.bf16.mxu0 %v14668_v45  ;;  %v14711_v39 = vld [vmem:[%s15887_s29 + $0xa88] sm:$0xff]   ;;  %v14717_v45 = vld [vmem:[%s15887_s29 + $0xad8] sm:$0xff]  }
 0x192   : > { %13250 = vmatprep.subr.bf16.mxu1 %v14669_v47  ;;  %v14719_v47 = vld [vmem:[%s15887_s29 + $0xa98] sm:$0xff]  }
 0x193   : > { %9646 = vmatmul.mubr.bf16.vlgmr.msra.gmra.mrb[32].mxu0 %v11707_v42  ;;  %v14714_v42 = vld [vmem:[%s15887_s29 + $0xa10] sm:$0xff]  }
 0x194   : > { %9686 = vmatmul.mubr.bf16.vlgmr.msra.gmra.mrb[32].mxu1 %v11709_v44  ;;  %13229 = vmatpush3.bf16.msra.mxu0 %v14670_v48  ;;  %v14716_v44 = vld [vmem:[%s15887_s29 + $0xa58] sm:$0xff]   ;;  %v14720_v48 = vld [vmem:[%s15887_s29 + $0xa60] sm:$0xff]  }
 0x195   : > { %13251 = vmatpush3.bf16.msra.mxu1 %v14671_v49  ;;  %13230 = vmatprep.subr.bf16.mxu0 %v14672_v50  ;;  %v14721_v49 = vld [vmem:[%s15887_s29 + $0xae0] sm:$0xff]  }
 0x196   : > { %13252 = vmatprep.subr.bf16.mxu1 %v14673_v51  ;;  %9725 = vmatprep.mubr.bf16.mxu0 %v11712_v28  ;;  %v14722_v51 = vld [vmem:[%s15887_s29 + $0xa20] sm:$0xff]   ;;  %v14750_v28 = vld [vmem:[%s15887_s29 + $0xb10] sm:$0xff]  }
 0x198   : > { %13231 = vmatpush3.bf16.msra.mxu0 %v14674_v52 }
 0x199   : > { %13253 = vmatpush3.bf16.msra.mxu1 %v14675_v53  ;;  %13232 = vmatprep.subr.bf16.mxu0 %v14676_v54  ;;  %v14723_v53 = vld [vmem:[%s15887_s29 + $0xaa0] sm:$0xff]  }
 0x19a   : > { %13254 = vmatprep.subr.bf16.mxu1 %v14677_v55 }
 0x19c   : > { %13233 = vmatpush3.bf16.msra.mxu0 %v14678_v56  ;;  %v14724_v56 = vld [vmem:[%s15887_s29 + $0xa68] sm:$0xff]  }
 0x19d   : > { %13255 = vmatpush3.bf16.msra.mxu1 %v14679_v57  ;;  %13234 = vmatprep.subr.bf16.mxu0 %v14680_v58 }
 0x19e   : > { %13256 = vmatprep.subr.bf16.mxu1 %v14681_v59  ;;  %v14725_v59 = vld [vmem:[%s15887_s29 + $0xae8] sm:$0xff]  }
 0x1a0   : > { %13235 = vmatpush3.bf16.msra.mxu0 %v14682_v60 }
 0x1a1   : > { %13257 = vmatpush3.bf16.msra.mxu1 %v14683_v61  ;;  %13236 = vmatprep.subr.bf16.mxu0 %v14684_v62  ;;  %v14726_v62 = vld [vmem:[%s15887_s29 + $0xa28] sm:$0xff]  }
 0x1a2   : > { %13258 = vmatprep.subr.bf16.mxu1 %v14685_v63 }
 0x1a4   : > { %13237 = vmatpush3.bf16.msra.mxu0 %v14686_v1 }
 0x1a5   : > { %13259 = vmatpush3.bf16.msra.mxu1 %v14687_v3  ;;  %13238 = vmatprep.subr.bf16.mxu0 %v14688_v6  ;;  %v14728_v3 = vld [vmem:[%s15887_s29 + $0xa70] sm:$0xff]  }
 0x1a6   : > { %v12936_v0 = vpop.f32.mrb[8].mxu0  ;;  %13260 = vmatprep.subr.bf16.mxu1 %v14689_v9  ;;  %v14730_v6 = vld [vmem:[%s15887_s29 + $0xa30] sm:$0xff]   ;;  %v14733_v9 = vld [vmem:[%s15887_s29 + $0xaf8] sm:$0xff]  }
 0x1a7   : > { %v12958_v2 = vpop.f32.mrb[8].mxu1  ;;  %v12937_v4 = vpop.f32.mrb[9].mxu0 }
 0x1a8   : > { %v12959_v5 = vpop.f32.mrb[9].mxu1  ;;  %v12938_v7 = vadd.f32 %v12937_v4, %v12936_v0  ;;  %v12939_v10 = vpop.f32.mrb[10].mxu0  ;;  %13239 = vmatpush3.bf16.msra.mxu0 %v14690_v12  ;;  %v14727_v0 = vld [vmem:[%s15887_s29 + $0xaa8] sm:$0xff]   ;;  %v289_v12 = vld [vmem:[%s15911_s25 + $0xa0] sm:$0xff] }
 0x1a9   : > { %v12960_v8 = vadd.f32 %v12959_v5, %v12958_v2  ;;  %v12961_v11 = vpop.f32.mrb[10].mxu1  ;;  %v12940_v15 = vpop.f32.mrb[11].mxu0  ;;  %13261 = vmatpush3.bf16.msra.mxu1 %v14691_v14  ;;  %13240 = vmatprep.subr.bf16.mxu0 %v14692_v17  ;;  %v14729_v5 = vld [vmem:[%s15887_s29 + $0xaf0] sm:$0xff]   ;;  %v14734_v10 = vld [vmem:[%s15887_s29 + $0xa38] sm:$0xff]   ;;  %v11715_v14 = vcombine.low %v289_v12, %v289_v12 }
 0x1aa   : > { %v9168_v13 = vadd.f32 %v12938_v7, %v16213_v31  ;;  %v12962_v16 = vpop.f32.mrb[11].mxu1  ;;  %13262 = vmatprep.subr.bf16.mxu1 %v14693_v19  ;;  %v11714_v31 = vcombine.high %v288_v29, %v288_v29  ;;  %v14731_v7 = vld [vmem:[%s15887_s29 + $0xab0] sm:$0xff]   ;;  %v14735_v11 = vld [vmem:[%s15887_s29 + $0xab8] sm:$0xff]   ;;  %v11716_v15 = vcombine.high %v289_v12, %v289_v12  ;;  %v14741_v19 = vld [vmem:[%s15887_s29 + $0xbc0] sm:$0xff]  }
 0x1ab   : > { %v14751_v29 = vld [vmem:[%s15887_s29 + $0xb90] sm:$0xff]  }
 0x1ac   : > { %v16251_v18 = vadd.f32 %v12960_v8, %v9168_v13  ;;  %13241 = vmatpush3.bf16.msra.mxu0 %v14694_v20  ;;  %9765 = vmatprep.mubr.bf16.mxu1 %v11714_v31  ;;  %v14732_v8 = vld [vmem:[%s15887_s29 + $0xa78] sm:$0xff]   ;;  %v290_v13 = vld [vmem:[%s15911_s25 + $0xa8] sm:$0xff]  ;;  %v14784_v12 = vld [vmem:[%s15887_s29 + $0xc50] sm:$0xff]  }
 0x1ad   : > { %13263 = vmatpush3.bf16.msra.mxu1 %v14695_v21  ;;  %13242 = vmatprep.subr.bf16.mxu0 %v14696_v22  ;;  %v11717_v16 = vcombine.low %v290_v13, %v290_v13  ;;  %v11718_v17 = vcombine.high %v290_v13, %v290_v13  ;;  %v14742_v20 = vld [vmem:[%s15887_s29 + $0xb00] sm:$0xff]   ;;  %v14744_v22 = vld [vmem:[%s15887_s29 + $0xb48] sm:$0xff]   ;;  %v14753_v31 = vld [vmem:[%s15887_s29 + $0xbd8] sm:$0xff]  }
 0x1ae   : > { %13264 = vmatprep.subr.bf16.mxu1 %v14697_v23  ;;  %v14743_v21 = vld [vmem:[%s15887_s29 + $0xb80] sm:$0xff]   ;;  %v14745_v23 = vld [vmem:[%s15887_s29 + $0xbc8] sm:$0xff]   ;;  %v14785_v13 = vld [vmem:[%s15887_s29 + $0xcd0] sm:$0xff]  }
 0x1b0   : > { %13243 = vmatpush3.bf16.msra.mxu0 %v14698_v24  ;;  %v14746_v24 = vld [vmem:[%s15887_s29 + $0xb08] sm:$0xff]  }
 0x1b1   : > { %13265 = vmatpush3.bf16.msra.mxu1 %v14699_v25  ;;  %13272 = vmatprep.subr.bf16.mxu0 %v14704_v32  ;;  %v14747_v25 = vld [vmem:[%s15887_s29 + $0xb88] sm:$0xff]   ;;  %v14754_v32 = vld [vmem:[%s15887_s29 + $0xb18] sm:$0xff]  }
 0x1b2   : > { %13294 = vmatprep.subr.bf16.mxu1 %v14705_v33  ;;  %v14755_v33 = vld [vmem:[%s15887_s29 + $0xb98] sm:$0xff]  }
 0x1b3   : > { %9726 = vmatmul.mubr.bf16.vlgmr.msra.gmra.mrb[36].mxu0 %v11711_v27  ;;  %v14749_v27 = vld [vmem:[%s15887_s29 + $0xbd0] sm:$0xff]  }
 0x1b4   : > { %9766 = vmatmul.mubr.bf16.vlgmr.msra.gmra.mrb[36].mxu1 %v11713_v30  ;;  %13273 = vmatpush3.bf16.msra.mxu0 %v14706_v34  ;;  %v14752_v30 = vld [vmem:[%s15887_s29 + $0xb58] sm:$0xff]   ;;  %v14756_v34 = vld [vmem:[%s15887_s29 + $0xb60] sm:$0xff]  }
 0x1b5   : > { %13295 = vmatpush3.bf16.msra.mxu1 %v14707_v35  ;;  %13274 = vmatprep.subr.bf16.mxu0 %v14708_v36  ;;  %v14757_v35 = vld [vmem:[%s15887_s29 + $0xbe0] sm:$0xff]  }
 0x1b6   : > { %13296 = vmatprep.subr.bf16.mxu1 %v14709_v37  ;;  %9805 = vmatprep.mubr.bf16.mxu0 %v11716_v15  ;;  %v14758_v36 = vld [vmem:[%s15887_s29 + $0xb20] sm:$0xff]   ;;  %v14787_v15 = vld [vmem:[%s15887_s29 + $0xc90] sm:$0xff]  }
 0x1b7   : > { %9845 = vmatprep.mubr.bf16.mxu1 %v11718_v17  ;;  %v14789_v17 = vld [vmem:[%s15887_s29 + $0xcd8] sm:$0xff]  }
 0x1b8   : > { %13275 = vmatpush3.bf16.msra.mxu0 %v14710_v38  ;;  %v14759_v38 = vld [vmem:[%s15887_s29 + $0xba0] sm:$0xff]  }
 0x1b9   : > { %13297 = vmatpush3.bf16.msra.mxu1 %v14711_v39  ;;  %13276 = vmatprep.subr.bf16.mxu0 %v14712_v40 }
 0x1ba   : > { %13298 = vmatprep.subr.bf16.mxu1 %v14713_v41 }
 0x1bc   : > { %13277 = vmatpush3.bf16.msra.mxu0 %v14714_v42 }
 0x1bd   : > { %13299 = vmatpush3.bf16.msra.mxu1 %v14715_v43  ;;  %13278 = vmatprep.subr.bf16.mxu0 %v14716_v44  ;;  %v14760_v44 = vld [vmem:[%s15887_s29 + $0xb68] sm:$0xff]  }
 0x1be   : > { %13300 = vmatprep.subr.bf16.mxu1 %v14717_v45 }
 0x1c0   : > { %13279 = vmatpush3.bf16.msra.mxu0 %v14718_v46  ;;  %v14761_v46 = vld [vmem:[%s15887_s29 + $0xbe8] sm:$0xff]  }
 0x1c1   : > { %13301 = vmatpush3.bf16.msra.mxu1 %v14719_v47  ;;  %13280 = vmatprep.subr.bf16.mxu0 %v14720_v48 }
 0x1c2   : > { %13302 = vmatprep.subr.bf16.mxu1 %v14721_v49  ;;  %v14762_v49 = vld [vmem:[%s15887_s29 + $0xb28] sm:$0xff]  }
 0x1c4   : > { %13281 = vmatpush3.bf16.msra.mxu0 %v14722_v51  ;;  %v14763_v51 = vld [vmem:[%s15887_s29 + $0xba8] sm:$0xff]  }
 0x1c5   : > { %13303 = vmatpush3.bf16.msra.mxu1 %v14723_v53  ;;  %13282 = vmatprep.subr.bf16.mxu0 %v14724_v56  ;;  %v14766_v56 = vld [vmem:[%s15887_s29 + $0xb30] sm:$0xff]  }
 0x1c6   : > { %v12980_v50 = vpop.f32.mrb[12].mxu0  ;;  %13304 = vmatprep.subr.bf16.mxu1 %v14725_v59  ;;  %v14769_v59 = vld [vmem:[%s15887_s29 + $0xbf8] sm:$0xff]  }
 0x1c7   : > { %v13002_v52 = vpop.f32.mrb[12].mxu1  ;;  %v12981_v54 = vpop.f32.mrb[13].mxu0 }
 0x1c8   : > { %v13003_v55 = vpop.f32.mrb[13].mxu1  ;;  %v12982_v57 = vadd.f32 %v12981_v54, %v12980_v50  ;;  %v12983_v60 = vpop.f32.mrb[14].mxu0  ;;  %13283 = vmatpush3.bf16.msra.mxu0 %v14726_v62  ;;  %v14764_v54 = vld [vmem:[%s15887_s29 + $0xb70] sm:$0xff]   ;;  %v291_v62 = vld [vmem:[%s15911_s25 + $0xb0] sm:$0xff] }
 0x1c9   : > { %v13004_v58 = vadd.f32 %v13003_v55, %v13002_v52  ;;  %v13005_v61 = vpop.f32.mrb[14].mxu1  ;;  %v12984_v1 = vpop.f32.mrb[15].mxu0  ;;  %13305 = vmatpush3.bf16.msra.mxu1 %v14727_v0  ;;  %13284 = vmatprep.subr.bf16.mxu0 %v14728_v3  ;;  %v14765_v55 = vld [vmem:[%s15887_s29 + $0xbf0] sm:$0xff]   ;;  %v14770_v60 = vld [vmem:[%s15887_s29 + $0xb38] sm:$0xff]   ;;  %v11719_v0 = vcombine.low %v291_v62, %v291_v62 }
 0x1ca   : > { %v9248_v63 = vadd.f32 %v12982_v57, %v16251_v18  ;;  %v13006_v2 = vpop.f32.mrb[15].mxu1  ;;  %13306 = vmatprep.subr.bf16.mxu1 %v14729_v5  ;;  %v14740_v18 = vld [vmem:[%s15887_s29 + $0xb40] sm:$0xff]   ;;  %v14767_v57 = vld [vmem:[%s15887_s29 + $0xbb0] sm:$0xff]   ;;  %v14771_v61 = vld [vmem:[%s15887_s29 + $0xbb8] sm:$0xff]   ;;  %v11720_v1 = vcombine.high %v291_v62, %v291_v62 }
 0x1cb   : > { %v14777_v5 = vld [vmem:[%s15887_s29 + $0xcc0] sm:$0xff]   ;;  %v14820_v62 = vld [vmem:[%s15887_s29 + $0xd50] sm:$0xff]  }
 0x1cc   : > { %v16288_v4 = vadd.f32 %v13004_v58, %v9248_v63  ;;  %13285 = vmatpush3.bf16.msra.mxu0 %v14730_v6  ;;  %v14768_v58 = vld [vmem:[%s15887_s29 + $0xb78] sm:$0xff]   ;;  %v292_v63 = vld [vmem:[%s15911_s25 + $0xb8] sm:$0xff]  ;;  %v14778_v6 = vld [vmem:[%s15887_s29 + $0xc00] sm:$0xff]  }
 0x1cd   : > { %13307 = vmatpush3.bf16.msra.mxu1 %v14731_v7  ;;  %13286 = vmatprep.subr.bf16.mxu0 %v14732_v8  ;;  %v11721_v2 = vcombine.low %v292_v63, %v292_v63  ;;  %v11722_v3 = vcombine.high %v292_v63, %v292_v63  ;;  %v14779_v7 = vld [vmem:[%s15887_s29 + $0xc80] sm:$0xff]   ;;  %v14780_v8 = vld [vmem:[%s15887_s29 + $0xc48] sm:$0xff]   ;;  %v14821_v63 = vld [vmem:[%s15887_s29 + $0xdd0] sm:$0xff]  }
 0x1ce   : > { %13308 = vmatprep.subr.bf16.mxu1 %v14733_v9  ;;  %v14781_v9 = vld [vmem:[%s15887_s29 + $0xcc8] sm:$0xff]  }
 0x1d0   : > { %13287 = vmatpush3.bf16.msra.mxu0 %v14734_v10  ;;  %v14782_v10 = vld [vmem:[%s15887_s29 + $0xc08] sm:$0xff]  }
 0x1d1   : > { %13309 = vmatpush3.bf16.msra.mxu1 %v14735_v11  ;;  %13316 = vmatprep.subr.bf16.mxu0 %v14740_v18  ;;  %v14783_v11 = vld [vmem:[%s15887_s29 + $0xc88] sm:$0xff]   ;;  %v14790_v18 = vld [vmem:[%s15887_s29 + $0xc18] sm:$0xff]  }
 0x1d2   : > { %13338 = vmatprep.subr.bf16.mxu1 %v14741_v19  ;;  %v14791_v19 = vld [vmem:[%s15887_s29 + $0xc98] sm:$0xff]  }
 0x1d3   : > { %9806 = vmatmul.mubr.bf16.vlgmr.msra.gmra.mrb[40].mxu0 %v11715_v14  ;;  %v14786_v14 = vld [vmem:[%s15887_s29 + $0xc10] sm:$0xff]  }
 0x1d4   : > { %9846 = vmatmul.mubr.bf16.vlgmr.msra.gmra.mrb[40].mxu1 %v11717_v16  ;;  %13317 = vmatpush3.bf16.msra.mxu0 %v14742_v20  ;;  %v14788_v16 = vld [vmem:[%s15887_s29 + $0xc58] sm:$0xff]   ;;  %v14792_v20 = vld [vmem:[%s15887_s29 + $0xc60] sm:$0xff]  }
 0x1d5   : > { %13339 = vmatpush3.bf16.msra.mxu1 %v14743_v21  ;;  %13318 = vmatprep.subr.bf16.mxu0 %v14744_v22  ;;  %v14793_v21 = vld [vmem:[%s15887_s29 + $0xce0] sm:$0xff]  }
 0x1d6   : > { %13340 = vmatprep.subr.bf16.mxu1 %v14745_v23  ;;  %9885 = vmatprep.mubr.bf16.mxu0 %v11720_v1  ;;  %v14794_v23 = vld [vmem:[%s15887_s29 + $0xc20] sm:$0xff]   ;;  %v14823_v1 = vld [vmem:[%s15887_s29 + $0xd90] sm:$0xff]  }
 0x1d7   : > { %9925 = vmatprep.mubr.bf16.mxu1 %v11722_v3  ;;  %v14825_v3 = vld [vmem:[%s15887_s29 + $0xdd8] sm:$0xff]  }
 0x1d8   : > { %13319 = vmatpush3.bf16.msra.mxu0 %v14746_v24 }
 0x1d9   : > { %13341 = vmatpush3.bf16.msra.mxu1 %v14747_v25  ;;  %13320 = vmatprep.subr.bf16.mxu0 %v14748_v26  ;;  %v14795_v25 = vld [vmem:[%s15887_s29 + $0xca0] sm:$0xff]  }
 0x1da   : > { %13342 = vmatprep.subr.bf16.mxu1 %v14749_v27 }
 0x1dc   : > { %13321 = vmatpush3.bf16.msra.mxu0 %v14750_v28 }
 0x1dd   : > { %13343 = vmatpush3.bf16.msra.mxu1 %v14751_v29  ;;  %13322 = vmatprep.subr.bf16.mxu0 %v14752_v30  ;;  %v14796_v29 = vld [vmem:[%s15887_s29 + $0xc68] sm:$0xff]  }
 0x1de   : > { %13344 = vmatprep.subr.bf16.mxu1 %v14753_v31  ;;  %v14797_v31 = vld [vmem:[%s15887_s29 + $0xce8] sm:$0xff]  }
 0x1e0   : > { %13323 = vmatpush3.bf16.msra.mxu0 %v14754_v32 }
 0x1e1   : > { %13345 = vmatpush3.bf16.msra.mxu1 %v14755_v33  ;;  %13324 = vmatprep.subr.bf16.mxu0 %v14756_v34 }
 0x1e2   : > { %13346 = vmatprep.subr.bf16.mxu1 %v14757_v35  ;;  %v14798_v35 = vld [vmem:[%s15887_s29 + $0xc28] sm:$0xff]  }
 0x1e4   : > { %13325 = vmatpush3.bf16.msra.mxu0 %v14758_v36  ;;  %v14799_v36 = vld [vmem:[%s15887_s29 + $0xca8] sm:$0xff]  }
 0x1e5   : > { %13347 = vmatpush3.bf16.msra.mxu1 %v14759_v38  ;;  %13326 = vmatprep.subr.bf16.mxu0 %v14760_v44  ;;  %v14804_v44 = vld [vmem:[%s15887_s29 + $0xc78] sm:$0xff]  }
 0x1e6   : > { %v13024_v37 = vpop.f32.mrb[16].mxu0  ;;  %13348 = vmatprep.subr.bf16.mxu1 %v14761_v46  ;;  %v14806_v46 = vld [vmem:[%s15887_s29 + $0xc38] sm:$0xff]  }
 0x1e7   : > { %v13046_v39 = vpop.f32.mrb[16].mxu1  ;;  %v13025_v40 = vpop.f32.mrb[17].mxu0 }
 0x1e8   : > { %v13047_v41 = vpop.f32.mrb[17].mxu1  ;;  %v13026_v42 = vadd.f32 %v13025_v40, %v13024_v37  ;;  %v13027_v45 = vpop.f32.mrb[18].mxu0  ;;  %13327 = vmatpush3.bf16.msra.mxu0 %v14762_v49  ;;  %v14800_v40 = vld [vmem:[%s15887_s29 + $0xc70] sm:$0xff]   ;;  %v294_v49 = vld [vmem:[%s15911_s25 + $0xc8] sm:$0xff] }
 0x1e9   : > { %v13048_v43 = vadd.f32 %v13047_v41, %v13046_v39  ;;  %v13049_v47 = vpop.f32.mrb[18].mxu1  ;;  %v13028_v50 = vpop.f32.mrb[19].mxu0  ;;  %13349 = vmatpush3.bf16.msra.mxu1 %v14763_v51  ;;  %13328 = vmatprep.subr.bf16.mxu0 %v14764_v54  ;;  %v14801_v41 = vld [vmem:[%s15887_s29 + $0xcf0] sm:$0xff]   ;;  %v14805_v45 = vld [vmem:[%s15887_s29 + $0xcf8] sm:$0xff]   ;;  %v11726_v54 = vcombine.high %v294_v49, %v294_v49 }
 0x1ea   : > { %v9328_v48 = vadd.f32 %v13026_v42, %v16288_v4  ;;  %v13050_v52 = vpop.f32.mrb[19].mxu1  ;;  %13350 = vmatprep.subr.bf16.mxu1 %v14765_v55  ;;  %v14776_v4 = vld [vmem:[%s15887_s29 + $0xc40] sm:$0xff]   ;;  %v14802_v42 = vld [vmem:[%s15887_s29 + $0xc30] sm:$0xff]   ;;  %v14807_v47 = vld [vmem:[%s15887_s29 + $0xcb8] sm:$0xff]  }
 0x1eb   : > { %v11725_v52 = vcombine.low %v294_v49, %v294_v49  ;;  %v14813_v55 = vld [vmem:[%s15887_s29 + $0xdc0] sm:$0xff]   ;;  %v14857_v49 = vld [vmem:[%s15887_s29 + $0xed0] sm:$0xff]  }
 0x1ec   : > { %v16324_v53 = vadd.f32 %v13048_v43, %v9328_v48  ;;  %13329 = vmatpush3.bf16.msra.mxu0 %v14766_v56  ;;  %v14803_v43 = vld [vmem:[%s15887_s29 + $0xcb0] sm:$0xff]   ;;  %v293_v48 = vld [vmem:[%s15911_s25 + $0xc0] sm:$0xff]  ;;  %v14814_v56 = vld [vmem:[%s15887_s29 + $0xd00] sm:$0xff]  }
 0x1ed   : > { %13351 = vmatpush3.bf16.msra.mxu1 %v14767_v57  ;;  %13330 = vmatprep.subr.bf16.mxu0 %v14768_v58  ;;  %v11723_v50 = vcombine.low %v293_v48, %v293_v48  ;;  %v11724_v51 = vcombine.high %v293_v48, %v293_v48  ;;  %v14815_v57 = vld [vmem:[%s15887_s29 + $0xd80] sm:$0xff]   ;;  %v14816_v58 = vld [vmem:[%s15887_s29 + $0xd48] sm:$0xff]   ;;  %v14856_v48 = vld [vmem:[%s15887_s29 + $0xe50] sm:$0xff]  }
 0x1ee   : > { %13352 = vmatprep.subr.bf16.mxu1 %v14769_v59  ;;  %v14817_v59 = vld [vmem:[%s15887_s29 + $0xdc8] sm:$0xff]  }
 0x1f0   : > { %13331 = vmatpush3.bf16.msra.mxu0 %v14770_v60  ;;  %v14818_v60 = vld [vmem:[%s15887_s29 + $0xd08] sm:$0xff]  }
 0x1f1   : > { %13353 = vmatpush3.bf16.msra.mxu1 %v14771_v61  ;;  %13360 = vmatprep.subr.bf16.mxu0 %v14776_v4  ;;  %v14819_v61 = vld [vmem:[%s15887_s29 + $0xd88] sm:$0xff]   ;;  %v14826_v4 = vld [vmem:[%s15887_s29 + $0xd18] sm:$0xff]  }
 0x1f2   : > { %13382 = vmatprep.subr.bf16.mxu1 %v14777_v5  ;;  %v14827_v5 = vld [vmem:[%s15887_s29 + $0xd98] sm:$0xff]  }
 0x1f3   : > { %9886 = vmatmul.mubr.bf16.vlgmr.msra.gmra.mrb[44].mxu0 %v11719_v0  ;;  %v14822_v0 = vld [vmem:[%s15887_s29 + $0xd10] sm:$0xff]  }
 0x1f4   : > { %9926 = vmatmul.mubr.bf16.vlgmr.msra.gmra.mrb[44].mxu1 %v11721_v2  ;;  %13361 = vmatpush3.bf16.msra.mxu0 %v14778_v6  ;;  %v14824_v2 = vld [vmem:[%s15887_s29 + $0xd58] sm:$0xff]   ;;  %v14828_v6 = vld [vmem:[%s15887_s29 + $0xd60] sm:$0xff]  }
 0x1f5   : > { %13383 = vmatpush3.bf16.msra.mxu1 %v14779_v7  ;;  %13362 = vmatprep.subr.bf16.mxu0 %v14780_v8  ;;  %v14829_v7 = vld [vmem:[%s15887_s29 + $0xde0] sm:$0xff]  }
 0x1f6   : > { %13384 = vmatprep.subr.bf16.mxu1 %v14781_v9  ;;  %9965 = vmatprep.mubr.bf16.mxu0 %v11724_v51  ;;  %v14830_v9 = vld [vmem:[%s15887_s29 + $0xd20] sm:$0xff]   ;;  %v14859_v51 = vld [vmem:[%s15887_s29 + $0xe90] sm:$0xff]  }
 0x1f7   : > { %10005 = vmatprep.mubr.bf16.mxu1 %v11726_v54  ;;  %v14862_v54 = vld [vmem:[%s15887_s29 + $0xe18] sm:$0xff]  }
 0x1f8   : > { %13363 = vmatpush3.bf16.msra.mxu0 %v14782_v10 }
 0x1f9   : > { %13385 = vmatpush3.bf16.msra.mxu1 %v14783_v11  ;;  %13364 = vmatprep.subr.bf16.mxu0 %v14784_v12  ;;  %v14831_v11 = vld [vmem:[%s15887_s29 + $0xda0] sm:$0xff]  }
 0x1fa   : > { %13386 = vmatprep.subr.bf16.mxu1 %v14785_v13 }
 0x1fc   : > { %13365 = vmatpush3.bf16.msra.mxu0 %v14786_v14  ;;  %v14832_v14 = vld [vmem:[%s15887_s29 + $0xd68] sm:$0xff]  }
 0x1fd   : > { %13387 = vmatpush3.bf16.msra.mxu1 %v14787_v15  ;;  %13366 = vmatprep.subr.bf16.mxu0 %v14788_v16 }
 0x1fe   : > { %13388 = vmatprep.subr.bf16.mxu1 %v14789_v17  ;;  %v14833_v17 = vld [vmem:[%s15887_s29 + $0xde8] sm:$0xff]  }
 0x200   : > { %13367 = vmatpush3.bf16.msra.mxu0 %v14790_v18 }
 0x201   : > { %13389 = vmatpush3.bf16.msra.mxu1 %v14791_v19  ;;  %13368 = vmatprep.subr.bf16.mxu0 %v14792_v20  ;;  %v14834_v20 = vld [vmem:[%s15887_s29 + $0xd28] sm:$0xff]  }
 0x202   : > { %13390 = vmatprep.subr.bf16.mxu1 %v14793_v21 }
 0x204   : > { %13369 = vmatpush3.bf16.msra.mxu0 %v14794_v23 }
 0x205   : > { %13391 = vmatpush3.bf16.msra.mxu1 %v14795_v25  ;;  %13370 = vmatprep.subr.bf16.mxu0 %v14796_v29  ;;  %v14836_v25 = vld [vmem:[%s15887_s29 + $0xd70] sm:$0xff]  }
 0x206   : > { %v13068_v22 = vpop.f32.mrb[20].mxu0  ;;  %13392 = vmatprep.subr.bf16.mxu1 %v14797_v31  ;;  %v14839_v29 = vld [vmem:[%s15887_s29 + $0xdb0] sm:$0xff]   ;;  %v14841_v31 = vld [vmem:[%s15887_s29 + $0xdf8] sm:$0xff]  }
 0x207   : > { %v13090_v24 = vpop.f32.mrb[20].mxu1  ;;  %v13069_v26 = vpop.f32.mrb[21].mxu0 }
 0x208   : > { %v13070_v27 = vadd.f32 %v13069_v26, %v13068_v22  ;;  %v13091_v28 = vpop.f32.mrb[21].mxu1  ;;  %v13071_v32 = vpop.f32.mrb[22].mxu0  ;;  %13371 = vmatpush3.bf16.msra.mxu0 %v14798_v35  ;;  %v14835_v22 = vld [vmem:[%s15887_s29 + $0xda8] sm:$0xff]  }
 0x209   : > { %v13092_v30 = vadd.f32 %v13091_v28, %v13090_v24  ;;  %v13093_v34 = vpop.f32.mrb[22].mxu1  ;;  %v13072_v37 = vpop.f32.mrb[23].mxu0  ;;  %13393 = vmatpush3.bf16.msra.mxu1 %v14799_v36  ;;  %13372 = vmatprep.subr.bf16.mxu0 %v14800_v40  ;;  %v14838_v28 = vld [vmem:[%s15887_s29 + $0xd30] sm:$0xff]   ;;  %v14842_v32 = vld [vmem:[%s15887_s29 + $0xd38] sm:$0xff]   ;;  %v14848_v40 = vld [vmem:[%s15887_s29 + $0xe40] sm:$0xff]  }
 0x20a   : > { %v9408_v33 = vadd.f32 %v13070_v27, %v16324_v53  ;;  %v13094_v39 = vpop.f32.mrb[23].mxu1  ;;  %13394 = vmatprep.subr.bf16.mxu1 %v14801_v41  ;;  %v14812_v53 = vld [vmem:[%s15887_s29 + $0xd40] sm:$0xff]   ;;  %v14837_v27 = vld [vmem:[%s15887_s29 + $0xdf0] sm:$0xff]   ;;  %v295_v34 = vld [vmem:[%s15911_s25 + $0xd0] sm:$0xff] }
 0x20b   : > { %v11727_v35 = vcombine.low %v295_v34, %v295_v34  ;;  %v11728_v36 = vcombine.high %v295_v34, %v295_v34  ;;  %v296_v37 = vld [vmem:[%s15911_s25 + $0xd8] sm:$0xff]  ;;  %v14849_v41 = vld [vmem:[%s15887_s29 + $0xec0] sm:$0xff]  }
 0x20c   : > { %v16361_v38 = vadd.f32 %v13092_v30, %v9408_v33  ;;  %13373 = vmatpush3.bf16.msra.mxu0 %v14802_v42  ;;  %v14840_v30 = vld [vmem:[%s15887_s29 + $0xd78] sm:$0xff]   ;;  %v11730_v39 = vcombine.high %v296_v37, %v296_v37  ;;  %v14850_v42 = vld [vmem:[%s15887_s29 + $0xe00] sm:$0xff]   ;;  %v14892_v34 = vld [vmem:[%s15887_s29 + $0xf50] sm:$0xff]  }
 0x20d   : > { %13395 = vmatpush3.bf16.msra.mxu1 %v14803_v43  ;;  %13374 = vmatprep.subr.bf16.mxu0 %v14804_v44  ;;  %v14843_v33 = vld [vmem:[%s15887_s29 + $0xdb8] sm:$0xff]   ;;  %v14851_v43 = vld [vmem:[%s15887_s29 + $0xe80] sm:$0xff]   ;;  %v14852_v44 = vld [vmem:[%s15887_s29 + $0xe48] sm:$0xff]  }
 0x20e   : > { %13396 = vmatprep.subr.bf16.mxu1 %v14805_v45  ;;  %v14853_v45 = vld [vmem:[%s15887_s29 + $0xec8] sm:$0xff]  }
 0x210   : > { %13375 = vmatpush3.bf16.msra.mxu0 %v14806_v46  ;;  %v14854_v46 = vld [vmem:[%s15887_s29 + $0xe08] sm:$0xff]  }
 0x211   : > { %13397 = vmatpush3.bf16.msra.mxu1 %v14807_v47  ;;  %13404 = vmatprep.subr.bf16.mxu0 %v14812_v53  ;;  %v14855_v47 = vld [vmem:[%s15887_s29 + $0xe88] sm:$0xff]   ;;  %v14861_v53 = vld [vmem:[%s15887_s29 + $0xed8] sm:$0xff]  }
 0x212   : > { %13426 = vmatprep.subr.bf16.mxu1 %v14813_v55  ;;  %v14863_v55 = vld [vmem:[%s15887_s29 + $0xe98] sm:$0xff]  }
 0x213   : > { %9966 = vmatmul.mubr.bf16.vlgmr.msra.gmra.mrb[48].mxu0 %v11723_v50  ;;  %v14858_v50 = vld [vmem:[%s15887_s29 + $0xe10] sm:$0xff]  }
 0x214   : > { %10006 = vmatmul.mubr.bf16.vlgmr.msra.gmra.mrb[48].mxu1 %v11725_v52  ;;  %13405 = vmatpush3.bf16.msra.mxu0 %v14814_v56  ;;  %v14860_v52 = vld [vmem:[%s15887_s29 + $0xe58] sm:$0xff]   ;;  %v14864_v56 = vld [vmem:[%s15887_s29 + $0xe60] sm:$0xff]  }
 0x215   : > { %13427 = vmatpush3.bf16.msra.mxu1 %v14815_v57  ;;  %13406 = vmatprep.subr.bf16.mxu0 %v14816_v58  ;;  %v14865_v57 = vld [vmem:[%s15887_s29 + $0xee0] sm:$0xff]  }
 0x216   : > { %13428 = vmatprep.subr.bf16.mxu1 %v14817_v59  ;;  %10045 = vmatprep.mubr.bf16.mxu0 %v11728_v36  ;;  %v14866_v59 = vld [vmem:[%s15887_s29 + $0xe20] sm:$0xff]   ;;  %v14894_v36 = vld [vmem:[%s15887_s29 + $0xf10] sm:$0xff]  }
 0x217   : > { %10085 = vmatprep.mubr.bf16.mxu1 %v11730_v39  ;;  %v14897_v39 = vld [vmem:[%s15887_s29 + $0xfd8] sm:$0xff]  }
 0x218   : > { %13407 = vmatpush3.bf16.msra.mxu0 %v14818_v60 }
 0x219   : > { %13429 = vmatpush3.bf16.msra.mxu1 %v14819_v61  ;;  %13408 = vmatprep.subr.bf16.mxu0 %v14820_v62  ;;  %v14867_v61 = vld [vmem:[%s15887_s29 + $0xea0] sm:$0xff]  }
 0x21a   : > { %13430 = vmatprep.subr.bf16.mxu1 %v14821_v63 }
 0x21c   : > { %13409 = vmatpush3.bf16.msra.mxu0 %v14822_v0  ;;  %v14868_v0 = vld [vmem:[%s15887_s29 + $0xe68] sm:$0xff]  }
 0x21d   : > { %13431 = vmatpush3.bf16.msra.mxu1 %v14823_v1  ;;  %13410 = vmatprep.subr.bf16.mxu0 %v14824_v2 }
 0x21e   : > { %13432 = vmatprep.subr.bf16.mxu1 %v14825_v3  ;;  %v14869_v3 = vld [vmem:[%s15887_s29 + $0xee8] sm:$0xff]  }
 0x220   : > { %13411 = vmatpush3.bf16.msra.mxu0 %v14826_v4 }
 0x221   : > { %13433 = vmatpush3.bf16.msra.mxu1 %v14827_v5  ;;  %13412 = vmatprep.subr.bf16.mxu0 %v14828_v6  ;;  %v14870_v6 = vld [vmem:[%s15887_s29 + $0xe28] sm:$0xff]  }
 0x222   : > { %13434 = vmatprep.subr.bf16.mxu1 %v14829_v7 }
 0x224   : > { %13413 = vmatpush3.bf16.msra.mxu0 %v14830_v9 }
 0x225   : > { %13435 = vmatpush3.bf16.msra.mxu1 %v14831_v11  ;;  %13414 = vmatprep.subr.bf16.mxu0 %v14832_v14  ;;  %v14872_v11 = vld [vmem:[%s15887_s29 + $0xe70] sm:$0xff]  }
 0x226   : > { %v13112_v8 = vpop.f32.mrb[24].mxu0  ;;  %13436 = vmatprep.subr.bf16.mxu1 %v14833_v17  ;;  %v14874_v14 = vld [vmem:[%s15887_s29 + $0xe30] sm:$0xff]   ;;  %v14877_v17 = vld [vmem:[%s15887_s29 + $0xef8] sm:$0xff]  }
 0x227   : > { %v13134_v10 = vpop.f32.mrb[24].mxu1  ;;  %v13113_v12 = vpop.f32.mrb[25].mxu0 }
 0x228   : > { %v13135_v13 = vpop.f32.mrb[25].mxu1  ;;  %v13114_v15 = vadd.f32 %v13113_v12, %v13112_v8  ;;  %v13115_v18 = vpop.f32.mrb[26].mxu0  ;;  %13415 = vmatpush3.bf16.msra.mxu0 %v14834_v20  ;;  %v14871_v8 = vld [vmem:[%s15887_s29 + $0xea8] sm:$0xff]   ;;  %v297_v20 = vld [vmem:[%s15911_s25 + $0xe0] sm:$0xff] }
 0x229   : > { %v13136_v16 = vadd.f32 %v13135_v13, %v13134_v10  ;;  %v13137_v19 = vpop.f32.mrb[26].mxu1  ;;  %v13116_v23 = vpop.f32.mrb[27].mxu0  ;;  %13437 = vmatpush3.bf16.msra.mxu1 %v14835_v22  ;;  %13416 = vmatprep.subr.bf16.mxu0 %v14836_v25  ;;  %v14873_v13 = vld [vmem:[%s15887_s29 + $0xef0] sm:$0xff]   ;;  %v14878_v18 = vld [vmem:[%s15887_s29 + $0xe38] sm:$0xff]   ;;  %v11731_v22 = vcombine.low %v297_v20, %v297_v20 }
 0x22a   : > { %v9488_v21 = vadd.f32 %v13114_v15, %v16361_v38  ;;  %v13138_v24 = vpop.f32.mrb[27].mxu1  ;;  %13438 = vmatprep.subr.bf16.mxu1 %v14837_v27  ;;  %v11729_v38 = vcombine.low %v296_v37, %v296_v37  ;;  %v14875_v15 = vld [vmem:[%s15887_s29 + $0xeb0] sm:$0xff]   ;;  %v14879_v19 = vld [vmem:[%s15887_s29 + $0xeb8] sm:$0xff]   ;;  %v11732_v23 = vcombine.high %v297_v20, %v297_v20  ;;  %v14885_v27 = vld [vmem:[%s15887_s29 + $0xfc0] sm:$0xff]  }
 0x22b   : > { %v14895_v37 = vld [vmem:[%s15887_s29 + $0xf90] sm:$0xff]  }
 0x22c   : > { %v16399_v26 = vadd.f32 %v13136_v16, %v9488_v21  ;;  %13417 = vmatpush3.bf16.msra.mxu0 %v14838_v28  ;;  %v14876_v16 = vld [vmem:[%s15887_s29 + $0xe78] sm:$0xff]   ;;  %v298_v21 = vld [vmem:[%s15911_s25 + $0xe8] sm:$0xff]  ;;  %v14928_v20 = vld [vmem:[%s15887_s29 + $0x1050] sm:$0xff]  }
 0x22d   : > { %13439 = vmatpush3.bf16.msra.mxu1 %v14839_v29  ;;  %13418 = vmatprep.subr.bf16.mxu0 %v14840_v30  ;;  %v11733_v24 = vcombine.low %v298_v21, %v298_v21  ;;  %v11734_v25 = vcombine.high %v298_v21, %v298_v21  ;;  %v14886_v28 = vld [vmem:[%s15887_s29 + $0xf00] sm:$0xff]   ;;  %v14888_v30 = vld [vmem:[%s15887_s29 + $0xf48] sm:$0xff]   ;;  %v14929_v21 = vld [vmem:[%s15887_s29 + $0x10d0] sm:$0xff]  }
 0x22e   : > { %13440 = vmatprep.subr.bf16.mxu1 %v14841_v31  ;;  %v14887_v29 = vld [vmem:[%s15887_s29 + $0xf80] sm:$0xff]   ;;  %v14889_v31 = vld [vmem:[%s15887_s29 + $0xfc8] sm:$0xff]  }
 0x230   : > { %13419 = vmatpush3.bf16.msra.mxu0 %v14842_v32  ;;  %v14890_v32 = vld [vmem:[%s15887_s29 + $0xf08] sm:$0xff]  }
 0x231   : > { %13441 = vmatpush3.bf16.msra.mxu1 %v14843_v33  ;;  %13448 = vmatprep.subr.bf16.mxu0 %v14848_v40  ;;  %v14891_v33 = vld [vmem:[%s15887_s29 + $0xf88] sm:$0xff]   ;;  %v14898_v40 = vld [vmem:[%s15887_s29 + $0xf18] sm:$0xff]  }
 0x232   : > { %13470 = vmatprep.subr.bf16.mxu1 %v14849_v41  ;;  %v14899_v41 = vld [vmem:[%s15887_s29 + $0xf98] sm:$0xff]  }
 0x233   : > { %10046 = vmatmul.mubr.bf16.vlgmr.msra.gmra.mrb[52].mxu0 %v11727_v35  ;;  %v14893_v35 = vld [vmem:[%s15887_s29 + $0xfd0] sm:$0xff]  }
 0x234   : > { %10086 = vmatmul.mubr.bf16.vlgmr.msra.gmra.mrb[52].mxu1 %v11729_v38  ;;  %13449 = vmatpush3.bf16.msra.mxu0 %v14850_v42  ;;  %v14896_v38 = vld [vmem:[%s15887_s29 + $0xf58] sm:$0xff]   ;;  %v14900_v42 = vld [vmem:[%s15887_s29 + $0xf60] sm:$0xff]  }
 0x235   : > { %13471 = vmatpush3.bf16.msra.mxu1 %v14851_v43  ;;  %13450 = vmatprep.subr.bf16.mxu0 %v14852_v44  ;;  %v14901_v43 = vld [vmem:[%s15887_s29 + $0xfe0] sm:$0xff]  }
 0x236   : > { %13472 = vmatprep.subr.bf16.mxu1 %v14853_v45  ;;  %10125 = vmatprep.mubr.bf16.mxu0 %v11732_v23  ;;  %v14902_v44 = vld [vmem:[%s15887_s29 + $0xf20] sm:$0xff]   ;;  %v14931_v23 = vld [vmem:[%s15887_s29 + $0x1090] sm:$0xff]  }
 0x237   : > { %10165 = vmatprep.mubr.bf16.mxu1 %v11734_v25  ;;  %v14933_v25 = vld [vmem:[%s15887_s29 + $0x10d8] sm:$0xff]  }
 0x238   : > { %13451 = vmatpush3.bf16.msra.mxu0 %v14854_v46  ;;  %v14903_v46 = vld [vmem:[%s15887_s29 + $0xfa0] sm:$0xff]  }
 0x239   : > { %13473 = vmatpush3.bf16.msra.mxu1 %v14855_v47  ;;  %13452 = vmatprep.subr.bf16.mxu0 %v14856_v48 }
 0x23a   : > { %13474 = vmatprep.subr.bf16.mxu1 %v14857_v49 }
 0x23c   : > { %13453 = vmatpush3.bf16.msra.mxu0 %v14858_v50 }
 0x23d   : > { %13475 = vmatpush3.bf16.msra.mxu1 %v14859_v51  ;;  %13454 = vmatprep.subr.bf16.mxu0 %v14860_v52  ;;  %v14904_v52 = vld [vmem:[%s15887_s29 + $0xf68] sm:$0xff]  }
 0x23e   : > { %13476 = vmatprep.subr.bf16.mxu1 %v14861_v53 }
 0x240   : > { %13455 = vmatpush3.bf16.msra.mxu0 %v14862_v54  ;;  %v14905_v54 = vld [vmem:[%s15887_s29 + $0xfe8] sm:$0xff]  }
 0x241   : > { %13477 = vmatpush3.bf16.msra.mxu1 %v14863_v55  ;;  %13456 = vmatprep.subr.bf16.mxu0 %v14864_v56 }
 0x242   : > { %13478 = vmatprep.subr.bf16.mxu1 %v14865_v57  ;;  %v14906_v57 = vld [vmem:[%s15887_s29 + $0xf28] sm:$0xff]  }
 0x244   : > { %13457 = vmatpush3.bf16.msra.mxu0 %v14866_v59  ;;  %v14907_v59 = vld [vmem:[%s15887_s29 + $0xfa8] sm:$0xff]  }
 0x245   : > { %13479 = vmatpush3.bf16.msra.mxu1 %v14867_v61  ;;  %13458 = vmatprep.subr.bf16.mxu0 %v14868_v0  ;;  %v14910_v0 = vld [vmem:[%s15887_s29 + $0xf30] sm:$0xff]  }
 0x246   : > { %v13156_v58 = vpop.f32.mrb[28].mxu0  ;;  %13480 = vmatprep.subr.bf16.mxu1 %v14869_v3  ;;  %v14913_v3 = vld [vmem:[%s15887_s29 + $0xff8] sm:$0xff]  }
 0x247   : > { %v13178_v60 = vpop.f32.mrb[28].mxu1  ;;  %v13157_v62 = vpop.f32.mrb[29].mxu0 }
 0x248   : > { %v13179_v63 = vpop.f32.mrb[29].mxu1  ;;  %v13158_v1 = vadd.f32 %v13157_v62, %v13156_v58  ;;  %v13159_v4 = vpop.f32.mrb[30].mxu0  ;;  %13459 = vmatpush3.bf16.msra.mxu0 %v14870_v6  ;;  %v14908_v62 = vld [vmem:[%s15887_s29 + $0xf70] sm:$0xff]   ;;  %v299_v6 = vld [vmem:[%s15911_s25 + $0xf0] sm:$0xff] }
 0x249   : > { %v13180_v2 = vadd.f32 %v13179_v63, %v13178_v60  ;;  %v13181_v5 = vpop.f32.mrb[30].mxu1  ;;  %v13160_v9 = vpop.f32.mrb[31].mxu0  ;;  %13481 = vmatpush3.bf16.msra.mxu1 %v14871_v8  ;;  %13460 = vmatprep.subr.bf16.mxu0 %v14872_v11  ;;  %v14909_v63 = vld [vmem:[%s15887_s29 + $0xff0] sm:$0xff]   ;;  %v14914_v4 = vld [vmem:[%s15887_s29 + $0xf38] sm:$0xff]   ;;  %v11735_v8 = vcombine.low %v299_v6, %v299_v6 }
 0x24a   : > { %v9568_v7 = vadd.f32 %v13158_v1, %v16399_v26  ;;  %v13182_v10 = vpop.f32.mrb[31].mxu1  ;;  %13482 = vmatprep.subr.bf16.mxu1 %v14873_v13  ;;  %v14884_v26 = vld [vmem:[%s15887_s29 + $0xf40] sm:$0xff]   ;;  %v14911_v1 = vld [vmem:[%s15887_s29 + $0xfb0] sm:$0xff]   ;;  %v14915_v5 = vld [vmem:[%s15887_s29 + $0xfb8] sm:$0xff]   ;;  %v11736_v9 = vcombine.high %v299_v6, %v299_v6 }
 0x24b   : > { %v14921_v13 = vld [vmem:[%s15887_s29 + $0x10c0] sm:$0xff]   ;;  %v14964_v6 = vld [vmem:[%s15887_s29 + $0x1150] sm:$0xff]  }
 0x24c   : > { %v16436_v12 = vadd.f32 %v13180_v2, %v9568_v7  ;;  %13461 = vmatpush3.bf16.msra.mxu0 %v14874_v14  ;;  %v14912_v2 = vld [vmem:[%s15887_s29 + $0xf78] sm:$0xff]   ;;  %v300_v7 = vld [vmem:[%s15911_s25 + $0xf8] sm:$0xff]  ;;  %v14922_v14 = vld [vmem:[%s15887_s29 + $0x1000] sm:$0xff]  }
 0x24d   : > { %13483 = vmatpush3.bf16.msra.mxu1 %v14875_v15  ;;  %13462 = vmatprep.subr.bf16.mxu0 %v14876_v16  ;;  %v11737_v10 = vcombine.low %v300_v7, %v300_v7  ;;  %v11738_v11 = vcombine.high %v300_v7, %v300_v7  ;;  %v14923_v15 = vld [vmem:[%s15887_s29 + $0x1080] sm:$0xff]   ;;  %v14924_v16 = vld [vmem:[%s15887_s29 + $0x1048] sm:$0xff]   ;;  %v14965_v7 = vld [vmem:[%s15887_s29 + $0x11d0] sm:$0xff]  }
 0x24e   : > { %13484 = vmatprep.subr.bf16.mxu1 %v14877_v17  ;;  %v14925_v17 = vld [vmem:[%s15887_s29 + $0x10c8] sm:$0xff]  }
 0x250   : > { %13463 = vmatpush3.bf16.msra.mxu0 %v14878_v18  ;;  %v14926_v18 = vld [vmem:[%s15887_s29 + $0x1008] sm:$0xff]  }
 0x251   : > { %13485 = vmatpush3.bf16.msra.mxu1 %v14879_v19  ;;  %13492 = vmatprep.subr.bf16.mxu0 %v14884_v26  ;;  %v14927_v19 = vld [vmem:[%s15887_s29 + $0x1088] sm:$0xff]   ;;  %v14934_v26 = vld [vmem:[%s15887_s29 + $0x1018] sm:$0xff]  }
 0x252   : > { %13514 = vmatprep.subr.bf16.mxu1 %v14885_v27  ;;  %v14935_v27 = vld [vmem:[%s15887_s29 + $0x1098] sm:$0xff]  }
 0x253   : > { %10126 = vmatmul.mubr.bf16.vlgmr.msra.gmra.mrb[56].mxu0 %v11731_v22  ;;  %v14930_v22 = vld [vmem:[%s15887_s29 + $0x1010] sm:$0xff]  }
 0x254   : > { %10166 = vmatmul.mubr.bf16.vlgmr.msra.gmra.mrb[56].mxu1 %v11733_v24  ;;  %13493 = vmatpush3.bf16.msra.mxu0 %v14886_v28  ;;  %v14932_v24 = vld [vmem:[%s15887_s29 + $0x1058] sm:$0xff]   ;;  %v14936_v28 = vld [vmem:[%s15887_s29 + $0x1060] sm:$0xff]  }
 0x255   : > { %13515 = vmatpush3.bf16.msra.mxu1 %v14887_v29  ;;  %13494 = vmatprep.subr.bf16.mxu0 %v14888_v30  ;;  %v14937_v29 = vld [vmem:[%s15887_s29 + $0x10e0] sm:$0xff]  }
 0x256   : > { %13516 = vmatprep.subr.bf16.mxu1 %v14889_v31  ;;  %10205 = vmatprep.mubr.bf16.mxu0 %v11736_v9  ;;  %v14938_v30 = vld [vmem:[%s15887_s29 + $0x1020] sm:$0xff]   ;;  %v14967_v9 = vld [vmem:[%s15887_s29 + $0x1190] sm:$0xff]  }
 0x257   : > { %10245 = vmatprep.mubr.bf16.mxu1 %v11738_v11  ;;  %v14969_v11 = vld [vmem:[%s15887_s29 + $0x11d8] sm:$0xff]  }
 0x258   : > { %13495 = vmatpush3.bf16.msra.mxu0 %v14890_v32  ;;  %v14939_v32 = vld [vmem:[%s15887_s29 + $0x10a0] sm:$0xff]  }
 0x259   : > { %13517 = vmatpush3.bf16.msra.mxu1 %v14891_v33  ;;  %13496 = vmatprep.subr.bf16.mxu0 %v14892_v34 }
 0x25a   : > { %13518 = vmatprep.subr.bf16.mxu1 %v14893_v35 }
 0x25c   : > { %13497 = vmatpush3.bf16.msra.mxu0 %v14894_v36 }
 0x25d   : > { %13519 = vmatpush3.bf16.msra.mxu1 %v14895_v37  ;;  %13498 = vmatprep.subr.bf16.mxu0 %v14896_v38  ;;  %v14940_v38 = vld [vmem:[%s15887_s29 + $0x1068] sm:$0xff]  }
 0x25e   : > { %13520 = vmatprep.subr.bf16.mxu1 %v14897_v39 }
 0x260   : > { %13499 = vmatpush3.bf16.msra.mxu0 %v14898_v40  ;;  %v14941_v40 = vld [vmem:[%s15887_s29 + $0x10e8] sm:$0xff]  }
 0x261   : > { %13521 = vmatpush3.bf16.msra.mxu1 %v14899_v41  ;;  %13500 = vmatprep.subr.bf16.mxu0 %v14900_v42 }
 0x262   : > { %13522 = vmatprep.subr.bf16.mxu1 %v14901_v43  ;;  %v14942_v43 = vld [vmem:[%s15887_s29 + $0x1028] sm:$0xff]  }
 0x264   : > { %13501 = vmatpush3.bf16.msra.mxu0 %v14902_v44 }
 0x265   : > { %13523 = vmatpush3.bf16.msra.mxu1 %v14903_v46  ;;  %13502 = vmatprep.subr.bf16.mxu0 %v14904_v52  ;;  %v14948_v52 = vld [vmem:[%s15887_s29 + $0x1078] sm:$0xff]  }
 0x266   : > { %v13200_v45 = vpop.f32.mrb[32].mxu0  ;;  %13524 = vmatprep.subr.bf16.mxu1 %v14905_v54  ;;  %v14950_v54 = vld [vmem:[%s15887_s29 + $0x1038] sm:$0xff]  }
 0x267   : > { %v13222_v47 = vpop.f32.mrb[32].mxu1  ;;  %v13201_v48 = vpop.f32.mrb[33].mxu0 }
 0x268   : > { %v13223_v49 = vpop.f32.mrb[33].mxu1  ;;  %v13202_v50 = vadd.f32 %v13201_v48, %v13200_v45  ;;  %v13203_v53 = vpop.f32.mrb[34].mxu0  ;;  %13503 = vmatpush3.bf16.msra.mxu0 %v14906_v57  ;;  %v14943_v45 = vld [vmem:[%s15887_s29 + $0x10a8] sm:$0xff]   ;;  %v14944_v48 = vld [vmem:[%s15887_s29 + $0x1070] sm:$0xff]   ;;  %v302_v57 = vld [vmem:[%s15911_s25 + $0x108] sm:$0xff] }
 0x269   : > { %v13224_v51 = vadd.f32 %v13223_v49, %v13222_v47  ;;  %v13225_v55 = vpop.f32.mrb[34].mxu1  ;;  %v13204_v58 = vpop.f32.mrb[35].mxu0  ;;  %13525 = vmatpush3.bf16.msra.mxu1 %v14907_v59  ;;  %13504 = vmatprep.subr.bf16.mxu0 %v14908_v62  ;;  %v14945_v49 = vld [vmem:[%s15887_s29 + $0x10f0] sm:$0xff]   ;;  %v14949_v53 = vld [vmem:[%s15887_s29 + $0x10f8] sm:$0xff]   ;;  %v14956_v62 = vld [vmem:[%s15887_s29 + $0x1140] sm:$0xff]  }
 0x26a   : > { %v9648_v56 = vadd.f32 %v13202_v50, %v16436_v12  ;;  %v13226_v60 = vpop.f32.mrb[35].mxu1  ;;  %13526 = vmatprep.subr.bf16.mxu1 %v14909_v63  ;;  %v14920_v12 = vld [vmem:[%s15887_s29 + $0x1040] sm:$0xff]   ;;  %v14946_v50 = vld [vmem:[%s15887_s29 + $0x1030] sm:$0xff]   ;;  %v14951_v55 = vld [vmem:[%s15887_s29 + $0x10b8] sm:$0xff]  }
 0x26b   : > { %v11741_v60 = vcombine.low %v302_v57, %v302_v57  ;;  %v14957_v63 = vld [vmem:[%s15887_s29 + $0x11c0] sm:$0xff]  }
 0x26c   : > { %v16472_v61 = vadd.f32 %v13224_v51, %v9648_v56  ;;  %13505 = vmatpush3.bf16.msra.mxu0 %v14910_v0  ;;  %v14947_v51 = vld [vmem:[%s15887_s29 + $0x10b0] sm:$0xff]   ;;  %v301_v56 = vld [vmem:[%s15911_s25 + $0x100] sm:$0xff]  ;;  %v14958_v0 = vld [vmem:[%s15887_s29 + $0x1100] sm:$0xff]  }
 0x26d   : > { %13527 = vmatpush3.bf16.msra.mxu1 %v14911_v1  ;;  %13506 = vmatprep.subr.bf16.mxu0 %v14912_v2  ;;  %v11739_v58 = vcombine.low %v301_v56, %v301_v56  ;;  %v11740_v59 = vcombine.high %v301_v56, %v301_v56  ;;  %v14959_v1 = vld [vmem:[%s15887_s29 + $0x1180] sm:$0xff]   ;;  %v14960_v2 = vld [vmem:[%s15887_s29 + $0x1148] sm:$0xff]   ;;  %v15000_v56 = vld [vmem:[%s15887_s29 + $0x1250] sm:$0xff]  }
 0x26e   : > { %13528 = vmatprep.subr.bf16.mxu1 %v14913_v3  ;;  %v14961_v3 = vld [vmem:[%s15887_s29 + $0x11c8] sm:$0xff]  }
 0x270   : > { %13507 = vmatpush3.bf16.msra.mxu0 %v14914_v4  ;;  %v14962_v4 = vld [vmem:[%s15887_s29 + $0x1108] sm:$0xff]  }
 0x271   : > { %13529 = vmatpush3.bf16.msra.mxu1 %v14915_v5  ;;  %13536 = vmatprep.subr.bf16.mxu0 %v14920_v12  ;;  %v14963_v5 = vld [vmem:[%s15887_s29 + $0x1188] sm:$0xff]   ;;  %v14970_v12 = vld [vmem:[%s15887_s29 + $0x1118] sm:$0xff]  }
 0x272   : > { %13558 = vmatprep.subr.bf16.mxu1 %v14921_v13  ;;  %v14971_v13 = vld [vmem:[%s15887_s29 + $0x1198] sm:$0xff]  }
 0x273   : > { %10206 = vmatmul.mubr.bf16.vlgmr.msra.gmra.mrb[60].mxu0 %v11735_v8  ;;  %v14966_v8 = vld [vmem:[%s15887_s29 + $0x1110] sm:$0xff]  }
 0x274   : > { %10246 = vmatmul.mubr.bf16.vlgmr.msra.gmra.mrb[60].mxu1 %v11737_v10  ;;  %13537 = vmatpush3.bf16.msra.mxu0 %v14922_v14  ;;  %v14968_v10 = vld [vmem:[%s15887_s29 + $0x1158] sm:$0xff]   ;;  %v14972_v14 = vld [vmem:[%s15887_s29 + $0x1160] sm:$0xff]  }
 0x275   : > { %13559 = vmatpush3.bf16.msra.mxu1 %v14923_v15  ;;  %13538 = vmatprep.subr.bf16.mxu0 %v14924_v16  ;;  %v14973_v15 = vld [vmem:[%s15887_s29 + $0x11e0] sm:$0xff]  }
 0x276   : > { %13560 = vmatprep.subr.bf16.mxu1 %v14925_v17  ;;  %10285 = vmatprep.mubr.bf16.mxu0 %v11740_v59  ;;  %v14974_v17 = vld [vmem:[%s15887_s29 + $0x1120] sm:$0xff]   ;;  %v15003_v59 = vld [vmem:[%s15887_s29 + $0x1290] sm:$0xff]  }
 0x278   : > { %13539 = vmatpush3.bf16.msra.mxu0 %v14926_v18 }
 0x279   : > { %13561 = vmatpush3.bf16.msra.mxu1 %v14927_v19  ;;  %13540 = vmatprep.subr.bf16.mxu0 %v14928_v20  ;;  %v14975_v19 = vld [vmem:[%s15887_s29 + $0x11a0] sm:$0xff]  }
 0x27a   : > { %13562 = vmatprep.subr.bf16.mxu1 %v14929_v21 }
 0x27c   : > { %13541 = vmatpush3.bf16.msra.mxu0 %v14930_v22 }
 0x27d   : > { %13563 = vmatpush3.bf16.msra.mxu1 %v14931_v23  ;;  %13542 = vmatprep.subr.bf16.mxu0 %v14932_v24  ;;  %v14976_v23 = vld [vmem:[%s15887_s29 + $0x1168] sm:$0xff]  }
 0x27e   : > { %13564 = vmatprep.subr.bf16.mxu1 %v14933_v25  ;;  %v14977_v25 = vld [vmem:[%s15887_s29 + $0x11e8] sm:$0xff]  }
 0x280   : > { %13543 = vmatpush3.bf16.msra.mxu0 %v14934_v26 }
 0x281   : > { %13565 = vmatpush3.bf16.msra.mxu1 %v14935_v27  ;;  %13544 = vmatprep.subr.bf16.mxu0 %v14936_v28 }
 0x282   : > { %13566 = vmatprep.subr.bf16.mxu1 %v14937_v29  ;;  %v14978_v29 = vld [vmem:[%s15887_s29 + $0x1128] sm:$0xff]  }
 0x284   : > { %13545 = vmatpush3.bf16.msra.mxu0 %v14938_v30  ;;  %v14979_v30 = vld [vmem:[%s15887_s29 + $0x11a8] sm:$0xff]  }
 0x285   : > { %13567 = vmatpush3.bf16.msra.mxu1 %v14939_v32  ;;  %13546 = vmatprep.subr.bf16.mxu0 %v14940_v38  ;;  %v14984_v38 = vld [vmem:[%s15887_s29 + $0x1178] sm:$0xff]  }
 0x286   : > { %v13244_v31 = vpop.f32.mrb[36].mxu0  ;;  %13568 = vmatprep.subr.bf16.mxu1 %v14941_v40  ;;  %v14986_v40 = vld [vmem:[%s15887_s29 + $0x1138] sm:$0xff]  }
 0x287   : > { %v13266_v33 = vpop.f32.mrb[36].mxu1  ;;  %v13245_v34 = vpop.f32.mrb[37].mxu0 }
 0x288   : > { %v13267_v35 = vpop.f32.mrb[37].mxu1  ;;  %v13246_v36 = vadd.f32 %v13245_v34, %v13244_v31  ;;  %v13247_v39 = vpop.f32.mrb[38].mxu0  ;;  %13547 = vmatpush3.bf16.msra.mxu0 %v14942_v43  ;;  %v14980_v34 = vld [vmem:[%s15887_s29 + $0x1170] sm:$0xff]  }
 0x289   : > { %v13268_v37 = vadd.f32 %v13267_v35, %v13266_v33  ;;  %v13269_v41 = vpop.f32.mrb[38].mxu1  ;;  %v13248_v44 = vpop.f32.mrb[39].mxu0  ;;  %13569 = vmatpush3.bf16.msra.mxu1 %v14943_v45  ;;  %13548 = vmatprep.subr.bf16.mxu0 %v14944_v48  ;;  %v14981_v35 = vld [vmem:[%s15887_s29 + $0x11f0] sm:$0xff]   ;;  %v14985_v39 = vld [vmem:[%s15887_s29 + $0x11f8] sm:$0xff]  }
 0x28a   : > { %v9728_v42 = vadd.f32 %v13246_v36, %v16472_v61  ;;  %v13270_v46 = vpop.f32.mrb[39].mxu1  ;;  %13570 = vmatprep.subr.bf16.mxu1 %v14945_v49  ;;  %v11742_v61 = vcombine.high %v302_v57, %v302_v57  ;;  %v14982_v36 = vld [vmem:[%s15887_s29 + $0x1130] sm:$0xff]   ;;  %v14987_v41 = vld [vmem:[%s15887_s29 + $0x11b8] sm:$0xff]   ;;  %v14993_v49 = vld [vmem:[%s15887_s29 + $0x12c0] sm:$0xff]  }
 0x28b   : > { %v304_v43 = vld [vmem:[%s15911_s25 + $0x118] sm:$0xff] }
 0x28c   : > { %v16509_v47 = vadd.f32 %v13268_v37, %v9728_v42  ;;  %13549 = vmatpush3.bf16.msra.mxu0 %v14946_v50  ;;  %10325 = vmatprep.mubr.bf16.mxu1 %v11742_v61  ;;  %v14983_v37 = vld [vmem:[%s15887_s29 + $0x11b0] sm:$0xff]   ;;  %v303_v42 = vld [vmem:[%s15911_s25 + $0x110] sm:$0xff]  ;;  %v11745_v46 = vcombine.low %v304_v43, %v304_v43  ;;  %v11746_v48 = vcombine.high %v304_v43, %v304_v43  ;;  %v14994_v50 = vld [vmem:[%s15887_s29 + $0x1200] sm:$0xff]  }
 0x28d   : > { %13571 = vmatpush3.bf16.msra.mxu1 %v14947_v51  ;;  %13550 = vmatprep.subr.bf16.mxu0 %v14948_v52  ;;  %v11743_v44 = vcombine.low %v303_v42, %v303_v42  ;;  %v11744_v45 = vcombine.high %v303_v42, %v303_v42  ;;  %v14995_v51 = vld [vmem:[%s15887_s29 + $0x1280] sm:$0xff]   ;;  %v14996_v52 = vld [vmem:[%s15887_s29 + $0x1248] sm:$0xff]   ;;  %v15001_v57 = vld [vmem:[%s15887_s29 + $0x12d0] sm:$0xff]  }
 0x28e   : > { %13572 = vmatprep.subr.bf16.mxu1 %v14949_v53  ;;  %v14997_v53 = vld [vmem:[%s15887_s29 + $0x12c8] sm:$0xff]   ;;  %v15005_v61 = vld [vmem:[%s15887_s29 + $0x12d8] sm:$0xff]   ;;  %v15036_v42 = vld [vmem:[%s15887_s29 + $0x1350] sm:$0xff]  }
 0x28f   : > { %v15037_v43 = vld [vmem:[%s15887_s29 + $0x13d0] sm:$0xff]  }
 0x290   : > { %13551 = vmatpush3.bf16.msra.mxu0 %v14950_v54  ;;  %v14998_v54 = vld [vmem:[%s15887_s29 + $0x1208] sm:$0xff]  }
 0x291   : > { %13573 = vmatpush3.bf16.msra.mxu1 %v14951_v55  ;;  %13580 = vmatprep.subr.bf16.mxu0 %v14956_v62  ;;  %v14999_v55 = vld [vmem:[%s15887_s29 + $0x1288] sm:$0xff]   ;;  %v15006_v62 = vld [vmem:[%s15887_s29 + $0x1218] sm:$0xff]  }
 0x292   : > { %13602 = vmatprep.subr.bf16.mxu1 %v14957_v63  ;;  %v15007_v63 = vld [vmem:[%s15887_s29 + $0x1298] sm:$0xff]  }
 0x293   : > { %10286 = vmatmul.mubr.bf16.vlgmr.msra.gmra.mrb[64].mxu0 %v11739_v58  ;;  %v15002_v58 = vld [vmem:[%s15887_s29 + $0x1210] sm:$0xff]  }
 0x294   : > { %10326 = vmatmul.mubr.bf16.vlgmr.msra.gmra.mrb[64].mxu1 %v11741_v60  ;;  %13581 = vmatpush3.bf16.msra.mxu0 %v14958_v0  ;;  %v15004_v60 = vld [vmem:[%s15887_s29 + $0x1258] sm:$0xff]   ;;  %v15008_v0 = vld [vmem:[%s15887_s29 + $0x1260] sm:$0xff]  }
 0x295   : > { %13603 = vmatpush3.bf16.msra.mxu1 %v14959_v1  ;;  %13582 = vmatprep.subr.bf16.mxu0 %v14960_v2  ;;  %v15009_v1 = vld [vmem:[%s15887_s29 + $0x12e0] sm:$0xff]  }
 0x296   : > { %13604 = vmatprep.subr.bf16.mxu1 %v14961_v3  ;;  %10365 = vmatprep.mubr.bf16.mxu0 %v11744_v45  ;;  %v15010_v3 = vld [vmem:[%s15887_s29 + $0x1220] sm:$0xff]   ;;  %v15039_v45 = vld [vmem:[%s15887_s29 + $0x1390] sm:$0xff]  }
 0x297   : > { %10405 = vmatprep.mubr.bf16.mxu1 %v11746_v48  ;;  %v15042_v48 = vld [vmem:[%s15887_s29 + $0x1318] sm:$0xff]  }
 0x298   : > { %13583 = vmatpush3.bf16.msra.mxu0 %v14962_v4 }
 0x299   : > { %13605 = vmatpush3.bf16.msra.mxu1 %v14963_v5  ;;  %13584 = vmatprep.subr.bf16.mxu0 %v14964_v6  ;;  %v15011_v5 = vld [vmem:[%s15887_s29 + $0x12a0] sm:$0xff]  }
 0x29a   : > { %13606 = vmatprep.subr.bf16.mxu1 %v14965_v7 }
 0x29c   : > { %13585 = vmatpush3.bf16.msra.mxu0 %v14966_v8  ;;  %v15012_v8 = vld [vmem:[%s15887_s29 + $0x1268] sm:$0xff]  }
 0x29d   : > { %13607 = vmatpush3.bf16.msra.mxu1 %v14967_v9  ;;  %13586 = vmatprep.subr.bf16.mxu0 %v14968_v10 }
 0x29e   : > { %13608 = vmatprep.subr.bf16.mxu1 %v14969_v11  ;;  %v15013_v11 = vld [vmem:[%s15887_s29 + $0x12e8] sm:$0xff]  }
 0x2a0   : > { %13587 = vmatpush3.bf16.msra.mxu0 %v14970_v12 }
 0x2a1   : > { %13609 = vmatpush3.bf16.msra.mxu1 %v14971_v13  ;;  %13588 = vmatprep.subr.bf16.mxu0 %v14972_v14  ;;  %v15014_v14 = vld [vmem:[%s15887_s29 + $0x1228] sm:$0xff]  }
 0x2a2   : > { %13610 = vmatprep.subr.bf16.mxu1 %v14973_v15 }
 0x2a4   : > { %13589 = vmatpush3.bf16.msra.mxu0 %v14974_v17 }
 0x2a5   : > { %13611 = vmatpush3.bf16.msra.mxu1 %v14975_v19  ;;  %13590 = vmatprep.subr.bf16.mxu0 %v14976_v23  ;;  %v15016_v19 = vld [vmem:[%s15887_s29 + $0x1270] sm:$0xff]  }
 0x2a6   : > { %v13288_v16 = vpop.f32.mrb[40].mxu0  ;;  %13612 = vmatprep.subr.bf16.mxu1 %v14977_v25  ;;  %v15019_v23 = vld [vmem:[%s15887_s29 + $0x12b0] sm:$0xff]   ;;  %v15021_v25 = vld [vmem:[%s15887_s29 + $0x12f8] sm:$0xff]  }
 0x2a7   : > { %v13310_v18 = vpop.f32.mrb[40].mxu1  ;;  %v13289_v20 = vpop.f32.mrb[41].mxu0 }
 0x2a8   : > { %v13290_v21 = vadd.f32 %v13289_v20, %v13288_v16  ;;  %v13311_v22 = vpop.f32.mrb[41].mxu1  ;;  %v13291_v26 = vpop.f32.mrb[42].mxu0  ;;  %13591 = vmatpush3.bf16.msra.mxu0 %v14978_v29  ;;  %v15015_v16 = vld [vmem:[%s15887_s29 + $0x12a8] sm:$0xff]  }
 0x2a9   : > { %v13312_v24 = vadd.f32 %v13311_v22, %v13310_v18  ;;  %v13313_v28 = vpop.f32.mrb[42].mxu1  ;;  %v13292_v31 = vpop.f32.mrb[43].mxu0  ;;  %13613 = vmatpush3.bf16.msra.mxu1 %v14979_v30  ;;  %13592 = vmatprep.subr.bf16.mxu0 %v14980_v34  ;;  %v15018_v22 = vld [vmem:[%s15887_s29 + $0x1230] sm:$0xff]   ;;  %v15022_v26 = vld [vmem:[%s15887_s29 + $0x1238] sm:$0xff]   ;;  %v15028_v34 = vld [vmem:[%s15887_s29 + $0x1340] sm:$0xff]  }
 0x2aa   : > { %v9808_v27 = vadd.f32 %v13290_v21, %v16509_v47  ;;  %v13314_v33 = vpop.f32.mrb[43].mxu1  ;;  %13614 = vmatprep.subr.bf16.mxu1 %v14981_v35  ;;  %v14992_v47 = vld [vmem:[%s15887_s29 + $0x1240] sm:$0xff]   ;;  %v15017_v21 = vld [vmem:[%s15887_s29 + $0x12f0] sm:$0xff]   ;;  %v305_v28 = vld [vmem:[%s15911_s25 + $0x120] sm:$0xff] }
 0x2ab   : > { %v11747_v29 = vcombine.low %v305_v28, %v305_v28  ;;  %v11748_v30 = vcombine.high %v305_v28, %v305_v28  ;;  %v306_v31 = vld [vmem:[%s15911_s25 + $0x128] sm:$0xff]  ;;  %v15072_v28 = vld [vmem:[%s15887_s29 + $0x1450] sm:$0xff]  }
 0x2ac   : > { %v16546_v32 = vadd.f32 %v13312_v24, %v9808_v27  ;;  %13593 = vmatpush3.bf16.msra.mxu0 %v14982_v36  ;;  %v15020_v24 = vld [vmem:[%s15887_s29 + $0x1278] sm:$0xff]   ;;  %v11750_v33 = vcombine.high %v306_v31, %v306_v31  ;;  %v15029_v35 = vld [vmem:[%s15887_s29 + $0x13c0] sm:$0xff]  }
 0x2ad   : > { %13615 = vmatpush3.bf16.msra.mxu1 %v14983_v37  ;;  %13594 = vmatprep.subr.bf16.mxu0 %v14984_v38  ;;  %v15023_v27 = vld [vmem:[%s15887_s29 + $0x12b8] sm:$0xff]   ;;  %v15030_v36 = vld [vmem:[%s15887_s29 + $0x1300] sm:$0xff]   ;;  %v15032_v38 = vld [vmem:[%s15887_s29 + $0x1348] sm:$0xff]  }
 0x2ae   : > { %13616 = vmatprep.subr.bf16.mxu1 %v14985_v39  ;;  %v15031_v37 = vld [vmem:[%s15887_s29 + $0x1380] sm:$0xff]   ;;  %v15033_v39 = vld [vmem:[%s15887_s29 + $0x13c8] sm:$0xff]  }
 0x2b0   : > { %13595 = vmatpush3.bf16.msra.mxu0 %v14986_v40  ;;  %v15034_v40 = vld [vmem:[%s15887_s29 + $0x1308] sm:$0xff]  }
 0x2b1   : > { %13617 = vmatpush3.bf16.msra.mxu1 %v14987_v41  ;;  %13624 = vmatprep.subr.bf16.mxu0 %v14992_v47  ;;  %v15035_v41 = vld [vmem:[%s15887_s29 + $0x1388] sm:$0xff]   ;;  %v15041_v47 = vld [vmem:[%s15887_s29 + $0x13d8] sm:$0xff]  }
 0x2b2   : > { %13646 = vmatprep.subr.bf16.mxu1 %v14993_v49  ;;  %v15043_v49 = vld [vmem:[%s15887_s29 + $0x1398] sm:$0xff]  }
 0x2b3   : > { %10366 = vmatmul.mubr.bf16.vlgmr.msra.gmra.mrb[68].mxu0 %v11743_v44  ;;  %v15038_v44 = vld [vmem:[%s15887_s29 + $0x1310] sm:$0xff]  }
 0x2b4   : > { %10406 = vmatmul.mubr.bf16.vlgmr.msra.gmra.mrb[68].mxu1 %v11745_v46  ;;  %13625 = vmatpush3.bf16.msra.mxu0 %v14994_v50  ;;  %v15040_v46 = vld [vmem:[%s15887_s29 + $0x1358] sm:$0xff]   ;;  %v15044_v50 = vld [vmem:[%s15887_s29 + $0x1360] sm:$0xff]  }
 0x2b5   : > { %13647 = vmatpush3.bf16.msra.mxu1 %v14995_v51  ;;  %13626 = vmatprep.subr.bf16.mxu0 %v14996_v52  ;;  %v15045_v51 = vld [vmem:[%s15887_s29 + $0x13e0] sm:$0xff]  }
 0x2b6   : > { %13648 = vmatprep.subr.bf16.mxu1 %v14997_v53  ;;  %10445 = vmatprep.mubr.bf16.mxu0 %v11748_v30  ;;  %v15046_v53 = vld [vmem:[%s15887_s29 + $0x1320] sm:$0xff]   ;;  %v15074_v30 = vld [vmem:[%s15887_s29 + $0x1410] sm:$0xff]  }
 0x2b7   : > { %10485 = vmatprep.mubr.bf16.mxu1 %v11750_v33  ;;  %v15077_v33 = vld [vmem:[%s15887_s29 + $0x14d8] sm:$0xff]  }
 0x2b8   : > { %13627 = vmatpush3.bf16.msra.mxu0 %v14998_v54 }
 0x2b9   : > { %13649 = vmatpush3.bf16.msra.mxu1 %v14999_v55  ;;  %13628 = vmatprep.subr.bf16.mxu0 %v15000_v56  ;;  %v15047_v55 = vld [vmem:[%s15887_s29 + $0x13a0] sm:$0xff]  }
 0x2ba   : > { %13650 = vmatprep.subr.bf16.mxu1 %v15001_v57 }
 0x2bc   : > { %13629 = vmatpush3.bf16.msra.mxu0 %v15002_v58  ;;  %v15048_v58 = vld [vmem:[%s15887_s29 + $0x1368] sm:$0xff]  }
 0x2bd   : > { %13651 = vmatpush3.bf16.msra.mxu1 %v15003_v59  ;;  %13630 = vmatprep.subr.bf16.mxu0 %v15004_v60 }
 0x2be   : > { %13652 = vmatprep.subr.bf16.mxu1 %v15005_v61  ;;  %v15049_v61 = vld [vmem:[%s15887_s29 + $0x13e8] sm:$0xff]  }
 0x2c0   : > { %13631 = vmatpush3.bf16.msra.mxu0 %v15006_v62 }
 0x2c1   : > { %13653 = vmatpush3.bf16.msra.mxu1 %v15007_v63  ;;  %13632 = vmatprep.subr.bf16.mxu0 %v15008_v0  ;;  %v15050_v0 = vld [vmem:[%s15887_s29 + $0x1328] sm:$0xff]  }
 0x2c2   : > { %13654 = vmatprep.subr.bf16.mxu1 %v15009_v1 }
 0x2c4   : > { %13633 = vmatpush3.bf16.msra.mxu0 %v15010_v3 }
 0x2c5   : > { %13655 = vmatpush3.bf16.msra.mxu1 %v15011_v5  ;;  %13634 = vmatprep.subr.bf16.mxu0 %v15012_v8  ;;  %v15052_v5 = vld [vmem:[%s15887_s29 + $0x1370] sm:$0xff]  }
 0x2c6   : > { %v13332_v2 = vpop.f32.mrb[44].mxu0  ;;  %13656 = vmatprep.subr.bf16.mxu1 %v15013_v11  ;;  %v15054_v8 = vld [vmem:[%s15887_s29 + $0x1330] sm:$0xff]   ;;  %v15057_v11 = vld [vmem:[%s15887_s29 + $0x13f8] sm:$0xff]  }
 0x2c7   : > { %v13354_v4 = vpop.f32.mrb[44].mxu1  ;;  %v13333_v6 = vpop.f32.mrb[45].mxu0 }
 0x2c8   : > { %v13355_v7 = vpop.f32.mrb[45].mxu1  ;;  %v13334_v9 = vadd.f32 %v13333_v6, %v13332_v2  ;;  %v13335_v12 = vpop.f32.mrb[46].mxu0  ;;  %13635 = vmatpush3.bf16.msra.mxu0 %v15014_v14  ;;  %v15051_v2 = vld [vmem:[%s15887_s29 + $0x13a8] sm:$0xff]  }
 0x2c9   : > { %v13356_v10 = vadd.f32 %v13355_v7, %v13354_v4  ;;  %v13357_v13 = vpop.f32.mrb[46].mxu1  ;;  %v13336_v17 = vpop.f32.mrb[47].mxu0  ;;  %13657 = vmatpush3.bf16.msra.mxu1 %v15015_v16  ;;  %13636 = vmatprep.subr.bf16.mxu0 %v15016_v19  ;;  %v15053_v7 = vld [vmem:[%s15887_s29 + $0x13f0] sm:$0xff]   ;;  %v15058_v12 = vld [vmem:[%s15887_s29 + $0x1338] sm:$0xff]   ;;  %v307_v14 = vld [vmem:[%s15911_s25 + $0x130] sm:$0xff] }
 0x2ca   : > { %v9888_v15 = vadd.f32 %v13334_v9, %v16546_v32  ;;  %v13358_v18 = vpop.f32.mrb[47].mxu1  ;;  %13658 = vmatprep.subr.bf16.mxu1 %v15017_v21  ;;  %v11749_v32 = vcombine.low %v306_v31, %v306_v31  ;;  %v15055_v9 = vld [vmem:[%s15887_s29 + $0x13b0] sm:$0xff]   ;;  %v15059_v13 = vld [vmem:[%s15887_s29 + $0x13b8] sm:$0xff]   ;;  %v11751_v16 = vcombine.low %v307_v14, %v307_v14  ;;  %v11752_v17 = vcombine.high %v307_v14, %v307_v14  ;;  %v15065_v21 = vld [vmem:[%s15887_s29 + $0x14c0] sm:$0xff]  }
 0x2cb   : > { %v15075_v31 = vld [vmem:[%s15887_s29 + $0x1490] sm:$0xff]  }
 0x2cc   : > { %v16584_v20 = vadd.f32 %v13356_v10, %v9888_v15  ;;  %13637 = vmatpush3.bf16.msra.mxu0 %v15018_v22  ;;  %v15056_v10 = vld [vmem:[%s15887_s29 + $0x1378] sm:$0xff]   ;;  %v308_v15 = vld [vmem:[%s15911_s25 + $0x138] sm:$0xff]  ;;  %v15066_v22 = vld [vmem:[%s15887_s29 + $0x1400] sm:$0xff]  }
 0x2cd   : > { %13659 = vmatpush3.bf16.msra.mxu1 %v15019_v23  ;;  %13638 = vmatprep.subr.bf16.mxu0 %v15020_v24  ;;  %v11753_v18 = vcombine.low %v308_v15, %v308_v15  ;;  %v11754_v19 = vcombine.high %v308_v15, %v308_v15  ;;  %v15067_v23 = vld [vmem:[%s15887_s29 + $0x1480] sm:$0xff]   ;;  %v15068_v24 = vld [vmem:[%s15887_s29 + $0x1448] sm:$0xff]   ;;  %v15108_v14 = vld [vmem:[%s15887_s29 + $0x1550] sm:$0xff]  }
 0x2ce   : > { %13660 = vmatprep.subr.bf16.mxu1 %v15021_v25  ;;  %v15069_v25 = vld [vmem:[%s15887_s29 + $0x14c8] sm:$0xff]   ;;  %v15109_v15 = vld [vmem:[%s15887_s29 + $0x15d0] sm:$0xff]  }
 0x2d0   : > { %13639 = vmatpush3.bf16.msra.mxu0 %v15022_v26  ;;  %v15070_v26 = vld [vmem:[%s15887_s29 + $0x1408] sm:$0xff]  }
 0x2d1   : > { %13661 = vmatpush3.bf16.msra.mxu1 %v15023_v27  ;;  %13668 = vmatprep.subr.bf16.mxu0 %v15028_v34  ;;  %v15071_v27 = vld [vmem:[%s15887_s29 + $0x1488] sm:$0xff]   ;;  %v15078_v34 = vld [vmem:[%s15887_s29 + $0x1418] sm:$0xff]  }
 0x2d2   : > { %13690 = vmatprep.subr.bf16.mxu1 %v15029_v35  ;;  %v15079_v35 = vld [vmem:[%s15887_s29 + $0x1498] sm:$0xff]  }
 0x2d3   : > { %10446 = vmatmul.mubr.bf16.vlgmr.msra.gmra.mrb[72].mxu0 %v11747_v29  ;;  %v15073_v29 = vld [vmem:[%s15887_s29 + $0x14d0] sm:$0xff]  }
 0x2d4   : > { %10486 = vmatmul.mubr.bf16.vlgmr.msra.gmra.mrb[72].mxu1 %v11749_v32  ;;  %13669 = vmatpush3.bf16.msra.mxu0 %v15030_v36  ;;  %v15076_v32 = vld [vmem:[%s15887_s29 + $0x1458] sm:$0xff]   ;;  %v15080_v36 = vld [vmem:[%s15887_s29 + $0x1460] sm:$0xff]  }
 0x2d5   : > { %13691 = vmatpush3.bf16.msra.mxu1 %v15031_v37  ;;  %13670 = vmatprep.subr.bf16.mxu0 %v15032_v38  ;;  %v15081_v37 = vld [vmem:[%s15887_s29 + $0x14e0] sm:$0xff]  }
 0x2d6   : > { %13692 = vmatprep.subr.bf16.mxu1 %v15033_v39  ;;  %10525 = vmatprep.mubr.bf16.mxu0 %v11752_v17  ;;  %v15082_v38 = vld [vmem:[%s15887_s29 + $0x1420] sm:$0xff]   ;;  %v15111_v17 = vld [vmem:[%s15887_s29 + $0x1590] sm:$0xff]  }
 0x2d7   : > { %10565 = vmatprep.mubr.bf16.mxu1 %v11754_v19  ;;  %v15113_v19 = vld [vmem:[%s15887_s29 + $0x15d8] sm:$0xff]  }
 0x2d8   : > { %13671 = vmatpush3.bf16.msra.mxu0 %v15034_v40  ;;  %v15083_v40 = vld [vmem:[%s15887_s29 + $0x14a0] sm:$0xff]  }
 0x2d9   : > { %13693 = vmatpush3.bf16.msra.mxu1 %v15035_v41  ;;  %13672 = vmatprep.subr.bf16.mxu0 %v15036_v42 }
 0x2da   : > { %13694 = vmatprep.subr.bf16.mxu1 %v15037_v43 }
 0x2dc   : > { %13673 = vmatpush3.bf16.msra.mxu0 %v15038_v44 }
 0x2dd   : > { %13695 = vmatpush3.bf16.msra.mxu1 %v15039_v45  ;;  %13674 = vmatprep.subr.bf16.mxu0 %v15040_v46  ;;  %v15084_v46 = vld [vmem:[%s15887_s29 + $0x1468] sm:$0xff]  }
 0x2de   : > { %13696 = vmatprep.subr.bf16.mxu1 %v15041_v47 }
 0x2e0   : > { %13675 = vmatpush3.bf16.msra.mxu0 %v15042_v48  ;;  %v15085_v48 = vld [vmem:[%s15887_s29 + $0x14e8] sm:$0xff]  }
 0x2e1   : > { %13697 = vmatpush3.bf16.msra.mxu1 %v15043_v49  ;;  %13676 = vmatprep.subr.bf16.mxu0 %v15044_v50 }
 0x2e2   : > { %13698 = vmatprep.subr.bf16.mxu1 %v15045_v51  ;;  %v15086_v51 = vld [vmem:[%s15887_s29 + $0x1428] sm:$0xff]  }
 0x2e4   : > { %13677 = vmatpush3.bf16.msra.mxu0 %v15046_v53  ;;  %v15087_v53 = vld [vmem:[%s15887_s29 + $0x14a8] sm:$0xff]  }
 0x2e5   : > { %13699 = vmatpush3.bf16.msra.mxu1 %v15047_v55  ;;  %13678 = vmatprep.subr.bf16.mxu0 %v15048_v58  ;;  %v15090_v58 = vld [vmem:[%s15887_s29 + $0x1430] sm:$0xff]  }
 0x2e6   : > { %v13376_v52 = vpop.f32.mrb[48].mxu0  ;;  %13700 = vmatprep.subr.bf16.mxu1 %v15049_v61  ;;  %v15093_v61 = vld [vmem:[%s15887_s29 + $0x14f8] sm:$0xff]  }
 0x2e7   : > { %v13398_v54 = vpop.f32.mrb[48].mxu1  ;;  %v13377_v56 = vpop.f32.mrb[49].mxu0 }
 0x2e8   : > { %v13399_v57 = vpop.f32.mrb[49].mxu1  ;;  %v13378_v59 = vadd.f32 %v13377_v56, %v13376_v52  ;;  %v13379_v62 = vpop.f32.mrb[50].mxu0  ;;  %13679 = vmatpush3.bf16.msra.mxu0 %v15050_v0  ;;  %v15088_v56 = vld [vmem:[%s15887_s29 + $0x1470] sm:$0xff]   ;;  %v309_v0 = vld [vmem:[%s15911_s25 + $0x140] sm:$0xff] }
 0x2e9   : > { %v13400_v60 = vadd.f32 %v13399_v57, %v13398_v54  ;;  %v13401_v63 = vpop.f32.mrb[50].mxu1  ;;  %v13380_v3 = vpop.f32.mrb[51].mxu0  ;;  %13701 = vmatpush3.bf16.msra.mxu1 %v15051_v2  ;;  %13680 = vmatprep.subr.bf16.mxu0 %v15052_v5  ;;  %v15089_v57 = vld [vmem:[%s15887_s29 + $0x14f0] sm:$0xff]   ;;  %v15094_v62 = vld [vmem:[%s15887_s29 + $0x1438] sm:$0xff]   ;;  %v11755_v2 = vcombine.low %v309_v0, %v309_v0 }
 0x2ea   : > { %v9968_v1 = vadd.f32 %v13378_v59, %v16584_v20  ;;  %v13402_v4 = vpop.f32.mrb[51].mxu1  ;;  %13702 = vmatprep.subr.bf16.mxu1 %v15053_v7  ;;  %v15064_v20 = vld [vmem:[%s15887_s29 + $0x1440] sm:$0xff]   ;;  %v15091_v59 = vld [vmem:[%s15887_s29 + $0x14b0] sm:$0xff]   ;;  %v15095_v63 = vld [vmem:[%s15887_s29 + $0x14b8] sm:$0xff]   ;;  %v11756_v3 = vcombine.high %v309_v0, %v309_v0 }
 0x2eb   : > { %v15101_v7 = vld [vmem:[%s15887_s29 + $0x15c0] sm:$0xff]   ;;  %v15144_v0 = vld [vmem:[%s15887_s29 + $0x1650] sm:$0xff]  }
 0x2ec   : > { %v16621_v6 = vadd.f32 %v13400_v60, %v9968_v1  ;;  %13681 = vmatpush3.bf16.msra.mxu0 %v15054_v8  ;;  %v15092_v60 = vld [vmem:[%s15887_s29 + $0x1478] sm:$0xff]   ;;  %v310_v1 = vld [vmem:[%s15911_s25 + $0x148] sm:$0xff] }
 0x2ed   : > { %13703 = vmatpush3.bf16.msra.mxu1 %v15055_v9  ;;  %13682 = vmatprep.subr.bf16.mxu0 %v15056_v10  ;;  %v11757_v4 = vcombine.low %v310_v1, %v310_v1  ;;  %v11758_v5 = vcombine.high %v310_v1, %v310_v1  ;;  %v15102_v8 = vld [vmem:[%s15887_s29 + $0x1500] sm:$0xff]   ;;  %v15104_v10 = vld [vmem:[%s15887_s29 + $0x1548] sm:$0xff]   ;;  %v15145_v1 = vld [vmem:[%s15887_s29 + $0x16d0] sm:$0xff]  }
 0x2ee   : > { %13704 = vmatprep.subr.bf16.mxu1 %v15057_v11  ;;  %v15103_v9 = vld [vmem:[%s15887_s29 + $0x1580] sm:$0xff]   ;;  %v15105_v11 = vld [vmem:[%s15887_s29 + $0x15c8] sm:$0xff]  }
 0x2f0   : > { %13683 = vmatpush3.bf16.msra.mxu0 %v15058_v12  ;;  %v15106_v12 = vld [vmem:[%s15887_s29 + $0x1508] sm:$0xff]  }
 0x2f1   : > { %13705 = vmatpush3.bf16.msra.mxu1 %v15059_v13  ;;  %13712 = vmatprep.subr.bf16.mxu0 %v15064_v20  ;;  %v15107_v13 = vld [vmem:[%s15887_s29 + $0x1588] sm:$0xff]   ;;  %v15114_v20 = vld [vmem:[%s15887_s29 + $0x1518] sm:$0xff]  }
 0x2f2   : > { %13734 = vmatprep.subr.bf16.mxu1 %v15065_v21  ;;  %v15115_v21 = vld [vmem:[%s15887_s29 + $0x1598] sm:$0xff]  }
 0x2f3   : > { %10526 = vmatmul.mubr.bf16.vlgmr.msra.gmra.mrb[76].mxu0 %v11751_v16  ;;  %v15110_v16 = vld [vmem:[%s15887_s29 + $0x1510] sm:$0xff]  }
 0x2f4   : > { %10566 = vmatmul.mubr.bf16.vlgmr.msra.gmra.mrb[76].mxu1 %v11753_v18  ;;  %13713 = vmatpush3.bf16.msra.mxu0 %v15066_v22  ;;  %v15112_v18 = vld [vmem:[%s15887_s29 + $0x1558] sm:$0xff]   ;;  %v15116_v22 = vld [vmem:[%s15887_s29 + $0x1560] sm:$0xff]  }
 0x2f5   : > { %13735 = vmatpush3.bf16.msra.mxu1 %v15067_v23  ;;  %13714 = vmatprep.subr.bf16.mxu0 %v15068_v24  ;;  %v15117_v23 = vld [vmem:[%s15887_s29 + $0x15e0] sm:$0xff]  }
 0x2f6   : > { %13736 = vmatprep.subr.bf16.mxu1 %v15069_v25  ;;  %10605 = vmatprep.mubr.bf16.mxu0 %v11756_v3  ;;  %v15118_v25 = vld [vmem:[%s15887_s29 + $0x1520] sm:$0xff]   ;;  %v15147_v3 = vld [vmem:[%s15887_s29 + $0x1690] sm:$0xff]  }
 0x2f7   : > { %10645 = vmatprep.mubr.bf16.mxu1 %v11758_v5  ;;  %v15149_v5 = vld [vmem:[%s15887_s29 + $0x16d8] sm:$0xff]  }
 0x2f8   : > { %13715 = vmatpush3.bf16.msra.mxu0 %v15070_v26 }
 0x2f9   : > { %13737 = vmatpush3.bf16.msra.mxu1 %v15071_v27  ;;  %13716 = vmatprep.subr.bf16.mxu0 %v15072_v28  ;;  %v15119_v27 = vld [vmem:[%s15887_s29 + $0x15a0] sm:$0xff]  }
 0x2fa   : > { %13738 = vmatprep.subr.bf16.mxu1 %v15073_v29 }
 0x2fc   : > { %13717 = vmatpush3.bf16.msra.mxu0 %v15074_v30 }
 0x2fd   : > { %13739 = vmatpush3.bf16.msra.mxu1 %v15075_v31  ;;  %13718 = vmatprep.subr.bf16.mxu0 %v15076_v32  ;;  %v15120_v31 = vld [vmem:[%s15887_s29 + $0x1568] sm:$0xff]  }
 0x2fe   : > { %13740 = vmatprep.subr.bf16.mxu1 %v15077_v33  ;;  %v15121_v33 = vld [vmem:[%s15887_s29 + $0x15e8] sm:$0xff]  }
 0x300   : > { %13719 = vmatpush3.bf16.msra.mxu0 %v15078_v34 }
 0x301   : > { %13741 = vmatpush3.bf16.msra.mxu1 %v15079_v35  ;;  %13720 = vmatprep.subr.bf16.mxu0 %v15080_v36 }
 0x302   : > { %13742 = vmatprep.subr.bf16.mxu1 %v15081_v37  ;;  %v15122_v37 = vld [vmem:[%s15887_s29 + $0x1528] sm:$0xff]  }
 0x304   : > { %13721 = vmatpush3.bf16.msra.mxu0 %v15082_v38  ;;  %v15123_v38 = vld [vmem:[%s15887_s29 + $0x15a8] sm:$0xff]  }
 0x305   : > { %13743 = vmatpush3.bf16.msra.mxu1 %v15083_v40  ;;  %13722 = vmatprep.subr.bf16.mxu0 %v15084_v46  ;;  %v15128_v46 = vld [vmem:[%s15887_s29 + $0x1578] sm:$0xff]  }
 0x306   : > { %v13420_v39 = vpop.f32.mrb[52].mxu0  ;;  %13744 = vmatprep.subr.bf16.mxu1 %v15085_v48  ;;  %v15130_v48 = vld [vmem:[%s15887_s29 + $0x1538] sm:$0xff]  }
 0x307   : > { %v13442_v41 = vpop.f32.mrb[52].mxu1  ;;  %v13421_v42 = vpop.f32.mrb[53].mxu0 }
 0x308   : > { %v13443_v43 = vpop.f32.mrb[53].mxu1  ;;  %v13422_v44 = vadd.f32 %v13421_v42, %v13420_v39  ;;  %v13423_v47 = vpop.f32.mrb[54].mxu0  ;;  %13723 = vmatpush3.bf16.msra.mxu0 %v15086_v51  ;;  %v15124_v42 = vld [vmem:[%s15887_s29 + $0x1570] sm:$0xff]  }
 0x309   : > { %v13444_v45 = vadd.f32 %v13443_v43, %v13442_v41  ;;  %v13445_v49 = vpop.f32.mrb[54].mxu1  ;;  %v13424_v52 = vpop.f32.mrb[55].mxu0  ;;  %13745 = vmatpush3.bf16.msra.mxu1 %v15087_v53  ;;  %13724 = vmatprep.subr.bf16.mxu0 %v15088_v56  ;;  %v15125_v43 = vld [vmem:[%s15887_s29 + $0x15f0] sm:$0xff]   ;;  %v15129_v47 = vld [vmem:[%s15887_s29 + $0x15f8] sm:$0xff]  }
 0x30a   : > { %v10048_v50 = vadd.f32 %v13422_v44, %v16621_v6  ;;  %v13446_v54 = vpop.f32.mrb[55].mxu1  ;;  %13746 = vmatprep.subr.bf16.mxu1 %v15089_v57  ;;  %v15100_v6 = vld [vmem:[%s15887_s29 + $0x1540] sm:$0xff]   ;;  %v15126_v44 = vld [vmem:[%s15887_s29 + $0x1530] sm:$0xff]   ;;  %v15131_v49 = vld [vmem:[%s15887_s29 + $0x15b8] sm:$0xff]  }
 0x30b   : > { %v312_v51 = vld [vmem:[%s15911_s25 + $0x158] sm:$0xff]  ;;  %v15137_v57 = vld [vmem:[%s15887_s29 + $0x16c0] sm:$0xff]  }
 0x30c   : > { %v16657_v55 = vadd.f32 %v13444_v45, %v10048_v50  ;;  %13725 = vmatpush3.bf16.msra.mxu0 %v15090_v58  ;;  %v15127_v45 = vld [vmem:[%s15887_s29 + $0x15b0] sm:$0xff]   ;;  %v311_v50 = vld [vmem:[%s15911_s25 + $0x150] sm:$0xff]  ;;  %v11761_v54 = vcombine.low %v312_v51, %v312_v51  ;;  %v11762_v56 = vcombine.high %v312_v51, %v312_v51  ;;  %v15138_v58 = vld [vmem:[%s15887_s29 + $0x1600] sm:$0xff]  }
 0x30d   : > { %13747 = vmatpush3.bf16.msra.mxu1 %v15091_v59  ;;  %13726 = vmatprep.subr.bf16.mxu0 %v15092_v60  ;;  %v11759_v52 = vcombine.low %v311_v50, %v311_v50  ;;  %v11760_v53 = vcombine.high %v311_v50, %v311_v50  ;;  %v15139_v59 = vld [vmem:[%s15887_s29 + $0x1680] sm:$0xff]   ;;  %v15140_v60 = vld [vmem:[%s15887_s29 + $0x1648] sm:$0xff]   ;;  %v15180_v50 = vld [vmem:[%s15887_s29 + $0x1750] sm:$0xff]  }
 0x30e   : > { %13748 = vmatprep.subr.bf16.mxu1 %v15093_v61  ;;  %v15141_v61 = vld [vmem:[%s15887_s29 + $0x16c8] sm:$0xff]   ;;  %v15181_v51 = vld [vmem:[%s15887_s29 + $0x17d0] sm:$0xff]  }
 0x310   : > { %13727 = vmatpush3.bf16.msra.mxu0 %v15094_v62  ;;  %v15142_v62 = vld [vmem:[%s15887_s29 + $0x1608] sm:$0xff]  }
 0x311   : > { %13749 = vmatpush3.bf16.msra.mxu1 %v15095_v63  ;;  %13756 = vmatprep.subr.bf16.mxu0 %v15100_v6  ;;  %v15143_v63 = vld [vmem:[%s15887_s29 + $0x1688] sm:$0xff]   ;;  %v15150_v6 = vld [vmem:[%s15887_s29 + $0x1618] sm:$0xff]  }
 0x312   : > { %13778 = vmatprep.subr.bf16.mxu1 %v15101_v7  ;;  %v15151_v7 = vld [vmem:[%s15887_s29 + $0x1698] sm:$0xff]  }
 0x313   : > { %10606 = vmatmul.mubr.bf16.vlgmr.msra.gmra.mrb[80].mxu0 %v11755_v2  ;;  %v15146_v2 = vld [vmem:[%s15887_s29 + $0x1610] sm:$0xff]  }
 0x314   : > { %10646 = vmatmul.mubr.bf16.vlgmr.msra.gmra.mrb[80].mxu1 %v11757_v4  ;;  %13757 = vmatpush3.bf16.msra.mxu0 %v15102_v8  ;;  %v15148_v4 = vld [vmem:[%s15887_s29 + $0x1658] sm:$0xff]   ;;  %v15152_v8 = vld [vmem:[%s15887_s29 + $0x1660] sm:$0xff]  }
 0x315   : > { %13779 = vmatpush3.bf16.msra.mxu1 %v15103_v9  ;;  %13758 = vmatprep.subr.bf16.mxu0 %v15104_v10  ;;  %v15153_v9 = vld [vmem:[%s15887_s29 + $0x16e0] sm:$0xff]  }
 0x316   : > { %13780 = vmatprep.subr.bf16.mxu1 %v15105_v11  ;;  %10685 = vmatprep.mubr.bf16.mxu0 %v11760_v53  ;;  %v15154_v11 = vld [vmem:[%s15887_s29 + $0x1620] sm:$0xff]   ;;  %v15183_v53 = vld [vmem:[%s15887_s29 + $0x1790] sm:$0xff]  }
 0x317   : > { %10725 = vmatprep.mubr.bf16.mxu1 %v11762_v56  ;;  %v15186_v56 = vld [vmem:[%s15887_s29 + $0x1718] sm:$0xff]  }
 0x318   : > { %13759 = vmatpush3.bf16.msra.mxu0 %v15106_v12 }
 0x319   : > { %13781 = vmatpush3.bf16.msra.mxu1 %v15107_v13  ;;  %13760 = vmatprep.subr.bf16.mxu0 %v15108_v14  ;;  %v15155_v13 = vld [vmem:[%s15887_s29 + $0x16a0] sm:$0xff]  }
 0x31a   : > { %13782 = vmatprep.subr.bf16.mxu1 %v15109_v15 }
 0x31c   : > { %13761 = vmatpush3.bf16.msra.mxu0 %v15110_v16  ;;  %v15156_v16 = vld [vmem:[%s15887_s29 + $0x1668] sm:$0xff]  }
 0x31d   : > { %13783 = vmatpush3.bf16.msra.mxu1 %v15111_v17  ;;  %13762 = vmatprep.subr.bf16.mxu0 %v15112_v18 }
 0x31e   : > { %13784 = vmatprep.subr.bf16.mxu1 %v15113_v19  ;;  %v15157_v19 = vld [vmem:[%s15887_s29 + $0x16e8] sm:$0xff]  }
 0x320   : > { %13763 = vmatpush3.bf16.msra.mxu0 %v15114_v20 }
 0x321   : > { %13785 = vmatpush3.bf16.msra.mxu1 %v15115_v21  ;;  %13764 = vmatprep.subr.bf16.mxu0 %v15116_v22  ;;  %v15158_v22 = vld [vmem:[%s15887_s29 + $0x1628] sm:$0xff]  }
 0x322   : > { %13786 = vmatprep.subr.bf16.mxu1 %v15117_v23 }
 0x324   : > { %13765 = vmatpush3.bf16.msra.mxu0 %v15118_v25 }
 0x325   : > { %13787 = vmatpush3.bf16.msra.mxu1 %v15119_v27  ;;  %13766 = vmatprep.subr.bf16.mxu0 %v15120_v31  ;;  %v15160_v27 = vld [vmem:[%s15887_s29 + $0x1670] sm:$0xff]  }
 0x326   : > { %v13464_v24 = vpop.f32.mrb[56].mxu0  ;;  %13788 = vmatprep.subr.bf16.mxu1 %v15121_v33  ;;  %v15163_v31 = vld [vmem:[%s15887_s29 + $0x16b0] sm:$0xff]   ;;  %v15165_v33 = vld [vmem:[%s15887_s29 + $0x16f8] sm:$0xff]  }
 0x327   : > { %v13486_v26 = vpop.f32.mrb[56].mxu1  ;;  %v13465_v28 = vpop.f32.mrb[57].mxu0 }
 0x328   : > { %v13466_v29 = vadd.f32 %v13465_v28, %v13464_v24  ;;  %v13487_v30 = vpop.f32.mrb[57].mxu1  ;;  %v13467_v34 = vpop.f32.mrb[58].mxu0  ;;  %13767 = vmatpush3.bf16.msra.mxu0 %v15122_v37  ;;  %v15159_v24 = vld [vmem:[%s15887_s29 + $0x16a8] sm:$0xff]  }
 0x329   : > { %v13488_v32 = vadd.f32 %v13487_v30, %v13486_v26  ;;  %v13489_v36 = vpop.f32.mrb[58].mxu1  ;;  %v13468_v39 = vpop.f32.mrb[59].mxu0  ;;  %13789 = vmatpush3.bf16.msra.mxu1 %v15123_v38  ;;  %13768 = vmatprep.subr.bf16.mxu0 %v15124_v42  ;;  %v15162_v30 = vld [vmem:[%s15887_s29 + $0x1630] sm:$0xff]   ;;  %v15166_v34 = vld [vmem:[%s15887_s29 + $0x1638] sm:$0xff]   ;;  %v15172_v42 = vld [vmem:[%s15887_s29 + $0x1740] sm:$0xff]  }
 0x32a   : > { %v10128_v35 = vadd.f32 %v13466_v29, %v16657_v55  ;;  %v13490_v41 = vpop.f32.mrb[59].mxu1  ;;  %13790 = vmatprep.subr.bf16.mxu1 %v15125_v43  ;;  %v15136_v55 = vld [vmem:[%s15887_s29 + $0x1640] sm:$0xff]   ;;  %v15161_v29 = vld [vmem:[%s15887_s29 + $0x16f0] sm:$0xff]   ;;  %v313_v36 = vld [vmem:[%s15911_s25 + $0x160] sm:$0xff] }
 0x32b   : > { %v11763_v37 = vcombine.low %v313_v36, %v313_v36  ;;  %v11764_v38 = vcombine.high %v313_v36, %v313_v36  ;;  %v314_v39 = vld [vmem:[%s15911_s25 + $0x168] sm:$0xff]  ;;  %v15216_v36 = vld [vmem:[%s15887_s29 + $0x1850] sm:$0xff]  }
 0x32c   : > { %v16694_v40 = vadd.f32 %v13488_v32, %v10128_v35  ;;  %13769 = vmatpush3.bf16.msra.mxu0 %v15126_v44  ;;  %v15164_v32 = vld [vmem:[%s15887_s29 + $0x1678] sm:$0xff]   ;;  %v11766_v41 = vcombine.high %v314_v39, %v314_v39  ;;  %v15173_v43 = vld [vmem:[%s15887_s29 + $0x17c0] sm:$0xff]  }
 0x32d   : > { %13791 = vmatpush3.bf16.msra.mxu1 %v15127_v45  ;;  %13770 = vmatprep.subr.bf16.mxu0 %v15128_v46  ;;  %v15167_v35 = vld [vmem:[%s15887_s29 + $0x16b8] sm:$0xff]   ;;  %v15174_v44 = vld [vmem:[%s15887_s29 + $0x1700] sm:$0xff]   ;;  %v15176_v46 = vld [vmem:[%s15887_s29 + $0x1748] sm:$0xff]  }
 0x32e   : > { %13792 = vmatprep.subr.bf16.mxu1 %v15129_v47  ;;  %v15175_v45 = vld [vmem:[%s15887_s29 + $0x1780] sm:$0xff]   ;;  %v15177_v47 = vld [vmem:[%s15887_s29 + $0x17c8] sm:$0xff]  }
 0x330   : > { %13771 = vmatpush3.bf16.msra.mxu0 %v15130_v48  ;;  %v15178_v48 = vld [vmem:[%s15887_s29 + $0x1708] sm:$0xff]  }
 0x331   : > { %13793 = vmatpush3.bf16.msra.mxu1 %v15131_v49  ;;  %13800 = vmatprep.subr.bf16.mxu0 %v15136_v55  ;;  %v15179_v49 = vld [vmem:[%s15887_s29 + $0x1788] sm:$0xff]   ;;  %v15185_v55 = vld [vmem:[%s15887_s29 + $0x17d8] sm:$0xff]  }
 0x332   : > { %13822 = vmatprep.subr.bf16.mxu1 %v15137_v57  ;;  %v15187_v57 = vld [vmem:[%s15887_s29 + $0x1798] sm:$0xff]  }
 0x333   : > { %10686 = vmatmul.mubr.bf16.vlgmr.msra.gmra.mrb[84].mxu0 %v11759_v52  ;;  %v15182_v52 = vld [vmem:[%s15887_s29 + $0x1710] sm:$0xff]  }
 0x334   : > { %10726 = vmatmul.mubr.bf16.vlgmr.msra.gmra.mrb[84].mxu1 %v11761_v54  ;;  %13801 = vmatpush3.bf16.msra.mxu0 %v15138_v58  ;;  %v15184_v54 = vld [vmem:[%s15887_s29 + $0x1758] sm:$0xff]   ;;  %v15188_v58 = vld [vmem:[%s15887_s29 + $0x1760] sm:$0xff]  }
 0x335   : > { %13823 = vmatpush3.bf16.msra.mxu1 %v15139_v59  ;;  %13802 = vmatprep.subr.bf16.mxu0 %v15140_v60  ;;  %v15189_v59 = vld [vmem:[%s15887_s29 + $0x17e0] sm:$0xff]  }
 0x336   : > { %13824 = vmatprep.subr.bf16.mxu1 %v15141_v61  ;;  %10765 = vmatprep.mubr.bf16.mxu0 %v11764_v38  ;;  %v15190_v61 = vld [vmem:[%s15887_s29 + $0x1720] sm:$0xff]   ;;  %v15218_v38 = vld [vmem:[%s15887_s29 + $0x1810] sm:$0xff]  }
 0x337   : > { %10805 = vmatprep.mubr.bf16.mxu1 %v11766_v41  ;;  %v15221_v41 = vld [vmem:[%s15887_s29 + $0x18d8] sm:$0xff]  }
 0x338   : > { %13803 = vmatpush3.bf16.msra.mxu0 %v15142_v62 }
 0x339   : > { %13825 = vmatpush3.bf16.msra.mxu1 %v15143_v63  ;;  %13804 = vmatprep.subr.bf16.mxu0 %v15144_v0  ;;  %v15191_v63 = vld [vmem:[%s15887_s29 + $0x17a0] sm:$0xff]  }
 0x33a   : > { %13826 = vmatprep.subr.bf16.mxu1 %v15145_v1 }
 0x33c   : > { %13805 = vmatpush3.bf16.msra.mxu0 %v15146_v2  ;;  %v15192_v2 = vld [vmem:[%s15887_s29 + $0x1768] sm:$0xff]  }
 0x33d   : > { %13827 = vmatpush3.bf16.msra.mxu1 %v15147_v3  ;;  %13806 = vmatprep.subr.bf16.mxu0 %v15148_v4 }
 0x33e   : > { %13828 = vmatprep.subr.bf16.mxu1 %v15149_v5  ;;  %v15193_v5 = vld [vmem:[%s15887_s29 + $0x17e8] sm:$0xff]  }
 0x340   : > { %13807 = vmatpush3.bf16.msra.mxu0 %v15150_v6 }
 0x341   : > { %13829 = vmatpush3.bf16.msra.mxu1 %v15151_v7  ;;  %13808 = vmatprep.subr.bf16.mxu0 %v15152_v8  ;;  %v15194_v8 = vld [vmem:[%s15887_s29 + $0x1728] sm:$0xff]  }
 0x342   : > { %13830 = vmatprep.subr.bf16.mxu1 %v15153_v9 }
 0x344   : > { %13809 = vmatpush3.bf16.msra.mxu0 %v15154_v11 }
 0x345   : > { %13831 = vmatpush3.bf16.msra.mxu1 %v15155_v13  ;;  %13810 = vmatprep.subr.bf16.mxu0 %v15156_v16  ;;  %v15196_v13 = vld [vmem:[%s15887_s29 + $0x1770] sm:$0xff]  }
 0x346   : > { %v13508_v10 = vpop.f32.mrb[60].mxu0  ;;  %13832 = vmatprep.subr.bf16.mxu1 %v15157_v19  ;;  %v15198_v16 = vld [vmem:[%s15887_s29 + $0x1730] sm:$0xff]   ;;  %v15201_v19 = vld [vmem:[%s15887_s29 + $0x17f8] sm:$0xff]  }
 0x347   : > { %v13530_v12 = vpop.f32.mrb[60].mxu1  ;;  %v13509_v14 = vpop.f32.mrb[61].mxu0 }
 0x348   : > { %v13531_v15 = vpop.f32.mrb[61].mxu1  ;;  %v13510_v17 = vadd.f32 %v13509_v14, %v13508_v10  ;;  %v13511_v20 = vpop.f32.mrb[62].mxu0  ;;  %13811 = vmatpush3.bf16.msra.mxu0 %v15158_v22  ;;  %v15195_v10 = vld [vmem:[%s15887_s29 + $0x17a8] sm:$0xff]  }
 0x349   : > { %v13532_v18 = vadd.f32 %v13531_v15, %v13530_v12  ;;  %v13533_v21 = vpop.f32.mrb[62].mxu1  ;;  %v13512_v25 = vpop.f32.mrb[63].mxu0  ;;  %13833 = vmatpush3.bf16.msra.mxu1 %v15159_v24  ;;  %13812 = vmatprep.subr.bf16.mxu0 %v15160_v27  ;;  %v15197_v15 = vld [vmem:[%s15887_s29 + $0x17f0] sm:$0xff]   ;;  %v15202_v20 = vld [vmem:[%s15887_s29 + $0x1738] sm:$0xff]   ;;  %v315_v22 = vld [vmem:[%s15911_s25 + $0x170] sm:$0xff] }
 0x34a   : > { %v10208_v23 = vadd.f32 %v13510_v17, %v16694_v40  ;;  %v13534_v26 = vpop.f32.mrb[63].mxu1  ;;  %13834 = vmatprep.subr.bf16.mxu1 %v15161_v29  ;;  %v11765_v40 = vcombine.low %v314_v39, %v314_v39  ;;  %v15199_v17 = vld [vmem:[%s15887_s29 + $0x17b0] sm:$0xff]   ;;  %v15203_v21 = vld [vmem:[%s15887_s29 + $0x17b8] sm:$0xff]   ;;  %v11767_v24 = vcombine.low %v315_v22, %v315_v22  ;;  %v11768_v25 = vcombine.high %v315_v22, %v315_v22  ;;  %v15209_v29 = vld [vmem:[%s15887_s29 + $0x18c0] sm:$0xff]  }
 0x34b   : > { %v15219_v39 = vld [vmem:[%s15887_s29 + $0x1890] sm:$0xff]  }
 0x34c   : > { %v16732_v28 = vadd.f32 %v13532_v18, %v10208_v23  ;;  %13813 = vmatpush3.bf16.msra.mxu0 %v15162_v30  ;;  %v15200_v18 = vld [vmem:[%s15887_s29 + $0x1778] sm:$0xff]   ;;  %v316_v23 = vld [vmem:[%s15911_s25 + $0x178] sm:$0xff]  ;;  %v15210_v30 = vld [vmem:[%s15887_s29 + $0x1800] sm:$0xff]  }
 0x34d   : > { %13835 = vmatpush3.bf16.msra.mxu1 %v15163_v31  ;;  %13814 = vmatprep.subr.bf16.mxu0 %v15164_v32  ;;  %v11769_v26 = vcombine.low %v316_v23, %v316_v23  ;;  %v11770_v27 = vcombine.high %v316_v23, %v316_v23  ;;  %v15211_v31 = vld [vmem:[%s15887_s29 + $0x1880] sm:$0xff]   ;;  %v15212_v32 = vld [vmem:[%s15887_s29 + $0x1848] sm:$0xff]   ;;  %v15252_v22 = vld [vmem:[%s15887_s29 + $0x1950] sm:$0xff]  }
 0x34e   : > { %13836 = vmatprep.subr.bf16.mxu1 %v15165_v33  ;;  %v15213_v33 = vld [vmem:[%s15887_s29 + $0x18c8] sm:$0xff]   ;;  %v15253_v23 = vld [vmem:[%s15887_s29 + $0x19d0] sm:$0xff]  }
 0x350   : > { %13815 = vmatpush3.bf16.msra.mxu0 %v15166_v34  ;;  %v15214_v34 = vld [vmem:[%s15887_s29 + $0x1808] sm:$0xff]  }
 0x351   : > { %13837 = vmatpush3.bf16.msra.mxu1 %v15167_v35  ;;  %13844 = vmatprep.subr.bf16.mxu0 %v15172_v42  ;;  %v15215_v35 = vld [vmem:[%s15887_s29 + $0x1888] sm:$0xff]   ;;  %v15222_v42 = vld [vmem:[%s15887_s29 + $0x1818] sm:$0xff]  }
 0x352   : > { %13866 = vmatprep.subr.bf16.mxu1 %v15173_v43  ;;  %v15223_v43 = vld [vmem:[%s15887_s29 + $0x1898] sm:$0xff]  }
 0x353   : > { %10766 = vmatmul.mubr.bf16.vlgmr.msra.gmra.mrb[88].mxu0 %v11763_v37  ;;  %v15217_v37 = vld [vmem:[%s15887_s29 + $0x18d0] sm:$0xff]  }
 0x354   : > { %10806 = vmatmul.mubr.bf16.vlgmr.msra.gmra.mrb[88].mxu1 %v11765_v40  ;;  %13845 = vmatpush3.bf16.msra.mxu0 %v15174_v44  ;;  %v15220_v40 = vld [vmem:[%s15887_s29 + $0x1858] sm:$0xff]   ;;  %v15224_v44 = vld [vmem:[%s15887_s29 + $0x1860] sm:$0xff]  }
 0x355   : > { %13867 = vmatpush3.bf16.msra.mxu1 %v15175_v45  ;;  %13846 = vmatprep.subr.bf16.mxu0 %v15176_v46  ;;  %v15225_v45 = vld [vmem:[%s15887_s29 + $0x18e0] sm:$0xff]  }
 0x356   : > { %13868 = vmatprep.subr.bf16.mxu1 %v15177_v47  ;;  %10845 = vmatprep.mubr.bf16.mxu0 %v11768_v25  ;;  %v15226_v46 = vld [vmem:[%s15887_s29 + $0x1820] sm:$0xff]   ;;  %v15255_v25 = vld [vmem:[%s15887_s29 + $0x1990] sm:$0xff]  }
 0x357   : > { %10885 = vmatprep.mubr.bf16.mxu1 %v11770_v27  ;;  %v15257_v27 = vld [vmem:[%s15887_s29 + $0x19d8] sm:$0xff]  }
 0x358   : > { %13847 = vmatpush3.bf16.msra.mxu0 %v15178_v48  ;;  %v15227_v48 = vld [vmem:[%s15887_s29 + $0x18a0] sm:$0xff]  }
 0x359   : > { %13869 = vmatpush3.bf16.msra.mxu1 %v15179_v49  ;;  %13848 = vmatprep.subr.bf16.mxu0 %v15180_v50 }
 0x35a   : > { %13870 = vmatprep.subr.bf16.mxu1 %v15181_v51 }
 0x35c   : > { %13849 = vmatpush3.bf16.msra.mxu0 %v15182_v52 }
 0x35d   : > { %13871 = vmatpush3.bf16.msra.mxu1 %v15183_v53  ;;  %13850 = vmatprep.subr.bf16.mxu0 %v15184_v54  ;;  %v15228_v54 = vld [vmem:[%s15887_s29 + $0x1868] sm:$0xff]  }
 0x35e   : > { %13872 = vmatprep.subr.bf16.mxu1 %v15185_v55 }
 0x360   : > { %13851 = vmatpush3.bf16.msra.mxu0 %v15186_v56  ;;  %v15229_v56 = vld [vmem:[%s15887_s29 + $0x18e8] sm:$0xff]  }
 0x361   : > { %13873 = vmatpush3.bf16.msra.mxu1 %v15187_v57  ;;  %13852 = vmatprep.subr.bf16.mxu0 %v15188_v58 }
 0x362   : > { %13874 = vmatprep.subr.bf16.mxu1 %v15189_v59  ;;  %v15230_v59 = vld [vmem:[%s15887_s29 + $0x1828] sm:$0xff]  }
 0x364   : > { %13853 = vmatpush3.bf16.msra.mxu0 %v15190_v61  ;;  %v15231_v61 = vld [vmem:[%s15887_s29 + $0x18a8] sm:$0xff]  }
 0x365   : > { %13875 = vmatpush3.bf16.msra.mxu1 %v15191_v63  ;;  %13854 = vmatprep.subr.bf16.mxu0 %v15192_v2  ;;  %v15234_v2 = vld [vmem:[%s15887_s29 + $0x1830] sm:$0xff]  }
 0x366   : > { %v13552_v60 = vpop.f32.mrb[64].mxu0  ;;  %13876 = vmatprep.subr.bf16.mxu1 %v15193_v5  ;;  %v15237_v5 = vld [vmem:[%s15887_s29 + $0x18f8] sm:$0xff]  }
 0x367   : > { %v13574_v62 = vpop.f32.mrb[64].mxu1  ;;  %v13553_v0 = vpop.f32.mrb[65].mxu0 }
 0x368   : > { %v13575_v1 = vpop.f32.mrb[65].mxu1  ;;  %v13554_v3 = vadd.f32 %v13553_v0, %v13552_v60  ;;  %v13555_v6 = vpop.f32.mrb[66].mxu0  ;;  %13855 = vmatpush3.bf16.msra.mxu0 %v15194_v8  ;;  %v15232_v0 = vld [vmem:[%s15887_s29 + $0x1870] sm:$0xff]   ;;  %v317_v8 = vld [vmem:[%s15911_s25 + $0x180] sm:$0xff] }
 0x369   : > { %v13576_v4 = vadd.f32 %v13575_v1, %v13574_v62  ;;  %v13577_v7 = vpop.f32.mrb[66].mxu1  ;;  %v13556_v11 = vpop.f32.mrb[67].mxu0  ;;  %13877 = vmatpush3.bf16.msra.mxu1 %v15195_v10  ;;  %13856 = vmatprep.subr.bf16.mxu0 %v15196_v13  ;;  %v15233_v1 = vld [vmem:[%s15887_s29 + $0x18f0] sm:$0xff]   ;;  %v15238_v6 = vld [vmem:[%s15887_s29 + $0x1838] sm:$0xff]   ;;  %v11771_v10 = vcombine.low %v317_v8, %v317_v8 }
 0x36a   : > { %v10288_v9 = vadd.f32 %v13554_v3, %v16732_v28  ;;  %v13578_v12 = vpop.f32.mrb[67].mxu1  ;;  %13878 = vmatprep.subr.bf16.mxu1 %v15197_v15  ;;  %v15208_v28 = vld [vmem:[%s15887_s29 + $0x1840] sm:$0xff]   ;;  %v15235_v3 = vld [vmem:[%s15887_s29 + $0x18b0] sm:$0xff]   ;;  %v15239_v7 = vld [vmem:[%s15887_s29 + $0x18b8] sm:$0xff]   ;;  %v11772_v11 = vcombine.high %v317_v8, %v317_v8 }
 0x36b   : > { %v15245_v15 = vld [vmem:[%s15887_s29 + $0x19c0] sm:$0xff]   ;;  %v15288_v8 = vld [vmem:[%s15887_s29 + $0x1a50] sm:$0xff]  }
 0x36c   : > { %v16769_v14 = vadd.f32 %v13576_v4, %v10288_v9  ;;  %13857 = vmatpush3.bf16.msra.mxu0 %v15198_v16  ;;  %v15236_v4 = vld [vmem:[%s15887_s29 + $0x1878] sm:$0xff]   ;;  %v318_v9 = vld [vmem:[%s15911_s25 + $0x188] sm:$0xff] }
 0x36d   : > { %13879 = vmatpush3.bf16.msra.mxu1 %v15199_v17  ;;  %13858 = vmatprep.subr.bf16.mxu0 %v15200_v18  ;;  %v11773_v12 = vcombine.low %v318_v9, %v318_v9  ;;  %v11774_v13 = vcombine.high %v318_v9, %v318_v9  ;;  %v15246_v16 = vld [vmem:[%s15887_s29 + $0x1900] sm:$0xff]   ;;  %v15248_v18 = vld [vmem:[%s15887_s29 + $0x1948] sm:$0xff]   ;;  %v15289_v9 = vld [vmem:[%s15887_s29 + $0x1ad0] sm:$0xff]  }
 0x36e   : > { %13880 = vmatprep.subr.bf16.mxu1 %v15201_v19  ;;  %v15247_v17 = vld [vmem:[%s15887_s29 + $0x1980] sm:$0xff]   ;;  %v15249_v19 = vld [vmem:[%s15887_s29 + $0x19c8] sm:$0xff]  }
 0x370   : > { %13859 = vmatpush3.bf16.msra.mxu0 %v15202_v20  ;;  %v15250_v20 = vld [vmem:[%s15887_s29 + $0x1908] sm:$0xff]  }
 0x371   : > { %13881 = vmatpush3.bf16.msra.mxu1 %v15203_v21  ;;  %13888 = vmatprep.subr.bf16.mxu0 %v15208_v28  ;;  %v15251_v21 = vld [vmem:[%s15887_s29 + $0x1988] sm:$0xff]   ;;  %v15258_v28 = vld [vmem:[%s15887_s29 + $0x1918] sm:$0xff]  }
 0x372   : > { %13910 = vmatprep.subr.bf16.mxu1 %v15209_v29  ;;  %v15259_v29 = vld [vmem:[%s15887_s29 + $0x1998] sm:$0xff]  }
 0x373   : > { %10846 = vmatmul.mubr.bf16.vlgmr.msra.gmra.mrb[92].mxu0 %v11767_v24  ;;  %v15254_v24 = vld [vmem:[%s15887_s29 + $0x1910] sm:$0xff]  }
 0x374   : > { %10886 = vmatmul.mubr.bf16.vlgmr.msra.gmra.mrb[92].mxu1 %v11769_v26  ;;  %13889 = vmatpush3.bf16.msra.mxu0 %v15210_v30  ;;  %v15256_v26 = vld [vmem:[%s15887_s29 + $0x1958] sm:$0xff]   ;;  %v15260_v30 = vld [vmem:[%s15887_s29 + $0x1960] sm:$0xff]  }
 0x375   : > { %13911 = vmatpush3.bf16.msra.mxu1 %v15211_v31  ;;  %13890 = vmatprep.subr.bf16.mxu0 %v15212_v32  ;;  %v15261_v31 = vld [vmem:[%s15887_s29 + $0x19e0] sm:$0xff]  }
 0x376   : > { %13912 = vmatprep.subr.bf16.mxu1 %v15213_v33  ;;  %10925 = vmatprep.mubr.bf16.mxu0 %v11772_v11  ;;  %v15262_v32 = vld [vmem:[%s15887_s29 + $0x1920] sm:$0xff]   ;;  %v15291_v11 = vld [vmem:[%s15887_s29 + $0x1a90] sm:$0xff]  }
 0x377   : > { %10965 = vmatprep.mubr.bf16.mxu1 %v11774_v13  ;;  %v15293_v13 = vld [vmem:[%s15887_s29 + $0x1ad8] sm:$0xff]  }
 0x378   : > { %13891 = vmatpush3.bf16.msra.mxu0 %v15214_v34  ;;  %v15263_v34 = vld [vmem:[%s15887_s29 + $0x19a0] sm:$0xff]  }
 0x379   : > { %13913 = vmatpush3.bf16.msra.mxu1 %v15215_v35  ;;  %13892 = vmatprep.subr.bf16.mxu0 %v15216_v36 }
 0x37a   : > { %13914 = vmatprep.subr.bf16.mxu1 %v15217_v37 }
 0x37c   : > { %13893 = vmatpush3.bf16.msra.mxu0 %v15218_v38 }
 0x37d   : > { %13915 = vmatpush3.bf16.msra.mxu1 %v15219_v39  ;;  %13894 = vmatprep.subr.bf16.mxu0 %v15220_v40  ;;  %v15264_v40 = vld [vmem:[%s15887_s29 + $0x1968] sm:$0xff]  }
 0x37e   : > { %13916 = vmatprep.subr.bf16.mxu1 %v15221_v41 }
 0x380   : > { %13895 = vmatpush3.bf16.msra.mxu0 %v15222_v42  ;;  %v15265_v42 = vld [vmem:[%s15887_s29 + $0x19e8] sm:$0xff]  }
 0x381   : > { %13917 = vmatpush3.bf16.msra.mxu1 %v15223_v43  ;;  %13896 = vmatprep.subr.bf16.mxu0 %v15224_v44 }
 0x382   : > { %13918 = vmatprep.subr.bf16.mxu1 %v15225_v45  ;;  %v15266_v45 = vld [vmem:[%s15887_s29 + $0x1928] sm:$0xff]  }
 0x384   : > { %13897 = vmatpush3.bf16.msra.mxu0 %v15226_v46 }
 0x385   : > { %13919 = vmatpush3.bf16.msra.mxu1 %v15227_v48  ;;  %13898 = vmatprep.subr.bf16.mxu0 %v15228_v54  ;;  %v15272_v54 = vld [vmem:[%s15887_s29 + $0x1978] sm:$0xff]  }
 0x386   : > { %v13596_v47 = vpop.f32.mrb[68].mxu0  ;;  %13920 = vmatprep.subr.bf16.mxu1 %v15229_v56  ;;  %v15274_v56 = vld [vmem:[%s15887_s29 + $0x1938] sm:$0xff]  }
 0x387   : > { %v13618_v49 = vpop.f32.mrb[68].mxu1  ;;  %v13597_v50 = vpop.f32.mrb[69].mxu0 }
 0x388   : > { %v13619_v51 = vpop.f32.mrb[69].mxu1  ;;  %v13598_v52 = vadd.f32 %v13597_v50, %v13596_v47  ;;  %v13599_v55 = vpop.f32.mrb[70].mxu0  ;;  %13899 = vmatpush3.bf16.msra.mxu0 %v15230_v59  ;;  %v15267_v47 = vld [vmem:[%s15887_s29 + $0x19a8] sm:$0xff]   ;;  %v15268_v50 = vld [vmem:[%s15887_s29 + $0x1970] sm:$0xff]  }
 0x389   : > { %v13620_v53 = vadd.f32 %v13619_v51, %v13618_v49  ;;  %v13621_v57 = vpop.f32.mrb[70].mxu1  ;;  %v13600_v60 = vpop.f32.mrb[71].mxu0  ;;  %13921 = vmatpush3.bf16.msra.mxu1 %v15231_v61  ;;  %13900 = vmatprep.subr.bf16.mxu0 %v15232_v0  ;;  %v15269_v51 = vld [vmem:[%s15887_s29 + $0x19f0] sm:$0xff]   ;;  %v15273_v55 = vld [vmem:[%s15887_s29 + $0x19f8] sm:$0xff]   ;;  %v15280_v0 = vld [vmem:[%s15887_s29 + $0x1a40] sm:$0xff]  }
 0x38a   : > { %v10368_v58 = vadd.f32 %v13598_v52, %v16769_v14  ;;  %v13622_v62 = vpop.f32.mrb[71].mxu1  ;;  %13922 = vmatprep.subr.bf16.mxu1 %v15233_v1  ;;  %v15244_v14 = vld [vmem:[%s15887_s29 + $0x1940] sm:$0xff]   ;;  %v15270_v52 = vld [vmem:[%s15887_s29 + $0x1930] sm:$0xff]   ;;  %v15275_v57 = vld [vmem:[%s15887_s29 + $0x19b8] sm:$0xff]  }
 0x38b   : > { %v320_v59 = vld [vmem:[%s15911_s25 + $0x198] sm:$0xff]  ;;  %v15281_v1 = vld [vmem:[%s15887_s29 + $0x1ac0] sm:$0xff]  }
 0x38c   : > { %v16805_v63 = vadd.f32 %v13620_v53, %v10368_v58  ;;  %13901 = vmatpush3.bf16.msra.mxu0 %v15234_v2  ;;  %v15271_v53 = vld [vmem:[%s15887_s29 + $0x19b0] sm:$0xff]   ;;  %v319_v58 = vld [vmem:[%s15911_s25 + $0x190] sm:$0xff]  ;;  %v11777_v62 = vcombine.low %v320_v59, %v320_v59  ;;  %v15282_v2 = vld [vmem:[%s15887_s29 + $0x1a00] sm:$0xff]  }
 0x38d   : > { %13923 = vmatpush3.bf16.msra.mxu1 %v15235_v3  ;;  %13902 = vmatprep.subr.bf16.mxu0 %v15236_v4  ;;  %v11775_v60 = vcombine.low %v319_v58, %v319_v58  ;;  %v11776_v61 = vcombine.high %v319_v58, %v319_v58  ;;  %v15283_v3 = vld [vmem:[%s15887_s29 + $0x1a80] sm:$0xff]   ;;  %v15284_v4 = vld [vmem:[%s15887_s29 + $0x1a48] sm:$0xff]   ;;  %v15324_v58 = vld [vmem:[%s15887_s29 + $0x1b50] sm:$0xff]  }
 0x38e   : > { %13924 = vmatprep.subr.bf16.mxu1 %v15237_v5  ;;  %v15285_v5 = vld [vmem:[%s15887_s29 + $0x1ac8] sm:$0xff]  }
 0x390   : > { %13903 = vmatpush3.bf16.msra.mxu0 %v15238_v6  ;;  %v15286_v6 = vld [vmem:[%s15887_s29 + $0x1a08] sm:$0xff]  }
 0x391   : > { %13925 = vmatpush3.bf16.msra.mxu1 %v15239_v7  ;;  %13932 = vmatprep.subr.bf16.mxu0 %v15244_v14  ;;  %v15287_v7 = vld [vmem:[%s15887_s29 + $0x1a88] sm:$0xff]   ;;  %v15294_v14 = vld [vmem:[%s15887_s29 + $0x1a18] sm:$0xff]  }
 0x392   : > { %13954 = vmatprep.subr.bf16.mxu1 %v15245_v15  ;;  %v15295_v15 = vld [vmem:[%s15887_s29 + $0x1a98] sm:$0xff]  }
 0x393   : > { %10926 = vmatmul.mubr.bf16.vlgmr.msra.gmra.mrb[96].mxu0 %v11771_v10  ;;  %v15290_v10 = vld [vmem:[%s15887_s29 + $0x1a10] sm:$0xff]  }
 0x394   : > { %10966 = vmatmul.mubr.bf16.vlgmr.msra.gmra.mrb[96].mxu1 %v11773_v12  ;;  %13933 = vmatpush3.bf16.msra.mxu0 %v15246_v16  ;;  %v15292_v12 = vld [vmem:[%s15887_s29 + $0x1a58] sm:$0xff]   ;;  %v15296_v16 = vld [vmem:[%s15887_s29 + $0x1a60] sm:$0xff]  }
 0x395   : > { %13955 = vmatpush3.bf16.msra.mxu1 %v15247_v17  ;;  %13934 = vmatprep.subr.bf16.mxu0 %v15248_v18  ;;  %v15297_v17 = vld [vmem:[%s15887_s29 + $0x1ae0] sm:$0xff]  }
 0x396   : > { %13956 = vmatprep.subr.bf16.mxu1 %v15249_v19  ;;  %11005 = vmatprep.mubr.bf16.mxu0 %v11776_v61  ;;  %v15298_v19 = vld [vmem:[%s15887_s29 + $0x1a20] sm:$0xff]   ;;  %v15327_v61 = vld [vmem:[%s15887_s29 + $0x1b90] sm:$0xff]  }
 0x398   : > { %13935 = vmatpush3.bf16.msra.mxu0 %v15250_v20 }
 0x399   : > { %13957 = vmatpush3.bf16.msra.mxu1 %v15251_v21  ;;  %13936 = vmatprep.subr.bf16.mxu0 %v15252_v22  ;;  %v15299_v21 = vld [vmem:[%s15887_s29 + $0x1aa0] sm:$0xff]  }
 0x39a   : > { %13958 = vmatprep.subr.bf16.mxu1 %v15253_v23 }
 0x39c   : > { %13937 = vmatpush3.bf16.msra.mxu0 %v15254_v24 }
 0x39d   : > { %13959 = vmatpush3.bf16.msra.mxu1 %v15255_v25  ;;  %13938 = vmatprep.subr.bf16.mxu0 %v15256_v26  ;;  %v15300_v25 = vld [vmem:[%s15887_s29 + $0x1a68] sm:$0xff]  }
 0x39e   : > { %13960 = vmatprep.subr.bf16.mxu1 %v15257_v27  ;;  %v15301_v27 = vld [vmem:[%s15887_s29 + $0x1ae8] sm:$0xff]  }
 0x3a0   : > { %13939 = vmatpush3.bf16.msra.mxu0 %v15258_v28 }
 0x3a1   : > { %13961 = vmatpush3.bf16.msra.mxu1 %v15259_v29  ;;  %13940 = vmatprep.subr.bf16.mxu0 %v15260_v30 }
 0x3a2   : > { %13962 = vmatprep.subr.bf16.mxu1 %v15261_v31  ;;  %v15302_v31 = vld [vmem:[%s15887_s29 + $0x1a28] sm:$0xff]  }
 0x3a4   : > { %13941 = vmatpush3.bf16.msra.mxu0 %v15262_v32  ;;  %v15303_v32 = vld [vmem:[%s15887_s29 + $0x1aa8] sm:$0xff]  }
 0x3a5   : > { %13963 = vmatpush3.bf16.msra.mxu1 %v15263_v34  ;;  %13942 = vmatprep.subr.bf16.mxu0 %v15264_v40  ;;  %v15308_v40 = vld [vmem:[%s15887_s29 + $0x1a78] sm:$0xff]  }
 0x3a6   : > { %v13640_v33 = vpop.f32.mrb[72].mxu0  ;;  %13964 = vmatprep.subr.bf16.mxu1 %v15265_v42  ;;  %v15310_v42 = vld [vmem:[%s15887_s29 + $0x1a38] sm:$0xff]  }
 0x3a7   : > { %v13662_v35 = vpop.f32.mrb[72].mxu1  ;;  %v13641_v36 = vpop.f32.mrb[73].mxu0 }
 0x3a8   : > { %v13663_v37 = vpop.f32.mrb[73].mxu1  ;;  %v13642_v38 = vadd.f32 %v13641_v36, %v13640_v33  ;;  %v13643_v41 = vpop.f32.mrb[74].mxu0  ;;  %13943 = vmatpush3.bf16.msra.mxu0 %v15266_v45  ;;  %v15304_v36 = vld [vmem:[%s15887_s29 + $0x1a70] sm:$0xff]   ;;  %v322_v45 = vld [vmem:[%s15911_s25 + $0x1a8] sm:$0xff] }
 0x3a9   : > { %v13664_v39 = vadd.f32 %v13663_v37, %v13662_v35  ;;  %v13665_v43 = vpop.f32.mrb[74].mxu1  ;;  %v13644_v46 = vpop.f32.mrb[75].mxu0  ;;  %13965 = vmatpush3.bf16.msra.mxu1 %v15267_v47  ;;  %13944 = vmatprep.subr.bf16.mxu0 %v15268_v50  ;;  %v15305_v37 = vld [vmem:[%s15887_s29 + $0x1af0] sm:$0xff]   ;;  %v15309_v41 = vld [vmem:[%s15887_s29 + $0x1af8] sm:$0xff]   ;;  %v11782_v50 = vcombine.high %v322_v45, %v322_v45 }
 0x3aa   : > { %v10448_v44 = vadd.f32 %v13642_v38, %v16805_v63  ;;  %v13666_v48 = vpop.f32.mrb[75].mxu1  ;;  %13966 = vmatprep.subr.bf16.mxu1 %v15269_v51  ;;  %v11778_v63 = vcombine.high %v320_v59, %v320_v59  ;;  %v15306_v38 = vld [vmem:[%s15887_s29 + $0x1a30] sm:$0xff]   ;;  %v15311_v43 = vld [vmem:[%s15887_s29 + $0x1ab8] sm:$0xff]   ;;  %v15317_v51 = vld [vmem:[%s15887_s29 + $0x1bc0] sm:$0xff]  }
 0x3ab   : > { %v11781_v48 = vcombine.low %v322_v45, %v322_v45  ;;  %v15325_v59 = vld [vmem:[%s15887_s29 + $0x1bd0] sm:$0xff]  }
 0x3ac   : > { %v16842_v49 = vadd.f32 %v13664_v39, %v10448_v44  ;;  %13945 = vmatpush3.bf16.msra.mxu0 %v15270_v52  ;;  %11045 = vmatprep.mubr.bf16.mxu1 %v11778_v63  ;;  %v15307_v39 = vld [vmem:[%s15887_s29 + $0x1ab0] sm:$0xff]   ;;  %v321_v44 = vld [vmem:[%s15911_s25 + $0x1a0] sm:$0xff]  ;;  %v15318_v52 = vld [vmem:[%s15887_s29 + $0x1b00] sm:$0xff]  }
 0x3ad   : > { %13967 = vmatpush3.bf16.msra.mxu1 %v15271_v53  ;;  %13946 = vmatprep.subr.bf16.mxu0 %v15272_v54  ;;  %v11779_v46 = vcombine.low %v321_v44, %v321_v44  ;;  %v11780_v47 = vcombine.high %v321_v44, %v321_v44  ;;  %v15319_v53 = vld [vmem:[%s15887_s29 + $0x1b80] sm:$0xff]   ;;  %v15320_v54 = vld [vmem:[%s15887_s29 + $0x1b48] sm:$0xff]   ;;  %v15329_v63 = vld [vmem:[%s15887_s29 + $0x1bd8] sm:$0xff]  }
 0x3ae   : > { %13968 = vmatprep.subr.bf16.mxu1 %v15273_v55  ;;  %v15321_v55 = vld [vmem:[%s15887_s29 + $0x1bc8] sm:$0xff]   ;;  %v15360_v44 = vld [vmem:[%s15887_s29 + $0x1c50] sm:$0xff]  }
 0x3af   : > { %v15361_v45 = vld [vmem:[%s15887_s29 + $0x1cd0] sm:$0xff]  }
 0x3b0   : > { %13947 = vmatpush3.bf16.msra.mxu0 %v15274_v56  ;;  %v15322_v56 = vld [vmem:[%s15887_s29 + $0x1b08] sm:$0xff]  }
 0x3b1   : > { %13969 = vmatpush3.bf16.msra.mxu1 %v15275_v57  ;;  %13976 = vmatprep.subr.bf16.mxu0 %v15280_v0  ;;  %v15323_v57 = vld [vmem:[%s15887_s29 + $0x1b88] sm:$0xff]   ;;  %v15330_v0 = vld [vmem:[%s15887_s29 + $0x1b18] sm:$0xff]  }
 0x3b2   : > { %13998 = vmatprep.subr.bf16.mxu1 %v15281_v1  ;;  %v15331_v1 = vld [vmem:[%s15887_s29 + $0x1b98] sm:$0xff]  }
 0x3b3   : > { %11006 = vmatmul.mubr.bf16.vlgmr.msra.gmra.mrb[100].mxu0 %v11775_v60  ;;  %v15326_v60 = vld [vmem:[%s15887_s29 + $0x1b10] sm:$0xff]  }
 0x3b4   : > { %11046 = vmatmul.mubr.bf16.vlgmr.msra.gmra.mrb[100].mxu1 %v11777_v62  ;;  %13977 = vmatpush3.bf16.msra.mxu0 %v15282_v2  ;;  %v15328_v62 = vld [vmem:[%s15887_s29 + $0x1b58] sm:$0xff]   ;;  %v15332_v2 = vld [vmem:[%s15887_s29 + $0x1b60] sm:$0xff]  }
 0x3b5   : > { %13999 = vmatpush3.bf16.msra.mxu1 %v15283_v3  ;;  %13978 = vmatprep.subr.bf16.mxu0 %v15284_v4  ;;  %v15333_v3 = vld [vmem:[%s15887_s29 + $0x1be0] sm:$0xff]  }
 0x3b6   : > { %14000 = vmatprep.subr.bf16.mxu1 %v15285_v5  ;;  %11085 = vmatprep.mubr.bf16.mxu0 %v11780_v47  ;;  %v15334_v5 = vld [vmem:[%s15887_s29 + $0x1b20] sm:$0xff]   ;;  %v15363_v47 = vld [vmem:[%s15887_s29 + $0x1c90] sm:$0xff]  }
 0x3b7   : > { %11125 = vmatprep.mubr.bf16.mxu1 %v11782_v50  ;;  %v15366_v50 = vld [vmem:[%s15887_s29 + $0x1c18] sm:$0xff]  }
 0x3b8   : > { %13979 = vmatpush3.bf16.msra.mxu0 %v15286_v6 }
 0x3b9   : > { %14001 = vmatpush3.bf16.msra.mxu1 %v15287_v7  ;;  %13980 = vmatprep.subr.bf16.mxu0 %v15288_v8  ;;  %v15335_v7 = vld [vmem:[%s15887_s29 + $0x1ba0] sm:$0xff]  }
 0x3ba   : > { %14002 = vmatprep.subr.bf16.mxu1 %v15289_v9 }
 0x3bc   : > { %13981 = vmatpush3.bf16.msra.mxu0 %v15290_v10  ;;  %v15336_v10 = vld [vmem:[%s15887_s29 + $0x1b68] sm:$0xff]  }
 0x3bd   : > { %14003 = vmatpush3.bf16.msra.mxu1 %v15291_v11  ;;  %13982 = vmatprep.subr.bf16.mxu0 %v15292_v12 }
 0x3be   : > { %14004 = vmatprep.subr.bf16.mxu1 %v15293_v13  ;;  %v15337_v13 = vld [vmem:[%s15887_s29 + $0x1be8] sm:$0xff]  }
 0x3c0   : > { %13983 = vmatpush3.bf16.msra.mxu0 %v15294_v14 }
 0x3c1   : > { %14005 = vmatpush3.bf16.msra.mxu1 %v15295_v15  ;;  %13984 = vmatprep.subr.bf16.mxu0 %v15296_v16  ;;  %v15338_v16 = vld [vmem:[%s15887_s29 + $0x1b28] sm:$0xff]  }
 0x3c2   : > { %14006 = vmatprep.subr.bf16.mxu1 %v15297_v17 }
 0x3c4   : > { %13985 = vmatpush3.bf16.msra.mxu0 %v15298_v19 }
 0x3c5   : > { %14007 = vmatpush3.bf16.msra.mxu1 %v15299_v21  ;;  %13986 = vmatprep.subr.bf16.mxu0 %v15300_v25  ;;  %v15340_v21 = vld [vmem:[%s15887_s29 + $0x1b70] sm:$0xff]  }
 0x3c6   : > { %v13684_v18 = vpop.f32.mrb[76].mxu0  ;;  %14008 = vmatprep.subr.bf16.mxu1 %v15301_v27  ;;  %v15343_v25 = vld [vmem:[%s15887_s29 + $0x1bb0] sm:$0xff]   ;;  %v15345_v27 = vld [vmem:[%s15887_s29 + $0x1bf8] sm:$0xff]  }
 0x3c7   : > { %v13706_v20 = vpop.f32.mrb[76].mxu1  ;;  %v13685_v22 = vpop.f32.mrb[77].mxu0 }
 0x3c8   : > { %v13686_v23 = vadd.f32 %v13685_v22, %v13684_v18  ;;  %v13707_v24 = vpop.f32.mrb[77].mxu1  ;;  %v13687_v28 = vpop.f32.mrb[78].mxu0  ;;  %13987 = vmatpush3.bf16.msra.mxu0 %v15302_v31  ;;  %v15339_v18 = vld [vmem:[%s15887_s29 + $0x1ba8] sm:$0xff]  }
 0x3c9   : > { %v13708_v26 = vadd.f32 %v13707_v24, %v13706_v20  ;;  %v13709_v30 = vpop.f32.mrb[78].mxu1  ;;  %v13688_v33 = vpop.f32.mrb[79].mxu0  ;;  %14009 = vmatpush3.bf16.msra.mxu1 %v15303_v32  ;;  %13988 = vmatprep.subr.bf16.mxu0 %v15304_v36  ;;  %v15342_v24 = vld [vmem:[%s15887_s29 + $0x1b30] sm:$0xff]   ;;  %v15346_v28 = vld [vmem:[%s15887_s29 + $0x1b38] sm:$0xff]   ;;  %v15352_v36 = vld [vmem:[%s15887_s29 + $0x1c40] sm:$0xff]  }
 0x3ca   : > { %v10528_v29 = vadd.f32 %v13686_v23, %v16842_v49  ;;  %v13710_v35 = vpop.f32.mrb[79].mxu1  ;;  %14010 = vmatprep.subr.bf16.mxu1 %v15305_v37  ;;  %v15316_v49 = vld [vmem:[%s15887_s29 + $0x1b40] sm:$0xff]   ;;  %v15341_v23 = vld [vmem:[%s15887_s29 + $0x1bf0] sm:$0xff]   ;;  %v323_v30 = vld [vmem:[%s15911_s25 + $0x1b0] sm:$0xff] }
 0x3cb   : > { %v11783_v31 = vcombine.low %v323_v30, %v323_v30  ;;  %v11784_v32 = vcombine.high %v323_v30, %v323_v30  ;;  %v324_v33 = vld [vmem:[%s15911_s25 + $0x1b8] sm:$0xff]  ;;  %v15353_v37 = vld [vmem:[%s15887_s29 + $0x1cc0] sm:$0xff]  }
 0x3cc   : > { %v16879_v34 = vadd.f32 %v13708_v26, %v10528_v29  ;;  %13989 = vmatpush3.bf16.msra.mxu0 %v15306_v38  ;;  %v15344_v26 = vld [vmem:[%s15887_s29 + $0x1b78] sm:$0xff]   ;;  %v11786_v35 = vcombine.high %v324_v33, %v324_v33  ;;  %v15354_v38 = vld [vmem:[%s15887_s29 + $0x1c00] sm:$0xff]   ;;  %v15396_v30 = vld [vmem:[%s15887_s29 + $0x1d50] sm:$0xff]  }
 0x3cd   : > { %14011 = vmatpush3.bf16.msra.mxu1 %v15307_v39  ;;  %13990 = vmatprep.subr.bf16.mxu0 %v15308_v40  ;;  %v15347_v29 = vld [vmem:[%s15887_s29 + $0x1bb8] sm:$0xff]   ;;  %v15355_v39 = vld [vmem:[%s15887_s29 + $0x1c80] sm:$0xff]   ;;  %v15356_v40 = vld [vmem:[%s15887_s29 + $0x1c48] sm:$0xff]  }
 0x3ce   : > { %14012 = vmatprep.subr.bf16.mxu1 %v15309_v41  ;;  %v15357_v41 = vld [vmem:[%s15887_s29 + $0x1cc8] sm:$0xff]  }
 0x3d0   : > { %13991 = vmatpush3.bf16.msra.mxu0 %v15310_v42  ;;  %v15358_v42 = vld [vmem:[%s15887_s29 + $0x1c08] sm:$0xff]  }
 0x3d1   : > { %14013 = vmatpush3.bf16.msra.mxu1 %v15311_v43  ;;  %14020 = vmatprep.subr.bf16.mxu0 %v15316_v49  ;;  %v15359_v43 = vld [vmem:[%s15887_s29 + $0x1c88] sm:$0xff]   ;;  %v15365_v49 = vld [vmem:[%s15887_s29 + $0x1cd8] sm:$0xff]  }
 0x3d2   : > { %14042 = vmatprep.subr.bf16.mxu1 %v15317_v51  ;;  %v15367_v51 = vld [vmem:[%s15887_s29 + $0x1c98] sm:$0xff]  }
 0x3d3   : > { %11086 = vmatmul.mubr.bf16.vlgmr.msra.gmra.mrb[104].mxu0 %v11779_v46  ;;  %v15362_v46 = vld [vmem:[%s15887_s29 + $0x1c10] sm:$0xff]  }
 0x3d4   : > { %11126 = vmatmul.mubr.bf16.vlgmr.msra.gmra.mrb[104].mxu1 %v11781_v48  ;;  %14021 = vmatpush3.bf16.msra.mxu0 %v15318_v52  ;;  %v15364_v48 = vld [vmem:[%s15887_s29 + $0x1c58] sm:$0xff]   ;;  %v15368_v52 = vld [vmem:[%s15887_s29 + $0x1c60] sm:$0xff]  }
 0x3d5   : > { %14043 = vmatpush3.bf16.msra.mxu1 %v15319_v53  ;;  %14022 = vmatprep.subr.bf16.mxu0 %v15320_v54  ;;  %v15369_v53 = vld [vmem:[%s15887_s29 + $0x1ce0] sm:$0xff]  }
 0x3d6   : > { %14044 = vmatprep.subr.bf16.mxu1 %v15321_v55  ;;  %11165 = vmatprep.mubr.bf16.mxu0 %v11784_v32  ;;  %v15370_v55 = vld [vmem:[%s15887_s29 + $0x1c20] sm:$0xff]   ;;  %v15398_v32 = vld [vmem:[%s15887_s29 + $0x1d10] sm:$0xff]  }
 0x3d7   : > { %11205 = vmatprep.mubr.bf16.mxu1 %v11786_v35  ;;  %v15401_v35 = vld [vmem:[%s15887_s29 + $0x1dd8] sm:$0xff]  }
 0x3d8   : > { %14023 = vmatpush3.bf16.msra.mxu0 %v15322_v56 }
 0x3d9   : > { %14045 = vmatpush3.bf16.msra.mxu1 %v15323_v57  ;;  %14024 = vmatprep.subr.bf16.mxu0 %v15324_v58  ;;  %v15371_v57 = vld [vmem:[%s15887_s29 + $0x1ca0] sm:$0xff]  }
 0x3da   : > { %14046 = vmatprep.subr.bf16.mxu1 %v15325_v59 }
 0x3dc   : > { %14025 = vmatpush3.bf16.msra.mxu0 %v15326_v60  ;;  %v15372_v60 = vld [vmem:[%s15887_s29 + $0x1c68] sm:$0xff]  }
 0x3dd   : > { %14047 = vmatpush3.bf16.msra.mxu1 %v15327_v61  ;;  %14026 = vmatprep.subr.bf16.mxu0 %v15328_v62 }
 0x3de   : > { %14048 = vmatprep.subr.bf16.mxu1 %v15329_v63  ;;  %v15373_v63 = vld [vmem:[%s15887_s29 + $0x1ce8] sm:$0xff]  }
 0x3e0   : > { %14027 = vmatpush3.bf16.msra.mxu0 %v15330_v0 }
 0x3e1   : > { %14049 = vmatpush3.bf16.msra.mxu1 %v15331_v1  ;;  %14028 = vmatprep.subr.bf16.mxu0 %v15332_v2  ;;  %v15374_v2 = vld [vmem:[%s15887_s29 + $0x1c28] sm:$0xff]  }
 0x3e2   : > { %14050 = vmatprep.subr.bf16.mxu1 %v15333_v3 }
 0x3e4   : > { %14029 = vmatpush3.bf16.msra.mxu0 %v15334_v5 }
 0x3e5   : > { %14051 = vmatpush3.bf16.msra.mxu1 %v15335_v7  ;;  %14030 = vmatprep.subr.bf16.mxu0 %v15336_v10  ;;  %v15376_v7 = vld [vmem:[%s15887_s29 + $0x1c70] sm:$0xff]  }
 0x3e6   : > { %v13728_v4 = vpop.f32.mrb[80].mxu0  ;;  %14052 = vmatprep.subr.bf16.mxu1 %v15337_v13  ;;  %v15378_v10 = vld [vmem:[%s15887_s29 + $0x1c30] sm:$0xff]   ;;  %v15381_v13 = vld [vmem:[%s15887_s29 + $0x1cf8] sm:$0xff]  }
 0x3e7   : > { %v13750_v6 = vpop.f32.mrb[80].mxu1  ;;  %v13729_v8 = vpop.f32.mrb[81].mxu0 }
 0x3e8   : > { %v13751_v9 = vpop.f32.mrb[81].mxu1  ;;  %v13730_v11 = vadd.f32 %v13729_v8, %v13728_v4  ;;  %v13731_v14 = vpop.f32.mrb[82].mxu0  ;;  %14031 = vmatpush3.bf16.msra.mxu0 %v15338_v16  ;;  %v15375_v4 = vld [vmem:[%s15887_s29 + $0x1ca8] sm:$0xff]   ;;  %v325_v16 = vld [vmem:[%s15911_s25 + $0x1c0] sm:$0xff] }
 0x3e9   : > { %v13752_v12 = vadd.f32 %v13751_v9, %v13750_v6  ;;  %v13753_v15 = vpop.f32.mrb[82].mxu1  ;;  %v13732_v19 = vpop.f32.mrb[83].mxu0  ;;  %14053 = vmatpush3.bf16.msra.mxu1 %v15339_v18  ;;  %14032 = vmatprep.subr.bf16.mxu0 %v15340_v21  ;;  %v15377_v9 = vld [vmem:[%s15887_s29 + $0x1cf0] sm:$0xff]   ;;  %v15382_v14 = vld [vmem:[%s15887_s29 + $0x1c38] sm:$0xff]   ;;  %v11787_v18 = vcombine.low %v325_v16, %v325_v16 }
 0x3ea   : > { %v10608_v17 = vadd.f32 %v13730_v11, %v16879_v34  ;;  %v13754_v20 = vpop.f32.mrb[83].mxu1  ;;  %14054 = vmatprep.subr.bf16.mxu1 %v15341_v23  ;;  %v11785_v34 = vcombine.low %v324_v33, %v324_v33  ;;  %v15379_v11 = vld [vmem:[%s15887_s29 + $0x1cb0] sm:$0xff]   ;;  %v15383_v15 = vld [vmem:[%s15887_s29 + $0x1cb8] sm:$0xff]   ;;  %v11788_v19 = vcombine.high %v325_v16, %v325_v16  ;;  %v15389_v23 = vld [vmem:[%s15887_s29 + $0x1dc0] sm:$0xff]  }
 0x3eb   : > { %v15399_v33 = vld [vmem:[%s15887_s29 + $0x1d90] sm:$0xff]  }
 0x3ec   : > { %v16917_v22 = vadd.f32 %v13752_v12, %v10608_v17  ;;  %14033 = vmatpush3.bf16.msra.mxu0 %v15342_v24  ;;  %v15380_v12 = vld [vmem:[%s15887_s29 + $0x1c78] sm:$0xff]   ;;  %v326_v17 = vld [vmem:[%s15911_s25 + $0x1c8] sm:$0xff]  ;;  %v15432_v16 = vld [vmem:[%s15887_s29 + $0x1e50] sm:$0xff]  }
 0x3ed   : > { %14055 = vmatpush3.bf16.msra.mxu1 %v15343_v25  ;;  %14034 = vmatprep.subr.bf16.mxu0 %v15344_v26  ;;  %v11789_v20 = vcombine.low %v326_v17, %v326_v17  ;;  %v11790_v21 = vcombine.high %v326_v17, %v326_v17  ;;  %v15390_v24 = vld [vmem:[%s15887_s29 + $0x1d00] sm:$0xff]   ;;  %v15392_v26 = vld [vmem:[%s15887_s29 + $0x1d48] sm:$0xff]   ;;  %v15433_v17 = vld [vmem:[%s15887_s29 + $0x1ed0] sm:$0xff]  }
 0x3ee   : > { %14056 = vmatprep.subr.bf16.mxu1 %v15345_v27  ;;  %v15391_v25 = vld [vmem:[%s15887_s29 + $0x1d80] sm:$0xff]   ;;  %v15393_v27 = vld [vmem:[%s15887_s29 + $0x1dc8] sm:$0xff]  }
 0x3f0   : > { %14035 = vmatpush3.bf16.msra.mxu0 %v15346_v28  ;;  %v15394_v28 = vld [vmem:[%s15887_s29 + $0x1d08] sm:$0xff]  }
 0x3f1   : > { %14057 = vmatpush3.bf16.msra.mxu1 %v15347_v29  ;;  %14064 = vmatprep.subr.bf16.mxu0 %v15352_v36  ;;  %v15395_v29 = vld [vmem:[%s15887_s29 + $0x1d88] sm:$0xff]   ;;  %v15402_v36 = vld [vmem:[%s15887_s29 + $0x1d18] sm:$0xff]  }
 0x3f2   : > { %14086 = vmatprep.subr.bf16.mxu1 %v15353_v37  ;;  %v15403_v37 = vld [vmem:[%s15887_s29 + $0x1d98] sm:$0xff]  }
 0x3f3   : > { %11166 = vmatmul.mubr.bf16.vlgmr.msra.gmra.mrb[108].mxu0 %v11783_v31  ;;  %v15397_v31 = vld [vmem:[%s15887_s29 + $0x1dd0] sm:$0xff]  }
 0x3f4   : > { %11206 = vmatmul.mubr.bf16.vlgmr.msra.gmra.mrb[108].mxu1 %v11785_v34  ;;  %14065 = vmatpush3.bf16.msra.mxu0 %v15354_v38  ;;  %v15400_v34 = vld [vmem:[%s15887_s29 + $0x1d58] sm:$0xff]   ;;  %v15404_v38 = vld [vmem:[%s15887_s29 + $0x1d60] sm:$0xff]  }
 0x3f5   : > { %14087 = vmatpush3.bf16.msra.mxu1 %v15355_v39  ;;  %14066 = vmatprep.subr.bf16.mxu0 %v15356_v40  ;;  %v15405_v39 = vld [vmem:[%s15887_s29 + $0x1de0] sm:$0xff]  }
 0x3f6   : > { %14088 = vmatprep.subr.bf16.mxu1 %v15357_v41  ;;  %11245 = vmatprep.mubr.bf16.mxu0 %v11788_v19  ;;  %v15406_v40 = vld [vmem:[%s15887_s29 + $0x1d20] sm:$0xff]   ;;  %v15435_v19 = vld [vmem:[%s15887_s29 + $0x1e90] sm:$0xff]  }
 0x3f7   : > { %11285 = vmatprep.mubr.bf16.mxu1 %v11790_v21  ;;  %v15437_v21 = vld [vmem:[%s15887_s29 + $0x1ed8] sm:$0xff]  }
 0x3f8   : > { %14067 = vmatpush3.bf16.msra.mxu0 %v15358_v42  ;;  %v15407_v42 = vld [vmem:[%s15887_s29 + $0x1da0] sm:$0xff]  }
 0x3f9   : > { %14089 = vmatpush3.bf16.msra.mxu1 %v15359_v43  ;;  %14068 = vmatprep.subr.bf16.mxu0 %v15360_v44 }
 0x3fa   : > { %14090 = vmatprep.subr.bf16.mxu1 %v15361_v45 }
 0x3fc   : > { %14069 = vmatpush3.bf16.msra.mxu0 %v15362_v46 }
 0x3fd   : > { %14091 = vmatpush3.bf16.msra.mxu1 %v15363_v47  ;;  %14070 = vmatprep.subr.bf16.mxu0 %v15364_v48  ;;  %v15408_v48 = vld [vmem:[%s15887_s29 + $0x1d68] sm:$0xff]  }
 0x3fe   : > { %14092 = vmatprep.subr.bf16.mxu1 %v15365_v49 }
 0x400   : > { %14071 = vmatpush3.bf16.msra.mxu0 %v15366_v50  ;;  %v15409_v50 = vld [vmem:[%s15887_s29 + $0x1de8] sm:$0xff]  }
 0x401   : > { %14093 = vmatpush3.bf16.msra.mxu1 %v15367_v51  ;;  %14072 = vmatprep.subr.bf16.mxu0 %v15368_v52 }
 0x402   : > { %14094 = vmatprep.subr.bf16.mxu1 %v15369_v53  ;;  %v15410_v53 = vld [vmem:[%s15887_s29 + $0x1d28] sm:$0xff]  }
 0x404   : > { %14073 = vmatpush3.bf16.msra.mxu0 %v15370_v55  ;;  %v15411_v55 = vld [vmem:[%s15887_s29 + $0x1da8] sm:$0xff]  }
 0x405   : > { %14095 = vmatpush3.bf16.msra.mxu1 %v15371_v57  ;;  %14074 = vmatprep.subr.bf16.mxu0 %v15372_v60  ;;  %v15414_v60 = vld [vmem:[%s15887_s29 + $0x1d30] sm:$0xff]  }
 0x406   : > { %v13772_v54 = vpop.f32.mrb[84].mxu0  ;;  %14096 = vmatprep.subr.bf16.mxu1 %v15373_v63  ;;  %v15417_v63 = vld [vmem:[%s15887_s29 + $0x1df8] sm:$0xff]  }
 0x407   : > { %v13794_v56 = vpop.f32.mrb[84].mxu1  ;;  %v13773_v58 = vpop.f32.mrb[85].mxu0 }
 0x408   : > { %v13795_v59 = vpop.f32.mrb[85].mxu1  ;;  %v13774_v61 = vadd.f32 %v13773_v58, %v13772_v54  ;;  %v13775_v0 = vpop.f32.mrb[86].mxu0  ;;  %14075 = vmatpush3.bf16.msra.mxu0 %v15374_v2  ;;  %v15412_v58 = vld [vmem:[%s15887_s29 + $0x1d70] sm:$0xff]   ;;  %v327_v2 = vld [vmem:[%s15911_s25 + $0x1d0] sm:$0xff] }
 0x409   : > { %v13796_v62 = vadd.f32 %v13795_v59, %v13794_v56  ;;  %v13797_v1 = vpop.f32.mrb[86].mxu1  ;;  %v13776_v5 = vpop.f32.mrb[87].mxu0  ;;  %14097 = vmatpush3.bf16.msra.mxu1 %v15375_v4  ;;  %14076 = vmatprep.subr.bf16.mxu0 %v15376_v7  ;;  %v15413_v59 = vld [vmem:[%s15887_s29 + $0x1df0] sm:$0xff]   ;;  %v15418_v0 = vld [vmem:[%s15887_s29 + $0x1d38] sm:$0xff]   ;;  %v11791_v4 = vcombine.low %v327_v2, %v327_v2 }
 0x40a   : > { %v10688_v3 = vadd.f32 %v13774_v61, %v16917_v22  ;;  %v13798_v6 = vpop.f32.mrb[87].mxu1  ;;  %14098 = vmatprep.subr.bf16.mxu1 %v15377_v9  ;;  %v15388_v22 = vld [vmem:[%s15887_s29 + $0x1d40] sm:$0xff]   ;;  %v15415_v61 = vld [vmem:[%s15887_s29 + $0x1db0] sm:$0xff]   ;;  %v15419_v1 = vld [vmem:[%s15887_s29 + $0x1db8] sm:$0xff]   ;;  %v11792_v5 = vcombine.high %v327_v2, %v327_v2 }
 0x40b   : > { %v15425_v9 = vld [vmem:[%s15887_s29 + $0x1ec0] sm:$0xff]   ;;  %v15468_v2 = vld [vmem:[%s15887_s29 + $0x1f50] sm:$0xff]  }
 0x40c   : > { %v16954_v8 = vadd.f32 %v13796_v62, %v10688_v3  ;;  %14077 = vmatpush3.bf16.msra.mxu0 %v15378_v10  ;;  %v15416_v62 = vld [vmem:[%s15887_s29 + $0x1d78] sm:$0xff]   ;;  %v328_v3 = vld [vmem:[%s15911_s25 + $0x1d8] sm:$0xff]  ;;  %v15426_v10 = vld [vmem:[%s15887_s29 + $0x1e00] sm:$0xff]  }
 0x40d   : > { %14099 = vmatpush3.bf16.msra.mxu1 %v15379_v11  ;;  %14078 = vmatprep.subr.bf16.mxu0 %v15380_v12  ;;  %v11793_v6 = vcombine.low %v328_v3, %v328_v3  ;;  %v11794_v7 = vcombine.high %v328_v3, %v328_v3  ;;  %v15427_v11 = vld [vmem:[%s15887_s29 + $0x1e80] sm:$0xff]   ;;  %v15428_v12 = vld [vmem:[%s15887_s29 + $0x1e48] sm:$0xff]   ;;  %v15469_v3 = vld [vmem:[%s15887_s29 + $0x1fd0] sm:$0xff]  }
 0x40e   : > { %14100 = vmatprep.subr.bf16.mxu1 %v15381_v13  ;;  %v15429_v13 = vld [vmem:[%s15887_s29 + $0x1ec8] sm:$0xff]  }
 0x410   : > { %14079 = vmatpush3.bf16.msra.mxu0 %v15382_v14  ;;  %v15430_v14 = vld [vmem:[%s15887_s29 + $0x1e08] sm:$0xff]  }
 0x411   : > { %14101 = vmatpush3.bf16.msra.mxu1 %v15383_v15  ;;  %14108 = vmatprep.subr.bf16.mxu0 %v15388_v22  ;;  %v15431_v15 = vld [vmem:[%s15887_s29 + $0x1e88] sm:$0xff]   ;;  %v15438_v22 = vld [vmem:[%s15887_s29 + $0x1e18] sm:$0xff]  }
 0x412   : > { %14130 = vmatprep.subr.bf16.mxu1 %v15389_v23  ;;  %v15439_v23 = vld [vmem:[%s15887_s29 + $0x1e98] sm:$0xff]  }
 0x413   : > { %11246 = vmatmul.mubr.bf16.vlgmr.msra.gmra.mrb[112].mxu0 %v11787_v18  ;;  %v15434_v18 = vld [vmem:[%s15887_s29 + $0x1e10] sm:$0xff]  }
 0x414   : > { %11286 = vmatmul.mubr.bf16.vlgmr.msra.gmra.mrb[112].mxu1 %v11789_v20  ;;  %14109 = vmatpush3.bf16.msra.mxu0 %v15390_v24  ;;  %v15436_v20 = vld [vmem:[%s15887_s29 + $0x1e58] sm:$0xff]   ;;  %v15440_v24 = vld [vmem:[%s15887_s29 + $0x1e60] sm:$0xff]  }
 0x415   : > { %14131 = vmatpush3.bf16.msra.mxu1 %v15391_v25  ;;  %14110 = vmatprep.subr.bf16.mxu0 %v15392_v26  ;;  %v15441_v25 = vld [vmem:[%s15887_s29 + $0x1ee0] sm:$0xff]  }
 0x416   : > { %14132 = vmatprep.subr.bf16.mxu1 %v15393_v27  ;;  %11325 = vmatprep.mubr.bf16.mxu0 %v11792_v5  ;;  %v15442_v27 = vld [vmem:[%s15887_s29 + $0x1e20] sm:$0xff]   ;;  %v15471_v5 = vld [vmem:[%s15887_s29 + $0x1f90] sm:$0xff]  }
 0x417   : > { %11365 = vmatprep.mubr.bf16.mxu1 %v11794_v7  ;;  %v15473_v7 = vld [vmem:[%s15887_s29 + $0x1fd8] sm:$0xff]  }
 0x418   : > { %14111 = vmatpush3.bf16.msra.mxu0 %v15394_v28 }
 0x419   : > { %14133 = vmatpush3.bf16.msra.mxu1 %v15395_v29  ;;  %14112 = vmatprep.subr.bf16.mxu0 %v15396_v30  ;;  %v15443_v29 = vld [vmem:[%s15887_s29 + $0x1ea0] sm:$0xff]  }
 0x41a   : > { %14134 = vmatprep.subr.bf16.mxu1 %v15397_v31 }
 0x41c   : > { %14113 = vmatpush3.bf16.msra.mxu0 %v15398_v32 }
 0x41d   : > { %14135 = vmatpush3.bf16.msra.mxu1 %v15399_v33  ;;  %14114 = vmatprep.subr.bf16.mxu0 %v15400_v34  ;;  %v15444_v33 = vld [vmem:[%s15887_s29 + $0x1e68] sm:$0xff]  }
 0x41e   : > { %14136 = vmatprep.subr.bf16.mxu1 %v15401_v35  ;;  %v15445_v35 = vld [vmem:[%s15887_s29 + $0x1ee8] sm:$0xff]  }
 0x420   : > { %14115 = vmatpush3.bf16.msra.mxu0 %v15402_v36 }
 0x421   : > { %14137 = vmatpush3.bf16.msra.mxu1 %v15403_v37  ;;  %14116 = vmatprep.subr.bf16.mxu0 %v15404_v38 }
 0x422   : > { %14138 = vmatprep.subr.bf16.mxu1 %v15405_v39  ;;  %v15446_v39 = vld [vmem:[%s15887_s29 + $0x1e28] sm:$0xff]  }
 0x424   : > { %14117 = vmatpush3.bf16.msra.mxu0 %v15406_v40  ;;  %v15447_v40 = vld [vmem:[%s15887_s29 + $0x1ea8] sm:$0xff]  }
 0x425   : > { %14139 = vmatpush3.bf16.msra.mxu1 %v15407_v42  ;;  %14118 = vmatprep.subr.bf16.mxu0 %v15408_v48  ;;  %v15452_v48 = vld [vmem:[%s15887_s29 + $0x1e78] sm:$0xff]  }
 0x426   : > { %v13816_v41 = vpop.f32.mrb[88].mxu0  ;;  %14140 = vmatprep.subr.bf16.mxu1 %v15409_v50  ;;  %v15454_v50 = vld [vmem:[%s15887_s29 + $0x1e38] sm:$0xff]  }
 0x427   : > { %v13838_v43 = vpop.f32.mrb[88].mxu1  ;;  %v13817_v44 = vpop.f32.mrb[89].mxu0 }
 0x428   : > { %v13839_v45 = vpop.f32.mrb[89].mxu1  ;;  %v13818_v46 = vadd.f32 %v13817_v44, %v13816_v41  ;;  %v13819_v49 = vpop.f32.mrb[90].mxu0  ;;  %14119 = vmatpush3.bf16.msra.mxu0 %v15410_v53  ;;  %v15448_v44 = vld [vmem:[%s15887_s29 + $0x1e70] sm:$0xff]   ;;  %v330_v53 = vld [vmem:[%s15911_s25 + $0x1e8] sm:$0xff] }
 0x429   : > { %v13840_v47 = vadd.f32 %v13839_v45, %v13838_v43  ;;  %v13841_v51 = vpop.f32.mrb[90].mxu1  ;;  %v13820_v54 = vpop.f32.mrb[91].mxu0  ;;  %14141 = vmatpush3.bf16.msra.mxu1 %v15411_v55  ;;  %14120 = vmatprep.subr.bf16.mxu0 %v15412_v58  ;;  %v15449_v45 = vld [vmem:[%s15887_s29 + $0x1ef0] sm:$0xff]   ;;  %v15453_v49 = vld [vmem:[%s15887_s29 + $0x1ef8] sm:$0xff]   ;;  %v11798_v58 = vcombine.high %v330_v53, %v330_v53 }
 0x42a   : > { %v10768_v52 = vadd.f32 %v13818_v46, %v16954_v8  ;;  %v13842_v56 = vpop.f32.mrb[91].mxu1  ;;  %14142 = vmatprep.subr.bf16.mxu1 %v15413_v59  ;;  %v15424_v8 = vld [vmem:[%s15887_s29 + $0x1e40] sm:$0xff]   ;;  %v15450_v46 = vld [vmem:[%s15887_s29 + $0x1e30] sm:$0xff]   ;;  %v15455_v51 = vld [vmem:[%s15887_s29 + $0x1eb8] sm:$0xff]  }
 0x42b   : > { %v11797_v56 = vcombine.low %v330_v53, %v330_v53  ;;  %v15461_v59 = vld [vmem:[%s15887_s29 + $0x1fc0] sm:$0xff]  }
 0x42c   : > { %v16990_v57 = vadd.f32 %v13840_v47, %v10768_v52  ;;  %14121 = vmatpush3.bf16.msra.mxu0 %v15414_v60  ;;  %v15451_v47 = vld [vmem:[%s15887_s29 + $0x1eb0] sm:$0xff]   ;;  %v329_v52 = vld [vmem:[%s15911_s25 + $0x1e0] sm:$0xff]  ;;  %v15462_v60 = vld [vmem:[%s15887_s29 + $0x1f00] sm:$0xff]  }
 0x42d   : > { %14143 = vmatpush3.bf16.msra.mxu1 %v15415_v61  ;;  %14122 = vmatprep.subr.bf16.mxu0 %v15416_v62  ;;  %v11795_v54 = vcombine.low %v329_v52, %v329_v52  ;;  %v11796_v55 = vcombine.high %v329_v52, %v329_v52  ;;  %v15463_v61 = vld [vmem:[%s15887_s29 + $0x1f80] sm:$0xff]   ;;  %v15464_v62 = vld [vmem:[%s15887_s29 + $0x1f48] sm:$0xff]  }
 0x42e   : > { %14144 = vmatprep.subr.bf16.mxu1 %v15417_v63  ;;  %v15465_v63 = vld [vmem:[%s15887_s29 + $0x1fc8] sm:$0xff]  }
 0x430   : > { %14123 = vmatpush3.bf16.msra.mxu0 %v15418_v0  ;;  %v15466_v0 = vld [vmem:[%s15887_s29 + $0x1f08] sm:$0xff]  }
 0x431   : > { %14145 = vmatpush3.bf16.msra.mxu1 %v15419_v1  ;;  %14152 = vmatprep.subr.bf16.mxu0 %v15424_v8  ;;  %v15467_v1 = vld [vmem:[%s15887_s29 + $0x1f88] sm:$0xff]   ;;  %v15474_v8 = vld [vmem:[%s15887_s29 + $0x1f18] sm:$0xff]  }
 0x432   : > { %14174 = vmatprep.subr.bf16.mxu1 %v15425_v9  ;;  %v15475_v9 = vld [vmem:[%s15887_s29 + $0x1f98] sm:$0xff]  }
 0x433   : > { %11326 = vmatmul.mubr.bf16.vlgmr.msra.gmra.mrb[116].mxu0 %v11791_v4  ;;  %v15470_v4 = vld [vmem:[%s15887_s29 + $0x1f10] sm:$0xff]  }
 0x434   : > { %11366 = vmatmul.mubr.bf16.vlgmr.msra.gmra.mrb[116].mxu1 %v11793_v6  ;;  %14153 = vmatpush3.bf16.msra.mxu0 %v15426_v10  ;;  %v15472_v6 = vld [vmem:[%s15887_s29 + $0x1f58] sm:$0xff]   ;;  %v15476_v10 = vld [vmem:[%s15887_s29 + $0x1f60] sm:$0xff]  }
 0x435   : > { %14175 = vmatpush3.bf16.msra.mxu1 %v15427_v11  ;;  %14154 = vmatprep.subr.bf16.mxu0 %v15428_v12  ;;  %v15477_v11 = vld [vmem:[%s15887_s29 + $0x1fe0] sm:$0xff]  }
 0x436   : > { %14176 = vmatprep.subr.bf16.mxu1 %v15429_v13  ;;  %11405 = vmatprep.mubr.bf16.mxu0 %v11796_v55  ;;  %v15478_v13 = vld [vmem:[%s15887_s29 + $0x1f20] sm:$0xff]  }
 0x437   : > { %11445 = vmatprep.mubr.bf16.mxu1 %v11798_v58 }
 0x438   : > { %14155 = vmatpush3.bf16.msra.mxu0 %v15430_v14 }
 0x439   : > { %14177 = vmatpush3.bf16.msra.mxu1 %v15431_v15  ;;  %14156 = vmatprep.subr.bf16.mxu0 %v15432_v16  ;;  %v15479_v15 = vld [vmem:[%s15887_s29 + $0x1fa0] sm:$0xff]  }
 0x43a   : > { %14178 = vmatprep.subr.bf16.mxu1 %v15433_v17 }
 0x43c   : > { %14157 = vmatpush3.bf16.msra.mxu0 %v15434_v18  ;;  %v15480_v18 = vld [vmem:[%s15887_s29 + $0x1f68] sm:$0xff]  }
 0x43d   : > { %14179 = vmatpush3.bf16.msra.mxu1 %v15435_v19  ;;  %14158 = vmatprep.subr.bf16.mxu0 %v15436_v20 }
 0x43e   : > { %14180 = vmatprep.subr.bf16.mxu1 %v15437_v21  ;;  %v15481_v21 = vld [vmem:[%s15887_s29 + $0x1fe8] sm:$0xff]  }
 0x440   : > { %14159 = vmatpush3.bf16.msra.mxu0 %v15438_v22 }
 0x441   : > { %14181 = vmatpush3.bf16.msra.mxu1 %v15439_v23  ;;  %14160 = vmatprep.subr.bf16.mxu0 %v15440_v24  ;;  %v15482_v24 = vld [vmem:[%s15887_s29 + $0x1f28] sm:$0xff]  }
 0x442   : > { %14182 = vmatprep.subr.bf16.mxu1 %v15441_v25 }
 0x444   : > { %14161 = vmatpush3.bf16.msra.mxu0 %v15442_v27 }
 0x445   : > { %14183 = vmatpush3.bf16.msra.mxu1 %v15443_v29  ;;  %14162 = vmatprep.subr.bf16.mxu0 %v15444_v33  ;;  %v15484_v29 = vld [vmem:[%s15887_s29 + $0x1f70] sm:$0xff]  }
 0x446   : > { %v13860_v26 = vpop.f32.mrb[92].mxu0  ;;  %14184 = vmatprep.subr.bf16.mxu1 %v15445_v35  ;;  %v15487_v33 = vld [vmem:[%s15887_s29 + $0x1fb0] sm:$0xff]   ;;  %v15489_v35 = vld [vmem:[%s15887_s29 + $0x1ff8] sm:$0xff]  }
 0x447   : > { %v13882_v28 = vpop.f32.mrb[92].mxu1  ;;  %v13861_v30 = vpop.f32.mrb[93].mxu0 }
 0x448   : > { %v13862_v31 = vadd.f32 %v13861_v30, %v13860_v26  ;;  %v13883_v32 = vpop.f32.mrb[93].mxu1  ;;  %v13863_v36 = vpop.f32.mrb[94].mxu0  ;;  %14163 = vmatpush3.bf16.msra.mxu0 %v15446_v39  ;;  %v15483_v26 = vld [vmem:[%s15887_s29 + $0x1fa8] sm:$0xff]  }
 0x449   : > { %v13884_v34 = vadd.f32 %v13883_v32, %v13882_v28  ;;  %v13885_v38 = vpop.f32.mrb[94].mxu1  ;;  %v13864_v41 = vpop.f32.mrb[95].mxu0  ;;  %14185 = vmatpush3.bf16.msra.mxu1 %v15447_v40  ;;  %14164 = vmatprep.subr.bf16.mxu0 %v15448_v44  ;;  %v15486_v32 = vld [vmem:[%s15887_s29 + $0x1f30] sm:$0xff]   ;;  %v15490_v36 = vld [vmem:[%s15887_s29 + $0x1f38] sm:$0xff]  }
 0x44a   : > { %v10848_v37 = vadd.f32 %v13862_v31, %v16990_v57  ;;  %v13886_v43 = vpop.f32.mrb[95].mxu1  ;;  %14186 = vmatprep.subr.bf16.mxu1 %v15449_v45  ;;  %v15460_v57 = vld [vmem:[%s15887_s29 + $0x1f40] sm:$0xff]   ;;  %v15485_v31 = vld [vmem:[%s15887_s29 + $0x1ff0] sm:$0xff]   ;;  %v331_v38 = vld [vmem:[%s15911_s25 + $0x1f0] sm:$0xff] }
 0x44b   : > { %v11799_v39 = vcombine.low %v331_v38, %v331_v38  ;;  %v11800_v40 = vcombine.high %v331_v38, %v331_v38  ;;  %v332_v41 = vld [vmem:[%s15911_s25 + $0x1f8] sm:$0xff] }
 0x44c   : > { %v17027_v42 = vadd.f32 %v13884_v34, %v10848_v37  ;;  %14165 = vmatpush3.bf16.msra.mxu0 %v15450_v46  ;;  %v15488_v34 = vld [vmem:[%s15887_s29 + $0x1f78] sm:$0xff]   ;;  %v11802_v43 = vcombine.high %v332_v41, %v332_v41 }
 0x44d   : > { %14187 = vmatpush3.bf16.msra.mxu1 %v15451_v47  ;;  %14166 = vmatprep.subr.bf16.mxu0 %v15452_v48  ;;  %v15491_v37 = vld [vmem:[%s15887_s29 + $0x1fb8] sm:$0xff]  }
 0x44e   : > { %14188 = vmatprep.subr.bf16.mxu1 %v15453_v49 }
 0x450   : > { %14167 = vmatpush3.bf16.msra.mxu0 %v15454_v50 }
 0x451   : > { %14189 = vmatpush3.bf16.msra.mxu1 %v15455_v51  ;;  %14196 = vmatprep.subr.bf16.mxu0 %v15460_v57 }
 0x452   : > { %14218 = vmatprep.subr.bf16.mxu1 %v15461_v59 }
 0x453   : > { %11406 = vmatmul.mubr.bf16.vlgmr.msra.gmra.mrb[120].mxu0 %v11795_v54 }
 0x454   : > { %11446 = vmatmul.mubr.bf16.vlgmr.msra.gmra.mrb[120].mxu1 %v11797_v56  ;;  %14197 = vmatpush3.bf16.msra.mxu0 %v15462_v60 }
 0x455   : > { %14219 = vmatpush3.bf16.msra.mxu1 %v15463_v61  ;;  %14198 = vmatprep.subr.bf16.mxu0 %v15464_v62 }
 0x456   : > { %14220 = vmatprep.subr.bf16.mxu1 %v15465_v63  ;;  %11485 = vmatprep.mubr.bf16.mxu0 %v11800_v40 }
 0x457   : > { %11525 = vmatprep.mubr.bf16.mxu1 %v11802_v43 }
 0x458   : > { %14199 = vmatpush3.bf16.msra.mxu0 %v15466_v0 }
 0x459   : > { %14221 = vmatpush3.bf16.msra.mxu1 %v15467_v1  ;;  %14200 = vmatprep.subr.bf16.mxu0 %v15468_v2 }
 0x45a   : > { %14222 = vmatprep.subr.bf16.mxu1 %v15469_v3 }
 0x45c   : > { %14201 = vmatpush3.bf16.msra.mxu0 %v15470_v4 }
 0x45d   : > { %14223 = vmatpush3.bf16.msra.mxu1 %v15471_v5  ;;  %14202 = vmatprep.subr.bf16.mxu0 %v15472_v6 }
 0x45e   : > { %14224 = vmatprep.subr.bf16.mxu1 %v15473_v7 }
 0x460   : > { %14203 = vmatpush3.bf16.msra.mxu0 %v15474_v8 }
 0x461   : > { %14225 = vmatpush3.bf16.msra.mxu1 %v15475_v9  ;;  %14204 = vmatprep.subr.bf16.mxu0 %v15476_v10 }
 0x462   : > { %14226 = vmatprep.subr.bf16.mxu1 %v15477_v11 }
 0x464   : > { %14205 = vmatpush3.bf16.msra.mxu0 %v15478_v13 }
 0x465   : > { %14227 = vmatpush3.bf16.msra.mxu1 %v15479_v15  ;;  %14206 = vmatprep.subr.bf16.mxu0 %v15480_v18 }
 0x466   : > { %v13904_v12 = vpop.f32.mrb[96].mxu0  ;;  %14228 = vmatprep.subr.bf16.mxu1 %v15481_v21 }
 0x467   : > { %v13926_v14 = vpop.f32.mrb[96].mxu1  ;;  %v13905_v16 = vpop.f32.mrb[97].mxu0 }
 0x468   : > { %v13927_v17 = vpop.f32.mrb[97].mxu1  ;;  %v13906_v19 = vadd.f32 %v13905_v16, %v13904_v12  ;;  %v13907_v22 = vpop.f32.mrb[98].mxu0  ;;  %14207 = vmatpush3.bf16.msra.mxu0 %v15482_v24 }
 0x469   : > { %v13928_v20 = vadd.f32 %v13927_v17, %v13926_v14  ;;  %v13929_v23 = vpop.f32.mrb[98].mxu1  ;;  %v13908_v27 = vpop.f32.mrb[99].mxu0  ;;  %14229 = vmatpush3.bf16.msra.mxu1 %v15483_v26  ;;  %14208 = vmatprep.subr.bf16.mxu0 %v15484_v29 }
 0x46a   : > { %v10928_v25 = vadd.f32 %v13906_v19, %v17027_v42  ;;  %v13930_v28 = vpop.f32.mrb[99].mxu1  ;;  %14230 = vmatprep.subr.bf16.mxu1 %v15485_v31  ;;  %v11801_v42 = vcombine.low %v332_v41, %v332_v41 }
 0x46c   : > { %v10968_v30 = vadd.f32 %v13928_v20, %v10928_v25  ;;  %14209 = vmatpush3.bf16.msra.mxu0 %v15486_v32 }
 0x46d   : > { %14231 = vmatpush3.bf16.msra.mxu1 %v15487_v33  ;;  %14210 = vmatprep.subr.bf16.mxu0 %v15488_v34 }
 0x46e   : > { %14232 = vmatprep.subr.bf16.mxu1 %v15489_v35 }
 0x470   : > { %14211 = vmatpush3.bf16.msra.mxu0 %v15490_v36 }
 0x471   : > { %14233 = vmatpush3.bf16.msra.mxu1 %v15491_v37 }
 0x473   : > { %11486 = vmatmul.mubr.bf16.vlgmr.msra.gmra.mrb[124].mxu0 %v11799_v39 }
 0x474   : > { %11526 = vmatmul.mubr.bf16.vlgmr.msra.gmra.mrb[124].mxu1 %v11801_v42 }
 0x486   : > { %v13948_v44 = vpop.f32.mrb[100].mxu0 }
 0x487   : > { %v13970_v45 = vpop.f32.mrb[100].mxu1  ;;  %v13949_v46 = vpop.f32.mrb[101].mxu0 }
 0x488   : > { %v13950_v47 = vadd.f32 %v13949_v46, %v13948_v44  ;;  %v13971_v48 = vpop.f32.mrb[101].mxu1  ;;  %v13951_v49 = vpop.f32.mrb[102].mxu0 }
 0x489   : > { %v13972_v50 = vadd.f32 %v13971_v48, %v13970_v45  ;;  %v13973_v51 = vpop.f32.mrb[102].mxu1  ;;  %v13952_v52 = vpop.f32.mrb[103].mxu0 }
 0x48a   : > { %v11008_v53 = vadd.f32 %v13950_v47, %v10968_v30  ;;  %v13974_v54 = vpop.f32.mrb[103].mxu1 }
 0x48c   : > { %v11048_v55 = vadd.f32 %v13972_v50, %v11008_v53 }
 0x4a6   : > { %v13992_v56 = vpop.f32.mrb[104].mxu0 }
 0x4a7   : > { %v14014_v57 = vpop.f32.mrb[104].mxu1  ;;  %v13993_v58 = vpop.f32.mrb[105].mxu0 }
 0x4a8   : > { %v13994_v59 = vadd.f32 %v13993_v58, %v13992_v56  ;;  %v14015_v60 = vpop.f32.mrb[105].mxu1  ;;  %v13995_v61 = vpop.f32.mrb[106].mxu0 }
 0x4a9   : > { %v14016_v62 = vadd.f32 %v14015_v60, %v14014_v57  ;;  %v14017_v63 = vpop.f32.mrb[106].mxu1  ;;  %v13996_v0 = vpop.f32.mrb[107].mxu0 }
 0x4aa   : > { %v11088_v1 = vadd.f32 %v13994_v59, %v11048_v55  ;;  %v14018_v2 = vpop.f32.mrb[107].mxu1  ;;  %v268_v63 = vld [vmem:[#allocation2] sm:$0xff] }
 0x4ac   : > { %v11128_v3 = vadd.f32 %v14016_v62, %v11088_v1 }
 0x4c6   : > { %v14036_v4 = vpop.f32.mrb[108].mxu0 }
 0x4c7   : > { %v14058_v5 = vpop.f32.mrb[108].mxu1  ;;  %v14037_v6 = vpop.f32.mrb[109].mxu0 }
 0x4c8   : > { %v14059_v7 = vpop.f32.mrb[109].mxu1  ;;  %v14038_v8 = vadd.f32 %v14037_v6, %v14036_v4  ;;  %v14039_v10 = vpop.f32.mrb[110].mxu0 }
 0x4c9   : > { %v14060_v9 = vadd.f32 %v14059_v7, %v14058_v5  ;;  %v14061_v11 = vpop.f32.mrb[110].mxu1  ;;  %v14040_v12 = vpop.f32.mrb[111].mxu0 }
 0x4ca   : > { %v14062_v13 = vpop.f32.mrb[111].mxu1  ;;  %v11168_v14 = vadd.f32 %v14038_v8, %v11128_v3  ;;  %v12828_v3 = vld [vmem:[%s15894_s8] ss:$0 sm:$0xff] (!%p12827_p1) }
 0x4cc   : > { %v11208_v15 = vadd.f32 %v14060_v9, %v11168_v14 }
 0x4e6   : > { %v14080_v16 = vpop.f32.mrb[112].mxu0 }
 0x4e7   : > { %v14102_v17 = vpop.f32.mrb[112].mxu1  ;;  %v14081_v18 = vpop.f32.mrb[113].mxu0 }
 0x4e8   : > { %v14082_v19 = vadd.f32 %v14081_v18, %v14080_v16  ;;  %v14103_v20 = vpop.f32.mrb[113].mxu1  ;;  %v14083_v21 = vpop.f32.mrb[114].mxu0 }
 0x4e9   : > { %v14104_v22 = vadd.f32 %v14103_v20, %v14102_v17  ;;  %v14105_v23 = vpop.f32.mrb[114].mxu1  ;;  %v14084_v24 = vpop.f32.mrb[115].mxu0 }
 0x4ea   : > { %v11248_v25 = vadd.f32 %v14082_v19, %v11208_v15  ;;  %v14106_v26 = vpop.f32.mrb[115].mxu1 }
 0x4ec   : > { %v11288_v27 = vadd.f32 %v14104_v22, %v11248_v25 }
 0x506   : > { %v14124_v28 = vpop.f32.mrb[116].mxu0 }
 0x507   : > { %v14146_v29 = vpop.f32.mrb[116].mxu1  ;;  %v14125_v30 = vpop.f32.mrb[117].mxu0 }
 0x508   : > { %v14126_v31 = vadd.f32 %v14125_v30, %v14124_v28  ;;  %v14147_v32 = vpop.f32.mrb[117].mxu1  ;;  %v14127_v33 = vpop.f32.mrb[118].mxu0 }
 0x509   : > { %v14148_v34 = vadd.f32 %v14147_v32, %v14146_v29  ;;  %v14149_v35 = vpop.f32.mrb[118].mxu1  ;;  %v14128_v36 = vpop.f32.mrb[119].mxu0 }
 0x50a   : > { %v11328_v37 = vadd.f32 %v14126_v31, %v11288_v27  ;;  %v14150_v38 = vpop.f32.mrb[119].mxu1 }
 0x50c   : > { %v11368_v39 = vadd.f32 %v14148_v34, %v11328_v37 }
 0x526   : > { %v14168_v40 = vpop.f32.mrb[120].mxu0 }
 0x527   : > { %v14190_v41 = vpop.f32.mrb[120].mxu1  ;;  %v14169_v42 = vpop.f32.mrb[121].mxu0 }
 0x528   : > { %v14170_v43 = vadd.f32 %v14169_v42, %v14168_v40  ;;  %v14191_v44 = vpop.f32.mrb[121].mxu1  ;;  %v14171_v45 = vpop.f32.mrb[122].mxu0 }
 0x529   : > { %v14192_v46 = vadd.f32 %v14191_v44, %v14190_v41  ;;  %v14193_v47 = vpop.f32.mrb[122].mxu1  ;;  %v14172_v48 = vpop.f32.mrb[123].mxu0 }
 0x52a   : > { %v11408_v49 = vadd.f32 %v14170_v43, %v11368_v39  ;;  %v14194_v50 = vpop.f32.mrb[123].mxu1 }
 0x52c   : > { %v11448_v51 = vadd.f32 %v14192_v46, %v11408_v49 }
 0x546   : > { %v14212_v52 = vpop.f32.mrb[124].mxu0 }
 0x547   : > { %v14234_v53 = vpop.f32.mrb[124].mxu1  ;;  %v14213_v54 = vpop.f32.mrb[125].mxu0 }
 0x548   : > { %v14235_v55 = vpop.f32.mrb[125].mxu1  ;;  %v14214_v56 = vadd.f32 %v14213_v54, %v14212_v52  ;;  %v14215_v58 = vpop.f32.mrb[126].mxu0 }
 0x549   : > { %v14236_v57 = vadd.f32 %v14235_v55, %v14234_v53  ;;  %v14237_v59 = vpop.f32.mrb[126].mxu1  ;;  %v14216_v60 = vpop.f32.mrb[127].mxu0 }
 0x54a   : > { %v14238_v61 = vpop.f32.mrb[127].mxu1  ;;  %v11488_v62 = vadd.f32 %v14214_v56, %v11448_v51  ;;  %11538 = sbr.rel (%p12827_p1) target bundleno = 1373 (0x55d), region = 48 }
 0x54c   : > { %v11528_v0 = vadd.f32 %v14236_v57, %v11488_v62 }
 0x54e   : > { %v11533_v1 = vadd.f32 %v11528_v0, %v268_v63 }
 0x550   : > { %11534 = vst [vmem:[#allocation2] sm:$0xff] %v11533_v1 }
 0x557   : > { %v11539_v2 = vld [vmem:[#allocation2] sm:$0xff] }
 0x558   : > { %v11547_v4 = vadd.f32 %v12828_v3, %v11539_v2 }
 0x55a   : > { %v11548_v5 = vmax.f32 %v11547_v4, 0.0 }
 0x55c   : > { %11549 = vst [vmem:[%s15906_s4] sm:$0xff] %v11548_v5 }
 0x55d PF: > { %s19_s22 = sadd.s32 1, %s15650_s22   ;;  %s17133_s19 = smov %s15836_s12 }
 0x55e   : > { %p16_p11 = scmp.ge.s32.totalorder %s19_s22, 8   ;;  %s17134_s5 = sld [smem:[#allocation9_spill]] }
 0x55f   : > { %s17135_s12 = smov %s15614_s13  ;;  %s17136_s13 = smov %s15618_s14 }
 0x560   : > { %s17137_s14 = smov %s17133_s19  ;;  %s17138_s15 = smov %s15626_s16 }
 0x561   : > { %s17139_s16 = smov %s15630_s17  ;;  %s17140_s17 = smov %s15841_s30 }
 0x562   : > { %s17141_s18 = smov %s15642_s20  ;;  %s17142_s19 = smov %s15646_s21 }
 0x563   : > { %s17143_s20 = smov %s17146_s23  ;;  %18 = sbr.rel (!%p16_p11) target bundleno = 11 (0xb), region = 96 }
 0x564   : > { %s17144_s21 = smov %s17134_s5 }
 0x56a   :  { %11569 = vsyncpa [#allocation4], 1 }
 0x56b   :  { %11571 = vsyncpa [#allocation4 + $0x1], 1 }
 0x56c   :  { %11572 = vsyncpa [#allocation6], 1 }
 0x56d   :  { %11574 = vsyncpa [#allocation6 + $0x1], 1 }

</bundles_post_ra>
